<compile_context>
chip_gen: v7x
topology: tpu7x:2x2x1
jax: 0.10.0
libtpu: 0.0.40
codegen_flags: <defaults>
</compile_context>

<pallas_src>
import functools

import jax
import jax.numpy as jnp
from jax.experimental import pallas as pl
from jax.experimental.pallas import tpu as pltpu

IGNORE_INDEX = -100

_TILE_VMEM_BUDGET = 32 * 1024 * 1024      # budget used to size the row tile
_VMEM_LIMIT_BYTES = 48 * 1024 * 1024      # scoped VMEM limit (< v7x's 64 MiB)


def _cdiv(a, b):
    return -(-a // b)


def _round_up(x, m):
    return _cdiv(x, m) * m


def _choose_tile_n(n, c, itemsize, vmem_budget_bytes=_TILE_VMEM_BUDGET):
    """Pick a row tile so the double-buffered logits block + intermediates fit."""
    # Per row resident in VMEM: 2x double-buffered input block plus roughly
    # two f32-wide vector intermediates (shifted logits / exp) kept live.
    per_row = c * (2 * itemsize + 12) + 64
    tile = vmem_budget_bytes // per_row
    tile = max(8, min(512, (tile // 8) * 8))
    # Rebalance so the last grid step is not mostly padding.
    g = _cdiv(n, tile)
    tile = _round_up(_cdiv(n, g), 8)
    return int(tile)


def _ce_kernel(logits_ref, tgt_ref, loss_ref, valid_ref, *, ignore_index):
    # logits_ref: (TN, C) in the input dtype; tgt_ref: (TN, 1) int32
    # loss_ref / valid_ref: (1, 1, TN) float32 (lane-dense outputs)
    x = logits_ref[...]                              # stay in input dtype
    t = tgt_ref[...]                                 # (TN, 1) int32

    # Numerically stable shift; single pass over the block.
    m = jnp.max(x, axis=-1, keepdims=True)           # (TN, 1)
    s = x - m                                        # (TN, C), input dtype

    # Fused exp-sum + target gather on the shifted logits:
    #   loss = log(sum exp(s)) - s[t]
    col = jax.lax.broadcasted_iota(jnp.int32, s.shape, 1)
    is_tgt = col == t                                # (TN, C) bool
    sum_exp = jnp.sum(jnp.exp(s), axis=-1, dtype=jnp.float32)          # (TN,)
    tgt_s = jnp.sum(jnp.where(is_tgt, s, jnp.zeros_like(s)),
                    axis=-1, dtype=jnp.float32)                        # (TN,)

    valid = t[:, 0] != ignore_index                  # (TN,) bool
    per_row = jnp.where(valid, jnp.log(sum_exp) - tgt_s, 0.0)          # (TN,) f32

    loss_ref[...] = per_row.reshape(loss_ref.shape)
    valid_ref[...] = valid.astype(jnp.float32).reshape(valid_ref.shape)


def parallel_cross_entropy_loss(logits, target, *, weight=None,
                                ignore_index=IGNORE_INDEX,
                                reduction="mean", tile_n=None,
                                vmem_limit_bytes=_VMEM_LIMIT_BYTES):
    """Forward of ParallelCrossEntropyLoss (weight=None)."""
    assert weight is None, "per-class weight not supported (module default is None)"
    N, C = logits.shape
    itemsize = jnp.dtype(logits.dtype).itemsize

    if tile_n is None:
        tile_n = _choose_tile_n(N, C, itemsize)
    tile_n = max(8, _round_up(min(tile_n, _round_up(N, 8)), 8))

    n_pad = _round_up(N, tile_n)
    G = n_pad // tile_n

    if n_pad != N:
        # Padded rows get ignore_index -> masked out inside the kernel.
        logits = jnp.pad(logits, ((0, n_pad - N), (0, 0)))
        target = jnp.pad(target, (0, n_pad - N), constant_values=ignore_index)
    tgt2d = target.astype(jnp.int32).reshape(n_pad, 1)

    kernel = functools.partial(_ce_kernel, ignore_index=ignore_index)

    per_row_loss, per_row_valid = pl.pallas_call(
        kernel,
        out_shape=(
            jax.ShapeDtypeStruct((G, 1, tile_n), jnp.float32),
            jax.ShapeDtypeStruct((G, 1, tile_n), jnp.float32),
        ),
        grid_spec=pltpu.PrefetchScalarGridSpec(
            num_scalar_prefetch=0,
            grid=(G,),
            in_specs=[
                pl.BlockSpec((tile_n, C), lambda i: (i, 0)),
                pl.BlockSpec((tile_n, 1), lambda i: (i, 0)),
            ],
            out_specs=[
                pl.BlockSpec((1, 1, tile_n), lambda i: (i, 0, 0)),
                pl.BlockSpec((1, 1, tile_n), lambda i: (i, 0, 0)),
            ],
        ),
        compiler_params=pltpu.CompilerParams(
            dimension_semantics=("parallel",),
            vmem_limit_bytes=vmem_limit_bytes,
        ),
    )(logits, tgt2d)

    per_row_loss = per_row_loss.reshape(n_pad)
    per_row_valid = per_row_valid.reshape(n_pad)

    if reduction == "none":
        return per_row_loss[:N]

    loss_sum = jnp.sum(per_row_loss)
    if reduction == "sum":
        return loss_sum
    # 'mean'
    n_valid = jnp.sum(per_row_valid)
    return loss_sum / jnp.maximum(n_valid, 1.0)


if __name__ == "__main__":
    key = jax.random.PRNGKey(0)
    k1, k2 = jax.random.split(key)

    # Small but non-trivial: N not a multiple of the tile, 2 grid steps.
    N, C = 600, 256
    logits = jax.random.normal(k1, (N, C), dtype=jnp.float32)
    target = jax.random.randint(k2, (N,), 0, C, dtype=jnp.int32)
    # exercise ignore_index on a couple of rows
    target = target.at[3].set(IGNORE_INDEX)
    target = target.at[77].set(IGNORE_INDEX)

    loss = parallel_cross_entropy_loss(logits, target)
    loss = jax.block_until_ready(loss)

    per_row = parallel_cross_entropy_loss(logits, target, reduction="none")
    per_row = jax.block_until_ready(per_row)

    # pure-JAX reference
    valid = target != IGNORE_INDEX
    safe_t = jnp.where(valid, target, 0)
    logp = jax.nn.log_softmax(logits, axis=-1)
    ref_rows = -jnp.take_along_axis(logp, safe_t[:, None], axis=-1)[:, 0]
    ref_rows = jnp.where(valid, ref_rows, 0.0)
    ref_mean = jnp.sum(ref_rows) / jnp.sum(valid)

    assert per_row.shape == (N,)
    assert jnp.allclose(per_row, ref_rows, atol=1e-4, rtol=1e-4), "per-row mismatch"
    assert jnp.allclose(loss, ref_mean, atol=1e-4, rtol=1e-4), (loss, ref_mean)

    print("KERNEL_OK")
</pallas_src>

<mosaic_0001>
module attributes {stable_mosaic.version = 11 : i64} {
  func.func @_ce_kernel(%arg0: i32, %arg1: memref<304x256xf32, #tpu.memory_space<vmem>>, %arg2: memref<304x1xi32, #tpu.memory_space<vmem>>, %arg3: memref<1x1x304xf32, #tpu.memory_space<vmem>>, %arg4: memref<1x1x304xf32, #tpu.memory_space<vmem>>) attributes {dimension_semantics = [#tpu.dimension_semantics<parallel>], iteration_bounds = array<i64: 2>, scalar_prefetch = 0 : i64, scratch_operands = 0 : i64, tpu.core_type = #tpu.core_type<tc>, window_params = [{transform_indices = @transform_0, window_bounds = array<i64: 304, 256>}, {transform_indices = @transform_1, window_bounds = array<i64: 304, 1>}, {transform_indices = @transform_2, window_bounds = array<i64: 1, 1, 304>}, {transform_indices = @transform_3, window_bounds = array<i64: 1, 1, 304>}]} {
    %c0 = arith.constant 0 : index
    %c0_0 = arith.constant 0 : index
    %0 = vector.load %arg1[%c0, %c0_0] : memref<304x256xf32, #tpu.memory_space<vmem>>, vector<304x256xf32>
    %c0_1 = arith.constant 0 : index
    %c0_2 = arith.constant 0 : index
    %1 = vector.load %arg2[%c0_1, %c0_2] : memref<304x1xi32, #tpu.memory_space<vmem>>, vector<304x1xi32>
    %cst = arith.constant dense<0xFF800000> : vector<304xf32>
    %2 = vector.multi_reduction <maximumf>, %0, %cst [1] : vector<304x256xf32> to vector<304xf32>
    %3 = vector.shape_cast %2 : vector<304xf32> to vector<304x1xf32>
    %4 = vector.broadcast %3 : vector<304x1xf32> to vector<304x256xf32>
    %5 = arith.subf %0, %4 : vector<304x256xf32>
    %6 = tpu.iota {dimensions = array<i32: 1>} : vector<304x256xi32>
    %7 = vector.broadcast %1 : vector<304x1xi32> to vector<304x256xi32>
    %8 = arith.cmpi eq, %6, %7 : vector<304x256xi32>
    %9 = math.exp %5 : vector<304x256xf32>
    %cst_3 = arith.constant dense<0.000000e+00> : vector<304xf32>
    %10 = vector.multi_reduction <add>, %9, %cst_3 [1] : vector<304x256xf32> to vector<304xf32>
    %cst_4 = arith.constant 0.000000e+00 : f32
    %11 = vector.broadcast %cst_4 : f32 to vector<304x256xf32>
    %12 = arith.select %8, %5, %11 : vector<304x256xi1>, vector<304x256xf32>
    %cst_5 = arith.constant dense<0.000000e+00> : vector<304xf32>
    %13 = vector.multi_reduction <add>, %12, %cst_5 [1] : vector<304x256xf32> to vector<304xf32>
    %14 = vector.shape_cast %1 : vector<304x1xi32> to vector<304xi32>
    %c-100_i32 = arith.constant -100 : i32
    %15 = vector.broadcast %c-100_i32 : i32 to vector<304xi32>
    %16 = arith.cmpi ne, %14, %15 : vector<304xi32>
    %17 = math.log %10 : vector<304xf32>
    %18 = arith.subf %17, %13 : vector<304xf32>
    %cst_6 = arith.constant 0.000000e+00 : f32
    %19 = vector.broadcast %cst_6 : f32 to vector<304xf32>
    %20 = arith.select %16, %18, %19 : vector<304xi1>, vector<304xf32>
    %21 = vector.shape_cast %20 : vector<304xf32> to vector<1x1x304xf32>
    %c0_7 = arith.constant 0 : index
    %c0_8 = arith.constant 0 : index
    %c0_9 = arith.constant 0 : index
    %22 = vector.load %arg3[%c0_7, %c0_8, %c0_9] : memref<1x1x304xf32, #tpu.memory_space<vmem>>, vector<1x1x304xf32>
    tpu.vector_store %arg3[%c0_7, %c0_8, %c0_9], %21 {strides = array<i32>} : memref<1x1x304xf32, #tpu.memory_space<vmem>>, vector<1x1x304xf32>,
    %23 = arith.extui %16 : vector<304xi1> to vector<304xi32>
    %24 = arith.sitofp %23 : vector<304xi32> to vector<304xf32>
    %25 = vector.shape_cast %24 : vector<304xf32> to vector<1x1x304xf32>
    %c0_10 = arith.constant 0 : index
    %c0_11 = arith.constant 0 : index
    %c0_12 = arith.constant 0 : index
    %26 = vector.load %arg4[%c0_10, %c0_11, %c0_12] : memref<1x1x304xf32, #tpu.memory_space<vmem>>, vector<1x1x304xf32>
    tpu.vector_store %arg4[%c0_10, %c0_11, %c0_12], %25 {strides = array<i32>} : memref<1x1x304xf32, #tpu.memory_space<vmem>>, vector<1x1x304xf32>,
    return
  }
  func.func @transform_0(%arg0: i32) -> (i32, i32) {
    %c0_i32 = arith.constant 0 : i32
    %c0_i32_0 = arith.constant 0 : i32
    return %arg0, %c0_i32 : i32, i32
  }
  func.func @transform_1(%arg0: i32) -> (i32, i32) {
    %c0_i32 = arith.constant 0 : i32
    %c0_i32_0 = arith.constant 0 : i32
    return %arg0, %c0_i32 : i32, i32
  }
  func.func @transform_2(%arg0: i32) -> (i32, i32, i32) {
    %c0_i32 = arith.constant 0 : i32
    %c0_i32_0 = arith.constant 0 : i32
    %c0_i32_1 = arith.constant 0 : i32
    return %arg0, %c0_i32, %c0_i32_0 : i32, i32, i32
  }
  func.func @transform_3(%arg0: i32) -> (i32, i32, i32) {
    %c0_i32 = arith.constant 0 : i32
    %c0_i32_0 = arith.constant 0 : i32
    %c0_i32_1 = arith.constant 0 : i32
    return %arg0, %c0_i32, %c0_i32_0 : i32, i32, i32
  }
}

</mosaic_0001>

<bundles_post_ra>
// kernel: tpu_custom_call.1
= control target key start
LH: loop header
LB: loop body
LE: loop exit
PB: predicated region body
PF: predicated region fallthrough
CT: control target
= control target key end

     0   :  { %9 = vsyncpa [#allocation3], 0  ;;  %s15079_s0 = inlined_call_operand.hbm [shape: f32[608,256], index: 0, kind: input, shape index: {}]   ;;  %s15080_s1 = inlined_call_operand.vmem [shape: s32[608,1], index: 1, kind: input, shape index: {}]   ;;  %s15081_s2 = inlined_call_operand.hbm [shape: f32[2,1,304], index: 2, kind: output, shape index: {0}]   ;;  %s15082_s3 = inlined_call_operand.hbm [shape: f32[2,1,304], index: 3, kind: output, shape index: {1}]  }
   0x1   :  { %11 = vsyncpa [#allocation3 + $0x1], 0 }
   0x2   :  { %12 = vsyncpa [#allocation4], 0 }
   0x3   :  { %14 = vsyncpa [#allocation4 + $0x1], 0 }
   0x4   :  { %15 = vsyncpa [#allocation7], 0 }
   0x5   :  { %17 = vsyncpa [#allocation7 + $0x1], 0  ;;  %s10516_s12 = smov 0   ;;  %s10518_s13 = smov 0  }
   0x6   :  { %s10520_s14 = smov 0   ;;  %s10522_s15 = smov 0  }
   0x7 LB: > { %s10537_s16 = sadd.s32 4294967295, %s10486_s15   ;;  %s9801_s17 = sadd.s32 4294967294, %s10486_s15   ;;  %s10486_s15 = sphi %s10522_s15, %s16011_s15   ;;  %s10482_s14 = sphi %s10520_s14, %s16010_s14   ;;  %s10478_s13 = sphi %s10518_s13, %s16009_s13   ;;  %s10474_s12 = sphi %s10516_s12, %s16008_s12  }
   0x8   : > { %s10541_s18 = sadd.s32 1, %s10486_s15   ;;  %s30_s19 = sadd.s32 1, %s10482_s14 }
   0x9   : > { %s27_s20 = ssub.s32 %s10486_s15, %s10541_s18  ;;  %p37_p0 = scmp.ne.s32.totalorder %s10482_s14, %s10478_s13 }
   0xa   : > { %p28_p1 = scmp.eq.s32.totalorder %s27_s20, 0  ;;  %p38_p2 = scmp.eq.s32.totalorder %s10486_s15, 0 }
   0xb   : > { %p43_p3 = scmp.ne.s32.totalorder %s10478_s13, %s10474_s12  ;;  %p44_p4 = scmp.eq.s32.totalorder %s10537_s16, 0 }
   0xc   : > { %s10553_s21 = scalar_select %p28_p1, %s10482_s14, %s30_s19  }
   0xd   : > { %p39_p5 = por %p38_p2, %p37_p0  ;;  %p10555_p6 = por %p44_p4, %p43_p3 }
   0xe   : > { %p93_p7 = scmp.eq.s32.totalorder %s10537_s16, 1  ;;  %p99_p8 = scmp.eq.s32.totalorder %s9801_s17, 1 }
   0xf   : > { %p10027_p10 = scmp.lt.s32.totalorder %s10486_s15, 2  ;;  %s145_s25 = sand.u32 1, %s10482_s14  }
  0x10   : > { %p10562_p11 = por %p93_p7, %p37_p0  ;;  %p10566_p12 = por %p99_p8, %p43_p3 }
  0x11   : > { %s10004_s26 = smul.u32 9728, %s10486_s15  ;;  %p10577_p13 = pnand %p10027_p10, %p39_p5 }
  0x12   : > { %s15277_s23 = scalar_select %p10562_p11, 1, 0 }
  0x13   : > { %s15278_s24 = scalar_select %p10566_p12, 1, 0 }
  0x14   : > { %s10005_s27 = smul.u32 608, %s145_s25  ;;  %s10575_s30 = scalar_lea.hbm %s15079_s0, %s10004_s26 }
  0x15   : > { %s10583_s7 = scalar_lea.sflag [#allocation3], %s145_s25  ;;  %s10358_s8 = scalar_lea.hbm %s10575_s30, 9728 }
  0x16   : > { %s149_s5 = scalar_lea.vmem [#allocation2], %s10005_s27  ;;  %p10359_p0 = scmp.ne.s32.totalorder %s10575_s30, %s10358_s8 }
  0x17   : > { %s157_s6 = sshll.u32 %s149_s5, 4  ;;  %p10360_p1 = pneg %p10577_p13  ;;  %s10581_s6 = int_to_ptr.vmem [resolvable:$true] %s157_s6 }
  0x18   : > { %s10363_s11 = scalar_lea.hbm %s15079_s0, 19456  ;;  %p10364_p4 = scmp.lt.u32.totalorder %s10575_s30, %s15079_s0 }
  0x19   : > { %p10361_p2 = pnand %p10360_p1, %p10359_p0  ;;  %p10365_p5 = scmp.lt.u32.totalorder %s10363_s11, %s10358_s8 }
  0x1a   : > { %p10367_p8 = scmp.lt.u32.totalorder %s10358_s8, %s10575_s30 }
  0x1b   : > { %p10362_p3 = pneg %p10361_p2  ;;  %p10366_p7 = por %p10365_p5, %p10364_p4 }
  0x1d   : > { %p10368_p10 = por %p10367_p8, %p10366_p7 }
  0x1f   : > { %p10369_p9 = pnand %p10368_p10, %p10362_p3 }
  0x21   : > { %10372 = shalt.err (!%p10369_p9)
}
  0x22   : > { %s10373_s20 = scalar_lea.vmem %s10581_s6, 9728  ;;  %s10488_s25 = smov [#allocation2]  }
  0x23   : > { %p10374_p0 = scmp.ne.s32.totalorder %s10581_s6, %s10373_s20  ;;  %s10378_s26 = sshll.u32 %s10488_s25, 4  ;;  %s10379_s26 = int_to_ptr.vmem [resolvable:$false] %s10378_s26 }
  0x24   : > { %s10380_s27 = scalar_lea.vmem %s10379_s26, 19456  ;;  %p10381_p11 = scmp.lt.s32.totalorder %s10581_s6, %s10379_s26 }
  0x25   : > { %p10376_p2 = pnand %p10374_p0, %p10360_p1  ;;  %p10382_p4 = scmp.lt.s32.totalorder %s10380_s27, %s10373_s20 }
  0x27   : > { %p10377_p12 = pneg %p10376_p2  ;;  %p10383_p5 = por %p10382_p4, %p10381_p11 }
  0x29   : > { %p10384_p7 = pnand %p10383_p5, %p10377_p12 }
  0x2b   : > { %10387 = shalt.err (!%p10384_p7)
}
  0x2c   : > { %s10489_s28 = smov 256   ;;  %s10490_s29 = smov 16  }
  0x2d   : > { %10019 = dma.hbm_to_vmem [thread:$0]  (!%p10577_p13), %s10575_s30, 9728, %s10581_s6, %s10583_s7, %s10489_s28, %s10489_s28, %s10490_s29  }
  0x2e   : > { %p9806_p9 = scmp.ge.s32.totalorder %s10486_s15, 1  ;;  %p174_p1 = scmp.lt.s32.totalorder %s10486_s15, 3 }
  0x30   : > { %p175_p3 = pnand %p9806_p9, %p174_p1 }
  0x32   : > { %178 = sbr.rel (%p175_p3) target bundleno = 1010 (0x3f2), region = 28 }
  0x39   : > { %s10614_s5 = sand.u32 1, %s10478_s13  }
  0x3a   : > { %s10006_s8 = smul.u32 608, %s10614_s5  ;;  %s181_s9 = scalar_lea.sflag [#allocation3], %s10614_s5 }
  0x3c   : > { %s10618_s10 = scalar_lea.vmem [#allocation2], %s10006_s8 }
  0x3d   : > { %10461 = dma.done.wait (%p10555_p6), %s181_s9, 9728  }
  0x3e   : > { %10463 = vsyncadd (%p10555_p6), %s181_s9, 4294957568  ;;  %v10491_v0 = vmov 0   ;;  %v10625_v1 = vld [vmem:[%s10618_s10 + $0x20] sm:$0xff]  ;;  %v10628_v2 = vld [vmem:[%s10618_s10 + $0x28] sm:$0xff]  ;;  %s218_s22 = smul.u32 38, %s10537_s16  ;;  %s9654_s28 = scalar_lea.sflag [#allocation4], %s10614_s5 }
  0x3f   : > { %10067 = vset.pattern.permute.xlu1 %v10491_v0  ;;  %10066 = vset.pattern.permute.xlu0 %v10491_v0  ;;  %v10631_v3 = vld [vmem:[%s10618_s10] sm:$0xff]  ;;  %v344_v4 = vmax.f32 %v10625_v1, %v10628_v2  ;;  %v10636_v5 = vld [vmem:[%s10618_s10 + $0x8] sm:$0xff]  ;;  %v10639_v6 = vld [vmem:[%s10618_s10 + $0x30] sm:$0xff]  ;;  %s10007_s11 = smul.u32 3, %s10614_s5  ;;  %p16005_p12 = scmp.ne.s32.totalorder %s15277_s23, 0 }
  0x40   : > { %v10642_v7 = vld [vmem:[%s10618_s10 + $0x38] sm:$0xff]  ;;  %v338_v8 = vmax.f32 %v10631_v3, %v10636_v5  ;;  %v10647_v9 = vld [vmem:[%s10618_s10 + $0x10] sm:$0xff]  ;;  %v10663_v15 = vld [vmem:[%s10618_s10 + $0x40] sm:$0xff]  ;;  %p219_p6 = scmp.lt.s32.totalorder %s218_s22, 75  ;;  %s10008_s17 = smul.u32 48, %s10537_s16 }
  0x41   : > { %v10650_v10 = vld [vmem:[%s10618_s10 + $0x18] sm:$0xff]  ;;  %345 = vmax.xlane.f32.xlu1 %v344_v4  ;;  %v347_v11 = vmax.f32 %v10639_v6, %v10642_v7  ;;  %v10657_v13 = vld [vmem:[%s10618_s10 + $0x50] sm:$0xff]  ;;  %v10666_v16 = vld [vmem:[%s10618_s10 + $0x48] sm:$0xff]  ;;  %s209_s19 = scalar_lea.vmem [#allocation5], %s10007_s11  ;;  %s10494_s8 = smov [#allocation5]  }
  0x42   : > { %339 = vmax.xlane.f32.xlu0 %v338_v8  ;;  %v341_v12 = vmax.f32 %v10647_v9, %v10650_v10  ;;  %v10660_v14 = vld [vmem:[%s10618_s10 + $0x58] sm:$0xff]  ;;  %v350_v18 = vmax.f32 %v10663_v15, %v10666_v16  ;;  %v10673_v19 = vld [vmem:[%s10618_s10 + $0x70] sm:$0xff]  ;;  %v10679_v21 = vld [vmem:[%s10618_s10 + $0x60] sm:$0xff]  ;;  %s16013_s22 = smov (!%p219_p6, %s218_s22), 75  ;;  %s9673_s20 = sshll.u32 %s209_s19, 4  ;;  %s14895_s20 = int_to_ptr.vmem [resolvable:$true] %s9673_s20 }
  0x43   : > { %v353_v17 = vmax.f32 %v10657_v13, %v10660_v14  ;;  %v10676_v20 = vld [vmem:[%s10618_s10 + $0x78] sm:$0xff]  ;;  %v10682_v22 = vld [vmem:[%s10618_s10 + $0x68] sm:$0xff]  ;;  %v10689_v25 = vld [vmem:[%s10618_s10 + $0x90] sm:$0xff]  ;;  %s9807_s30 = sshll.u32 %s16013_s22, 3  ;;  %s14893_s27 = scalar_lea.hbm %s15081_s2, %s10008_s17 }
  0x44   : > { %v359_v23 = vmax.f32 %v10673_v19, %v10676_v20  ;;  %v356_v24 = vmax.f32 %v10679_v21, %v10682_v22  ;;  %v10692_v26 = vld [vmem:[%s10618_s10 + $0x98] sm:$0xff]  ;;  %v10695_v27 = vld [vmem:[%s10618_s10 + $0x80] sm:$0xff]  ;;  %v10698_v28 = vld [vmem:[%s10618_s10 + $0x88] sm:$0xff]  ;;  %s10830_s7 = scalar_lea.vmem %s15080_s1, %s9807_s30  ;;  %s10388_s29 = scalar_lea.vmem %s14895_s20, 48 }
  0x45   : > { %348 = vmax.xlane.f32.xlu1 %v347_v11  ;;  %15280 = vst [vmem:[#allocation11_spill] sm:$0xff] %v10695_v27  ;;  %15281 = vst [vmem:[#allocation12_spill] sm:$0xff] %v10698_v28  ;;  %v365_v29 = vmax.f32 %v10689_v25, %v10692_v26  ;;  %v362_v30 = vmax.f32 %v10695_v27, %v10698_v28  ;;  %v10705_v31 = vld [vmem:[%s10618_s10 + $0xb0] sm:$0xff]  ;;  %v10708_v32 = vld [vmem:[%s10618_s10 + $0xb8] sm:$0xff]  ;;  %p10389_p11 = scmp.ne.s32.totalorder %s14895_s20, %s10388_s29  ;;  %s10392_s9 = sshll.u32 %s10494_s8, 4  ;;  %s10393_s9 = int_to_ptr.vmem [resolvable:$false] %s10392_s9 }
  0x46   : > { %342 = vmax.xlane.f32.xlu0 %v341_v12  ;;  %15282 = vst [vmem:[#allocation13_spill] sm:$0xff] %v10708_v32  ;;  %v10711_v33 = vld [vmem:[%s10618_s10 + $0xa0] sm:$0xff]  ;;  %v10714_v34 = vld [vmem:[%s10618_s10 + $0xa8] sm:$0xff]  ;;  %v371_v35 = vmax.f32 %v10705_v31, %v10708_v32  ;;  %v10721_v37 = vld [vmem:[%s10618_s10 + $0xd0] sm:$0xff]  ;;  %p10395_p10 = scmp.lt.s32.totalorder %s14895_s20, %s10393_s9 }
  0x47   : > { %15283 = vst [vmem:[#allocation14_spill] sm:$0xff] %v10711_v33  ;;  %15284 = vst [vmem:[#allocation15_spill] sm:$0xff] %v10714_v34  ;;  %v368_v36 = vmax.f32 %v10711_v33, %v10714_v34  ;;  %v10724_v38 = vld [vmem:[%s10618_s10 + $0xd8] sm:$0xff]  ;;  %v10727_v39 = vld [vmem:[%s10618_s10 + $0xc0] sm:$0xff]  ;;  %p10390_p13 = pnand %p10389_p11, %p16005_p12 }
  0x48   : > { %15285 = vst [vmem:[#allocation16_spill] sm:$0xff] %v10721_v37  ;;  %15286 = vst [vmem:[#allocation17_spill] sm:$0xff] %v10724_v38  ;;  %v10730_v40 = vld [vmem:[%s10618_s10 + $0xc8] sm:$0xff]  ;;  %v377_v41 = vmax.f32 %v10721_v37, %v10724_v38  ;;  %v10737_v43 = vld [vmem:[%s10618_s10 + $0xf0] sm:$0xff] }
  0x49   : > { %354 = vmax.xlane.f32.xlu1 %v353_v17  ;;  %15287 = vst [vmem:[#allocation18_spill] sm:$0xff] %v10727_v39  ;;  %15288 = vst [vmem:[#allocation19_spill] sm:$0xff] %v10730_v40  ;;  %v374_v42 = vmax.f32 %v10727_v39, %v10730_v40  ;;  %v10740_v44 = vld [vmem:[%s10618_s10 + $0xf8] sm:$0xff]  ;;  %v10743_v45 = vld [vmem:[%s10618_s10 + $0xe0] sm:$0xff]  ;;  %p10391_p8 = pneg %p10390_p13 }
  0x4a   : > { %351 = vmax.xlane.f32.xlu0 %v350_v18  ;;  %15289 = vst [vmem:[#allocation20_spill] sm:$0xff] %v10737_v43  ;;  %15290 = vst [vmem:[#allocation21_spill] sm:$0xff] %v10740_v44  ;;  %v10746_v46 = vld [vmem:[%s10618_s10 + $0xe8] sm:$0xff]  ;;  %v383_v47 = vmax.f32 %v10737_v43, %v10740_v44  ;;  %v10753_v49 = vld [vmem:[%s10618_s10 + $0x110] sm:$0xff] }
  0x4b   : > { %15291 = vst [vmem:[#allocation22_spill] sm:$0xff] %v10743_v45  ;;  %15292 = vst [vmem:[#allocation23_spill] sm:$0xff] %v10746_v46  ;;  %v380_v48 = vmax.f32 %v10743_v45, %v10746_v46  ;;  %v10756_v50 = vld [vmem:[%s10618_s10 + $0x118] sm:$0xff]  ;;  %v10759_v51 = vld [vmem:[%s10618_s10 + $0x100] sm:$0xff] }
  0x4c   : > { %15293 = vst [vmem:[#allocation24_spill] sm:$0xff] %v10753_v49  ;;  %15294 = vst [vmem:[#allocation25_spill] sm:$0xff] %v10756_v50  ;;  %v10762_v52 = vld [vmem:[%s10618_s10 + $0x108] sm:$0xff]  ;;  %v389_v53 = vmax.f32 %v10753_v49, %v10756_v50  ;;  %v10769_v55 = vld [vmem:[%s10618_s10 + $0x130] sm:$0xff] }
  0x4d   : > { %360 = vmax.xlane.f32.xlu1 %v359_v23  ;;  %15295 = vst [vmem:[#allocation26_spill] sm:$0xff] %v10759_v51  ;;  %15296 = vst [vmem:[#allocation27_spill] sm:$0xff] %v10762_v52  ;;  %v386_v54 = vmax.f32 %v10759_v51, %v10762_v52  ;;  %v10772_v56 = vld [vmem:[%s10618_s10 + $0x138] sm:$0xff]  ;;  %v10775_v57 = vld [vmem:[%s10618_s10 + $0x120] sm:$0xff]  ;;  %v15095_v51 = vlaneseq }
  0x4e   : > { %357 = vmax.xlane.f32.xlu0 %v356_v24  ;;  %15297 = vst [vmem:[#allocation28_spill] sm:$0xff] %v10769_v55  ;;  %15298 = vst [vmem:[#allocation29_spill] sm:$0xff] %v10772_v56  ;;  %v261_v58 = vld [vmem:[%s10618_s10 + $0x128] sm:$0xff]  ;;  %v395_v59 = vmax.f32 %v10769_v55, %v10772_v56  ;;  %v10782_v61 = vld [vmem:[%s10618_s10 + $0x150] sm:$0xff] }
  0x4f   : > { %15299 = vst [vmem:[#allocation30_spill] sm:$0xff] %v10775_v57  ;;  %v392_v60 = vmax.f32 %v10775_v57, %v261_v58  ;;  %15300 = vst [vmem:[#allocation31_spill] sm:$0xff] %v10782_v61  ;;  %v10785_v62 = vld [vmem:[%s10618_s10 + $0x158] sm:$0xff]  ;;  %v264_v63 = vld [vmem:[%s10618_s10 + $0x140] sm:$0xff] }
  0x50   : > { %15301 = vst [vmem:[#allocation32_spill] sm:$0xff] %v10785_v62  ;;  %v265_v0 = vld [vmem:[%s10618_s10 + $0x148] sm:$0xff]  ;;  %v401_v4 = vmax.f32 %v10782_v61, %v10785_v62  ;;  %v10792_v11 = vld [vmem:[%s10618_s10 + $0x170] sm:$0xff]  ;;  %v271_v12 = vld [vmem:[%s10618_s10 + $0x178] sm:$0xff]  ;;  %v10492_v61 = vmov 1966171168  }
  0x51   : > { %366 = vmax.xlane.f32.xlu1 %v365_v29  ;;  %v398_v8 = vmax.f32 %v264_v63, %v265_v0  ;;  %15302 = vst [vmem:[#allocation33_spill] sm:$0xff] %v10792_v11  ;;  %v268_v17 = vld [vmem:[%s10618_s10 + $0x160] sm:$0xff]  ;;  %v269_v18 = vld [vmem:[%s10618_s10 + $0x168] sm:$0xff]  ;;  %v407_v23 = vmax.f32 %v10792_v11, %v271_v12  ;;  %v274_v29 = vld [vmem:[%s10618_s10 + $0x190] sm:$0xff] }
  0x52   : > { %363 = vmax.xlane.f32.xlu0 %v362_v30  ;;  %v404_v24 = vmax.f32 %v268_v17, %v269_v18  ;;  %v275_v30 = vld [vmem:[%s10618_s10 + $0x198] sm:$0xff]  ;;  %v280_v0 = vld [vmem:[%s10618_s10 + $0x1c0] sm:$0xff]  ;;  %v286_v17 = vld [vmem:[%s10618_s10 + $0x1f0] sm:$0xff] }
  0x53   : > { %v283_v63 = vld [vmem:[%s10618_s10 + $0x1d8] sm:$0xff]  ;;  %v332_v52 = vld [vmem:[%s10830_s7 + $0x100] sm:$0xff]  ;;  %v334_v55 = vld [vmem:[%s10830_s7 + $0x110] sm:$0xff] }
  0x54   : > { %v287_v18 = vld [vmem:[%s10618_s10 + $0x1f8] sm:$0xff]  ;;  %v336_v45 = vld [vmem:[%s10830_s7 + $0x120] sm:$0xff] }
  0x55   : > { %372 = vmax.xlane.f32.xlu1 %v371_v35  ;;  %v272_v35 = vld [vmem:[%s10618_s10 + $0x180] sm:$0xff] }
  0x56   : > { %369 = vmax.xlane.f32.xlu0 %v368_v36  ;;  %v273_v36 = vld [vmem:[%s10618_s10 + $0x188] sm:$0xff] }
  0x59   : > { %378 = vmax.xlane.f32.xlu1 %v377_v41  ;;  %v413_v41 = vmax.f32 %v274_v29, %v275_v30  ;;  %v431_v29 = vmax.f32 %v286_v17, %v287_v18 }
  0x5a   : > { %375 = vmax.xlane.f32.xlu0 %v374_v42  ;;  %v410_v42 = vmax.f32 %v272_v35, %v273_v36  ;;  %v290_v35 = vld [vmem:[%s10618_s10 + $0x210] sm:$0xff]  ;;  %v291_v36 = vld [vmem:[%s10618_s10 + $0x218] sm:$0xff] }
  0x5d   : > { %384 = vmax.xlane.f32.xlu1 %v383_v47  ;;  %v278_v47 = vld [vmem:[%s10618_s10 + $0x1b0] sm:$0xff] }
  0x5e   : > { %381 = vmax.xlane.f32.xlu0 %v380_v48  ;;  %v279_v48 = vld [vmem:[%s10618_s10 + $0x1b8] sm:$0xff] }
  0x5f   : > { %v419_v58 = vmax.f32 %v278_v47, %v279_v48  ;;  %v437_v47 = vmax.f32 %v290_v35, %v291_v36  ;;  %v10848_v35 = vld [vmem:[%s10830_s7 + $0x48] sm:$0xff]  ;;  %v10852_v36 = vld [vmem:[%s10830_s7 + $0x20] sm:$0xff] }
  0x60   : > { %15307 = vst [vmem:[#allocation38_spill] sm:$0xff] %v10848_v35  ;;  %15308 = vst [vmem:[#allocation39_spill] sm:$0xff] %v10852_v36  ;;  %vm15234_vm4 = vcmp.ne.s32.totalorder %v10848_v35, 4294967196  ;;  %vm1181_vm5 = vcmp.ne.s32.totalorder %v10852_v36, 4294967196 }
  0x61   : > { %390 = vmax.xlane.f32.xlu1 %v389_v53  ;;  %v276_v53 = vld [vmem:[%s10618_s10 + $0x1a0] sm:$0xff] }
  0x62   : > { %387 = vmax.xlane.f32.xlu0 %v386_v54  ;;  %v277_v54 = vld [vmem:[%s10618_s10 + $0x1a8] sm:$0xff] }
  0x65   : > { %396 = vmax.xlane.f32.xlu1 %v395_v59  ;;  %v416_v59 = vmax.f32 %v276_v53, %v277_v54  ;;  %v294_v53 = vld [vmem:[%s10618_s10 + $0x230] sm:$0xff]  ;;  %v295_v54 = vld [vmem:[%s10618_s10 + $0x238] sm:$0xff] }
  0x66   : > { %393 = vmax.xlane.f32.xlu0 %v392_v60  ;;  %v282_v60 = vld [vmem:[%s10618_s10 + $0x1d0] sm:$0xff] }
  0x69   : > { %402 = vmax.xlane.f32.xlu1 %v401_v4  ;;  %v281_v4 = vld [vmem:[%s10618_s10 + $0x1c8] sm:$0xff] }
  0x6a   : > { %399 = vmax.xlane.f32.xlu0 %v398_v8  ;;  %v425_v8 = vmax.f32 %v282_v60, %v283_v63  ;;  %v422_v12 = vmax.f32 %v280_v0, %v281_v4  ;;  %v443_v60 = vmax.f32 %v294_v53, %v295_v54  ;;  %v298_v0 = vld [vmem:[%s10618_s10 + $0x250] sm:$0xff]  ;;  %v299_v4 = vld [vmem:[%s10618_s10 + $0x258] sm:$0xff] }
  0x6b   : > { %v449_v17 = vmax.f32 %v298_v0, %v299_v4  ;;  %v315_v53 = vld [vmem:[%s10830_s7 + $0x78] sm:$0xff]  ;;  %v321_v0 = vld [vmem:[%s10830_s7 + $0xa8] sm:$0xff]  ;;  %v312_v4 = vld [vmem:[%s10830_s7 + $0x60] sm:$0xff] }
  0x6c   : > { %v307_v54 = vld [vmem:[%s10830_s7 + $0x38] sm:$0xff] }
  0x6d   : > { %408 = vmax.xlane.f32.xlu1 %v407_v23  ;;  %v284_v23 = vld [vmem:[%s10618_s10 + $0x1e0] sm:$0xff] }
  0x6e   : > { %405 = vmax.xlane.f32.xlu0 %v404_v24  ;;  %v285_v24 = vld [vmem:[%s10618_s10 + $0x1e8] sm:$0xff] }
  0x6f   : > { %v428_v30 = vmax.f32 %v284_v23, %v285_v24  ;;  %v10833_v23 = vld [vmem:[%s10830_s7 + $0x8] sm:$0xff]  ;;  %v10837_v24 = vld [vmem:[%s10830_s7 + $0x10] sm:$0xff] }
  0x70   : > { %15303 = vst [vmem:[#allocation34_spill] sm:$0xff] %v10833_v23  ;;  %15304 = vst [vmem:[#allocation35_spill] sm:$0xff] %v10837_v24  ;;  %vm15237_vm0 = vcmp.ne.s32.totalorder %v10833_v23, 4294967196  ;;  %vm1179_vm1 = vcmp.ne.s32.totalorder %v10837_v24, 4294967196 }
  0x71   : > { %414 = vmax.xlane.f32.xlu1 %v413_v41  ;;  %v288_v41 = vld [vmem:[%s10618_s10 + $0x200] sm:$0xff] }
  0x72   : > { %411 = vmax.xlane.f32.xlu0 %v410_v42  ;;  %v289_v42 = vld [vmem:[%s10618_s10 + $0x208] sm:$0xff] }
  0x73   : > { %v434_v48 = vmax.f32 %v288_v41, %v289_v42  ;;  %v10856_v41 = vld [vmem:[%s10830_s7 + $0x58] sm:$0xff]  ;;  %v10860_v42 = vld [vmem:[%s10830_s7 + $0x28] sm:$0xff] }
  0x74   : > { %15309 = vst [vmem:[#allocation40_spill] sm:$0xff] %v10856_v41  ;;  %15310 = vst [vmem:[#allocation41_spill] sm:$0xff] %v10860_v42  ;;  %vm15233_vm6 = vcmp.ne.s32.totalorder %v10856_v41, 4294967196  ;;  %vm15235_vm7 = vcmp.ne.s32.totalorder %v10860_v42, 4294967196 }
  0x75   : > { %420 = vmax.xlane.f32.xlu1 %v419_v58  ;;  %v292_v58 = vld [vmem:[%s10618_s10 + $0x220] sm:$0xff] }
  0x76   : > { %417 = vmax.xlane.f32.xlu0 %v416_v59  ;;  %v293_v59 = vld [vmem:[%s10618_s10 + $0x228] sm:$0xff] }
  0x77   : > { %v440_v63 = vmax.f32 %v292_v58, %v293_v59  ;;  %v317_v58 = vld [vmem:[%s10830_s7 + $0x88] sm:$0xff]  ;;  %v308_v59 = vld [vmem:[%s10830_s7 + $0x40] sm:$0xff] }
  0x79   : > { %426 = vmax.xlane.f32.xlu1 %v425_v8  ;;  %v296_v8 = vld [vmem:[%s10618_s10 + $0x240] sm:$0xff] }
  0x7a   : > { %423 = vmax.xlane.f32.xlu0 %v422_v12  ;;  %v297_v12 = vld [vmem:[%s10618_s10 + $0x248] sm:$0xff] }
  0x7b   : > { %v446_v18 = vmax.f32 %v296_v8, %v297_v12  ;;  %v323_v8 = vld [vmem:[%s10830_s7 + $0xb8] sm:$0xff]  ;;  %v314_v12 = vld [vmem:[%s10830_s7 + $0x70] sm:$0xff] }
  0x7d   : > { %432 = vmax.xlane.f32.xlu1 %v431_v29  ;;  %v10840_v29 = vld [vmem:[%s10830_s7] sm:$0xff] }
  0x7e   : > { %429 = vmax.xlane.f32.xlu0 %v428_v30  ;;  %15305 = vst [vmem:[#allocation36_spill] sm:$0xff] %v10840_v29  ;;  %v10844_v30 = vld [vmem:[%s10830_s7 + $0x18] sm:$0xff]  ;;  %vm1177_vm2 = vcmp.ne.s32.totalorder %v10840_v29, 4294967196 }
  0x7f   : > { %15306 = vst [vmem:[#allocation37_spill] sm:$0xff] %v10844_v30  ;;  %vm15236_vm3 = vcmp.ne.s32.totalorder %v10844_v30, 4294967196 }
  0x81   : > { %438 = vmax.xlane.f32.xlu1 %v437_v47  ;;  %v10864_v47 = vld [vmem:[%s10830_s7 + $0x68] sm:$0xff] }
  0x82   : > { %435 = vmax.xlane.f32.xlu0 %v434_v48  ;;  %15311 = vst [vmem:[#allocation42_spill] sm:$0xff] %v10864_v47  ;;  %v10868_v48 = vld [vmem:[%s10830_s7 + $0x30] sm:$0xff]  ;;  %vm15229_vm8 = vcmp.ne.s32.totalorder %v10864_v47, 4294967196 }
  0x83   : > { %15312 = vst [vmem:[#allocation43_spill] sm:$0xff] %v10868_v48 }
  0x85   : > { %444 = vmax.xlane.f32.xlu1 %v443_v60  ;;  %v319_v60 = vld [vmem:[%s10830_s7 + $0x98] sm:$0xff] }
  0x86   : > { %441 = vmax.xlane.f32.xlu0 %v440_v63  ;;  %v310_v63 = vld [vmem:[%s10830_s7 + $0x50] sm:$0xff] }
  0x89   : > { %450 = vmax.xlane.f32.xlu1 %v449_v17  ;;  %v325_v17 = vld [vmem:[%s10830_s7 + $0xc8] sm:$0xff] }
  0x8a   : > { %447 = vmax.xlane.f32.xlu0 %v446_v18  ;;  %v316_v18 = vld [vmem:[%s10830_s7 + $0x80] sm:$0xff] }
  0x9a   : > { %535 = vperm.xlu1 %10067, %v10833_v23  }
  0x9e   : > { %538 = vperm.xlu1 %10067, %v10837_v24  }
  0xa0   : > { %532 = vperm.xlu0 %10066, %v10840_v29  }
  0xa2   : > { %541 = vperm.xlu1 %10067, %v10844_v30  }
  0xa4   : > { %559 = vperm.xlu0 %10066, %v10848_v35  }
  0xa6   : > { %544 = vperm.xlu1 %10067, %v10852_v36  }
  0xa8   : > { %565 = vperm.xlu0 %10066, %v10856_v41  }
  0xaa   : > { %547 = vperm.xlu1 %10067, %v10860_v42   ;;  %v15382_v42 = vld [vmem:[#allocation16_spill] sm:$0xff] }
  0xac   : > { %571 = vperm.xlu0 %10066, %v10864_v47  }
  0xae   : > { %550 = vperm.xlu1 %10067, %v10868_v48  }
  0xb0   : > { %577 = vperm.xlu0 %10066, %v315_v53   ;;  %v327_v53 = vld [vmem:[%s10830_s7 + $0xd8] sm:$0xff] }
  0xb2   : > { %553 = vperm.xlu1 %10067, %v307_v54   ;;  %v318_v54 = vld [vmem:[%s10830_s7 + $0x90] sm:$0xff] }
  0xb4   : > { %583 = vperm.xlu0 %10066, %v317_v58   ;;  %v329_v58 = vld [vmem:[%s10830_s7 + $0xe8] sm:$0xff] }
  0xb6   : > { %556 = vperm.xlu1 %10067, %v308_v59   ;;  %v320_v59 = vld [vmem:[%s10830_s7 + $0xa0] sm:$0xff] }
  0xb8   : > { %589 = vperm.xlu0 %10066, %v319_v60   ;;  %v331_v60 = vld [vmem:[%s10830_s7 + $0xf8] sm:$0xff] }
  0xba   : > { %562 = vperm.xlu1 %10067, %v310_v63  }
  0xbc   : > { %595 = vperm.xlu0 %10066, %v321_v0   ;;  %v322_v0 = vld [vmem:[%s10830_s7 + $0xb0] sm:$0xff] }
  0xbe   : > { %568 = vperm.xlu1 %10067, %v312_v4  }
  0xc0   : > { %601 = vperm.xlu0 %10066, %v323_v8   ;;  %v333_v8 = vld [vmem:[%s10830_s7 + $0x108] sm:$0xff] }
  0xc2   : > { %574 = vperm.xlu1 %10067, %v314_v12  }
  0xc4   : > { %607 = vperm.xlu0 %10066, %v325_v17   ;;  %v324_v17 = vld [vmem:[%s10830_s7 + $0xc0] sm:$0xff] }
  0xc6   : > { %580 = vperm.xlu1 %10067, %v316_v18  }
  0xc8   : > { %613 = vperm.xlu0 %10066, %v327_v53   ;;  %v335_v53 = vld [vmem:[%s10830_s7 + $0x118] sm:$0xff] }
  0xca   : > { %586 = vperm.xlu1 %10067, %v318_v54  }
  0xcc   : > { %619 = vperm.xlu0 %10066, %v329_v58   ;;  %v326_v58 = vld [vmem:[%s10830_s7 + $0xd0] sm:$0xff] }
  0xce   : > { %592 = vperm.xlu1 %10067, %v320_v59   ;;  %v10889_v63 = vpop.xlane.xlu1 %345 }
  0xcf   : > { %v10892_v4 = vpop.xlane.xlu0 %339 }
  0xd0   : > { %625 = vperm.xlu0 %10066, %v331_v60   ;;  %v337_v60 = vld [vmem:[%s10830_s7 + $0x128] sm:$0xff] }
  0xd2   : > { %598 = vperm.xlu1 %10067, %v322_v0   ;;  %v10895_v12 = vpop.xlane.xlu1 %348  ;;  %v328_v0 = vld [vmem:[%s10830_s7 + $0xe0] sm:$0xff] }
  0xd3   : > { %v10898_v18 = vpop.xlane.xlu0 %342 }
  0xd4   : > { %631 = vperm.xlu0 %10066, %v333_v8  }
  0xd6   : > { %604 = vperm.xlu1 %10067, %v324_v17   ;;  %v10901_v54 = vpop.xlane.xlu1 %354  ;;  %v330_v17 = vld [vmem:[%s10830_s7 + $0xf0] sm:$0xff] }
  0xd7   : > { %v10904_v59 = vpop.xlane.xlu0 %351 }
  0xd8   : > { %637 = vperm.xlu0 %10066, %v335_v53   ;;  %v1407_v53 = vunpack.c.l.s4 %v10492_v61 }
  0xda   : > { %610 = vperm.xlu1 %10067, %v326_v58   ;;  %v10907_v48 = vpop.xlane.xlu1 %360 }
  0xdb   : > { %v10910_v11 = vpop.xlane.xlu0 %357 }
  0xdc   : > { %643 = vperm.xlu0 %10066, %v337_v60   ;;  %v1408_v60 = vunpack.c.0.s8 %v1407_v53 }
  0xde   : > { %616 = vperm.xlu1 %10067, %v328_v0   ;;  %v10912_v8 = vpop.xlane.xlu1 %366  ;;  %v10925_v0 = vshrl.u32 %v15095_v51, 7 }
  0xdf   : > { %v10915_v57 = vpop.xlane.xlu0 %363 }
  0xe0   : > { %15313 = vst [vmem:[#allocation44_spill] sm:$0xff] %v10915_v57  ;;  %15316 = vst [vmem:[#allocation47_spill] sm:$0xff] %v10925_v0  ;;  %v10938_v53 = vsub.s32 %v1408_v60, %v10925_v0 }
  0xe2   : > { %622 = vperm.xlu1 %10067, %v330_v17   ;;  %v10917_v62 = vpop.xlane.xlu1 %372  ;;  %v15119_v17 = vmov 0.0  }
  0xe3   : > { %v10920_v58 = vpop.xlane.xlu0 %369  ;;  %v9885_v61 = vsel %vm15237_vm0, 1.0, %v15119_v17  ;;  %v9886_v51 = vsel %vm1179_vm1, 1.0, %v15119_v17  ;;  %v9884_v24 = vsel %vm1177_vm2, 1.0, %v15119_v17 }
  0xe4   : > { %15314 = vst [vmem:[#allocation45_spill] sm:$0xff] %v10920_v58  ;;  %v5652_v49 = vcombine.high %v9885_v61, %v9885_v61  ;;  %v5659_v40 = vrot.slane %v9885_v61, %v10938_v53  ;;  %v5701_v23 = vcombine.high %v9886_v51, %v9886_v51  ;;  %v5708_v39 = vrot.slane %v9886_v51, %v10938_v53 }
  0xe6   : > { %628 = vperm.xlu1 %10067, %v332_v52   ;;  %v10922_v56 = vpop.xlane.xlu1 %378  ;;  %v5666_v0 = vrot.slane %v5652_v49, %v10938_v53  ;;  %v5716_v61 = vcombine.high %v5708_v39, %v5708_v39  ;;  %v5675_v29 = vrot.slane %v5659_v40, %v10938_v53 }
  0xe7   : > { %15315 = vst [vmem:[#allocation46_spill] sm:$0xff] %v10922_v56  ;;  %v10928_v46 = vpop.xlane.xlu0 %375  ;;  %v15326_v56 = vmov 0.0  }
  0xe8   : > { %15317 = vst [vmem:[#allocation48_spill] sm:$0xff] %v10928_v46  ;;  %v5715_v46 = vrot.slane %v5701_v23, %v10938_v53  ;;  %v5668_v49 = vcombine.high %v5666_v0, %v5666_v0  ;;  %v5610_v23 = vrot.slane %v9884_v24, %v10938_v53  ;;  %v5738_v30 = vrot.slane %v5716_v61, %v10938_v53 }
  0xea   : > { %634 = vperm.xlu1 %10067, %v334_v55   ;;  %v10935_v52 = vpop.xlane.xlu1 %384  ;;  %v5717_v43 = vcombine.high %v5715_v46, %v5715_v46  ;;  %v5731_v61 = vrot.slane %v5715_v46, %v10938_v53  ;;  %v5618_v38 = vcombine.high %v5610_v23, %v5610_v23 }
  0xeb   : > { %15318 = vst [vmem:[#allocation49_spill] sm:$0xff] %v10935_v52  ;;  %v10944_v50 = vpop.xlane.xlu0 %381  ;;  %v5724_v52 = vrot.slane %v5708_v39, %v10938_v53 }
  0xec   : > { %15319 = vst [vmem:[#allocation50_spill] sm:$0xff] %v10944_v50  ;;  %v5667_v50 = vcombine.high %v5659_v40, %v5659_v40 }
  0xed   : > { %v7563_v37 = vcombine.low %v5724_v52, %v5738_v30 }
  0xee   : > { %640 = vperm.xlu1 %10067, %v336_v45   ;;  %v10948_v55 = vpop.xlane.xlu1 %390  ;;  %v5603_v45 = vcombine.high %v9884_v24, %v9884_v24  ;;  %v5689_v44 = vrot.slane %v5667_v50, %v10938_v53  ;;  %v5682_v50 = vrot.slane %v5666_v0, %v10938_v53  ;;  %v5696_v24 = vrot.slane %v5668_v49, %v10938_v53  ;;  %v15381_v41 = vld [vmem:[#allocation46_spill] sm:$0xff] }
  0xef   : > { %15320 = vst [vmem:[#allocation51_spill] sm:$0xff] %v10948_v55  ;;  %v10951_v60 = vpop.xlane.xlu0 %387  ;;  %v9887_v55 = vsel %vm15236_vm3, 1.0, %v15119_v17  ;;  %v9926_v49 = vcombine.high %v5724_v52, %v5738_v30  ;;  %v5640_v30 = vrot.slane %v5618_v38, %v10938_v53 }
  0xf0   : > { %15321 = vst [vmem:[#allocation52_spill] sm:$0xff] %v10951_v60  ;;  %v5750_v34 = vcombine.high %v9887_v55, %v9887_v55  ;;  %v5617_v33 = vrot.slane %v5603_v45, %v10938_v53  ;;  %v7514_v58 = vcombine.low %v5675_v29, %v5689_v44  ;;  %v9924_v39 = vcombine.high %v5675_v29, %v5689_v44 }
  0xf1   : > { %v7516_v46 = vcombine.low %v5682_v50, %v5696_v24  ;;  %v9925_v27 = vcombine.high %v5682_v50, %v5696_v24  ;;  %v11008_v50 = vrot.slane %v7563_v37, %v10938_v53  ;;  %v11015_v38 = vrot.slane %v9926_v49, %v10938_v53 }
  0xf2   : > { %v10959_v51 = vpop.xlane.xlu1 %396  ;;  %v5764_v45 = vrot.slane %v5750_v34, %v10938_v53  ;;  %v5619_v28 = vcombine.high %v5617_v33, %v5617_v33  ;;  %v10998_v34 = vrot.slane %v7514_v58, %v10938_v53  ;;  %v11001_v36 = vrot.slane %v9924_v39, %v10938_v53 }
  0xf3   : > { %15322 = vst [vmem:[#allocation53_spill] sm:$0xff] %v10959_v51  ;;  %v10964_v60 = vpop.xlane.xlu0 %393  ;;  %v9893_v51 = vsel %vm15234_vm4, 1.0, %v15119_v17  ;;  %v5757_v17 = vrot.slane %v9887_v55, %v10938_v53  ;;  %v5626_v55 = vrot.slane %v5610_v23, %v10938_v53  ;;  %15331 = vst [vmem:[#allocation61_spill] sm:$0xff] %v11008_v50  ;;  %v11023_v37 = vrot.slane %v9925_v27, %v10938_v53 }
  0xf4   : > { %15323 = vst [vmem:[#allocation54_spill] sm:$0xff] %v10964_v60  ;;  %v6044_v35 = vcombine.high %v9893_v51, %v9893_v51  ;;  %v6051_v44 = vrot.slane %v9893_v51, %v10938_v53  ;;  %15329 = vst [vmem:[#allocation59_spill] sm:$0xff] %v10998_v34  ;;  %v5766_v32 = vcombine.high %v5764_v45, %v5764_v45 }
  0xf5   : > { %15330 = vst [vmem:[#allocation60_spill] sm:$0xff] %v11001_v36  ;;  %v5647_v58 = vrot.slane %v5619_v28, %v10938_v53  ;;  %15333 = vst [vmem:[#allocation63_spill] sm:$0xff] %v11015_v38  ;;  %v11020_v34 = vrot.slane %v7516_v46, %v10938_v53  ;;  %v5780_v49 = vrot.slane %v5764_v45, %v10938_v53 }
  0xf6   : > { %v10975_v60 = vpop.xlane.xlu1 %402  ;;  %v6058_v57 = vrot.slane %v6044_v35, %v10938_v53  ;;  %v5633_v35 = vrot.slane %v5617_v33, %v10938_v53  ;;  %v6059_v24 = vcombine.high %v6051_v44, %v6051_v44  ;;  %15335 = vst [vmem:[#allocation65_spill] sm:$0xff] %v11023_v37  ;;  %v7465_v33 = vcombine.low %v5626_v55, %v5640_v30 }
  0xf7   : > { %15324 = vst [vmem:[#allocation55_spill] sm:$0xff] %v10975_v60  ;;  %v10979_v40 = vpop.xlane.xlu0 %399  ;;  %v5745_v60 = vrot.slane %v5717_v43, %v10938_v53  ;;  %v5765_v43 = vcombine.high %v5757_v17, %v5757_v17  ;;  %15334 = vst [vmem:[#allocation64_spill] sm:$0xff] %v11020_v34  ;;  %v5794_v38 = vrot.slane %v5766_v32, %v10938_v53 }
  0xf8   : > { %15325 = vst [vmem:[#allocation56_spill] sm:$0xff] %v10979_v40  ;;  %v9888_v40 = vsel %vm1181_vm5, 1.0, %v15326_v56  ;;  %v6067_v46 = vrot.slane %v6051_v44, %v10938_v53  ;;  %v6081_v27 = vrot.slane %v6059_v24, %v10938_v53  ;;  %v9923_v37 = vcombine.high %v5633_v35, %v5647_v58 }
  0xf9   : > { %v5799_v52 = vcombine.high %v9888_v40, %v9888_v40  ;;  %v9927_v23 = vcombine.high %v5731_v61, %v5745_v60  ;;  %v5806_v51 = vrot.slane %v9888_v40, %v10938_v53  ;;  %v6060_v40 = vcombine.high %v6058_v57, %v6058_v57 }
  0xfa   : > { %v10990_v0 = vpop.xlane.xlu1 %408  ;;  %v11043_v32 = vrot.slane %v7465_v33, %v10938_v53  ;;  %v9929_v44 = vcombine.high %v5780_v49, %v5794_v38 }
  0xfb   : > { %15327 = vst [vmem:[#allocation57_spill] sm:$0xff] %v10990_v0  ;;  %v10994_v29 = vpop.xlane.xlu0 %405  ;;  %v7565_v0 = vcombine.low %v5731_v61, %v5745_v60  ;;  %v5773_v60 = vrot.slane %v5757_v17, %v10938_v53  ;;  %v5787_v61 = vrot.slane %v5765_v43, %v10938_v53  ;;  %v5813_v28 = vrot.slane %v5799_v52, %v10938_v53 }
  0xfc   : > { %15328 = vst [vmem:[#allocation58_spill] sm:$0xff] %v10994_v29  ;;  %v5814_v17 = vcombine.high %v5806_v51, %v5806_v51  ;;  %v9922_v43 = vcombine.high %v5626_v55, %v5640_v30  ;;  %v11040_v45 = vrot.slane %v9927_v23, %v10938_v53  ;;  %15340 = vst [vmem:[#allocation70_spill] sm:$0xff] %v11043_v32  ;;  %v15377_v32 = vld [vmem:[#allocation11_spill] sm:$0xff] }
  0xfd   : > { %v11027_v50 = vrot.slane %v7565_v0, %v10938_v53  ;;  %v7612_v52 = vcombine.low %v5773_v60, %v5787_v61  ;;  %v6074_v0 = vrot.slane %v6058_v57, %v10938_v53  ;;  %v9928_v55 = vcombine.high %v5773_v60, %v5787_v61 }
  0xfe   : > { %v11005_v29 = vpop.xlane.xlu1 %414  ;;  %15339 = vst [vmem:[#allocation69_spill] sm:$0xff] %v11040_v45  ;;  %v5815_v30 = vcombine.high %v5813_v28, %v5813_v28  ;;  %v5822_v24 = vrot.slane %v5806_v51, %v10938_v53  ;;  %v11050_v57 = vrot.slane %v9922_v43, %v10938_v53  ;;  %v7906_v23 = vcombine.low %v6067_v46, %v6081_v27 }
  0xff   : > { %v11012_v39 = vpop.xlane.xlu0 %411  ;;  %15336 = vst [vmem:[#allocation66_spill] sm:$0xff] %v11027_v50  ;;  %v6088_v50 = vrot.slane %v6060_v40, %v10938_v53  ;;  %v9940_v40 = vcombine.high %v6067_v46, %v6081_v27  ;;  %v11058_v60 = vrot.slane %v9923_v37, %v10938_v53  ;;  %v11070_v43 = vrot.slane %v9928_v55, %v10938_v53 }
 0x100   : > { %15332 = vst [vmem:[#allocation62_spill] sm:$0xff] %v11012_v39  ;;  %v7467_v39 = vcombine.low %v5633_v35, %v5647_v58  ;;  %15341 = vst [vmem:[#allocation71_spill] sm:$0xff] %v11050_v57  ;;  %v11076_v46 = vrot.slane %v9929_v44, %v10938_v53  ;;  %v11088_v55 = vsub.f32 %v10625_v1, %v10889_v63 }
 0x101   : > { %15343 = vst [vmem:[#allocation73_spill] sm:$0xff] %v11058_v60  ;;  %v7908_v51 = vcombine.low %v6074_v0, %v6088_v50  ;;  %v9941_v61 = vcombine.high %v6074_v0, %v6088_v50  ;;  %15345 = vst [vmem:[#allocation75_spill] sm:$0xff] %v11070_v43  ;;  %v11081_v50 = vrot.slane %v7906_v23, %v10938_v53  ;;  %v15376_v60 = vld [vmem:[#allocation44_spill] sm:$0xff] }
 0x102   : > { %v11031_v36 = vpop.xlane.xlu1 %420  ;;  %v11053_v58 = vrot.slane %v7467_v39, %v10938_v53  ;;  %v9895_v39 = vsel %vm15233_vm6, 1.0, %v15326_v56  ;;  %15347 = vst [vmem:[#allocation77_spill] sm:$0xff] %v11076_v46  ;;  %v11098_v23 = vsub.f32 %v10628_v2, %v10889_v63  ;;  %v11106_v1 = vsub.f32 %v10639_v6, %v10895_v12 }
 0x103   : > { %15337 = vst [vmem:[#allocation67_spill] sm:$0xff] %v11031_v36  ;;  %v11035_v34 = vpop.xlane.xlu0 %417  ;;  %v7614_v36 = vcombine.low %v5780_v49, %v5794_v38  ;;  %v11061_v38 = vrot.slane %v7612_v52, %v10938_v53  ;;  %v5829_v49 = vrot.slane %v5813_v28, %v10938_v53  ;;  %15348 = vst [vmem:[#allocation78_spill] sm:$0xff] %v11081_v50  ;;  %v9889_v6 = vsel %vm15235_vm7, 1.0, %v15326_v56 }
 0x104   : > { %15338 = vst [vmem:[#allocation68_spill] sm:$0xff] %v11035_v34  ;;  %v5836_v34 = vrot.slane %v5814_v17, %v10938_v53  ;;  %15342 = vst [vmem:[#allocation72_spill] sm:$0xff] %v11053_v58  ;;  %v5843_v17 = vrot.slane %v5815_v30, %v10938_v53  ;;  %v11084_v28 = vrot.slane %v9940_v40, %v10938_v53 }
 0x105   : > { %15344 = vst [vmem:[#allocation74_spill] sm:$0xff] %v11061_v38  ;;  %v11073_v37 = vrot.slane %v7614_v36, %v10938_v53  ;;  %v11093_v36 = vrot.slane %v7908_v51, %v10938_v53  ;;  %v6142_v44 = vcombine.high %v9895_v39, %v9895_v39  ;;  %v6149_v45 = vrot.slane %v9895_v39, %v10938_v53 }
 0x106   : > { %v11047_v35 = vpop.xlane.xlu1 %426  ;;  %v7661_v27 = vcombine.low %v5822_v24, %v5836_v34  ;;  %15349 = vst [vmem:[#allocation79_spill] sm:$0xff] %v11084_v28  ;;  %v9930_v0 = vcombine.high %v5822_v24, %v5836_v34  ;;  %v11101_v40 = vrot.slane %v9941_v61, %v10938_v53  ;;  %v7663_v34 = vcombine.low %v5829_v49, %v5843_v17 }
 0x107   : > { %v11055_v33 = vpop.xlane.xlu0 %423  ;;  %15346 = vst [vmem:[#allocation76_spill] sm:$0xff] %v11073_v37  ;;  %15350 = vst [vmem:[#allocation80_spill] sm:$0xff] %v11093_v36  ;;  %v9931_v24 = vcombine.high %v5829_v49, %v5843_v17  ;;  %v11114_v2 = vsub.f32 %v10642_v7, %v10895_v12  ;;  %v729_v49 = vmul.f32 1.442695, %v11088_v55  ;;  %v11127_v17 = vsub.f32 %v10631_v3, %v10892_v4 }
 0x108   : > { %15351 = vst [vmem:[#allocation81_spill] sm:$0xff] %v11101_v40  ;;  %15352 = vst [vmem:[#allocation82_spill] sm:$0xff] %v11106_v1  ;;  %v11109_v51 = vrot.slane %v7661_v27, %v10938_v53  ;;  %v11119_v61 = vrot.slane %v9930_v0, %v10938_v53  ;;  %v6156_v7 = vrot.slane %v6142_v44, %v10938_v53  ;;  %v731_v27 = vmul.f32 1.442695, %v11098_v23 }
 0x109   : > { %15354 = vst [vmem:[#allocation84_spill] sm:$0xff] %v11114_v2  ;;  %15356 = vst [vmem:[#allocation86_spill] sm:$0xff] %v11127_v17  ;;  %v6157_v12 = vcombine.high %v6149_v45, %v6149_v45  ;;  %v11135_v0 = vsub.f32 %v10636_v5, %v10892_v4  ;;  %v11138_v36 = vrot.slane %v7663_v34, %v10938_v53  ;;  %v733_v3 = vmul.f32 1.442695, %v11106_v1  ;;  %v15394_v1 = vld [vmem:[#allocation20_spill] sm:$0xff] }
 0x10a   : > { %v11078_v52 = vpop.xlane.xlu1 %432  ;;  %15353 = vst [vmem:[#allocation83_spill] sm:$0xff] %v11109_v51  ;;  %15355 = vst [vmem:[#allocation85_spill] sm:$0xff] %v11119_v61  ;;  %v11141_v40 = vrot.slane %v6149_v45, %v10938_v53  ;;  %v11146_v50 = vsub.f32 %v10657_v13, %v10901_v54  ;;  %v11149_v44 = vrot.slane %v9931_v24, %v10938_v53  ;;  %v735_v51 = vmul.f32 1.442695, %v11114_v2 }
 0x10b   : > { %v11090_v30 = vpop.xlane.xlu0 %429  ;;  %15357 = vst [vmem:[#allocation87_spill] sm:$0xff] %v11135_v0  ;;  %15358 = vst [vmem:[#allocation88_spill] sm:$0xff] %v11138_v36  ;;  %v5848_v28 = vcombine.high %v9889_v6, %v9889_v6  ;;  %v11154_v5 = vsub.f32 %v10660_v14, %v10901_v54  ;;  %v11159_v45 = vrot.slane %v9889_v6, %v10938_v53  ;;  %10068 = vpow2.f32 %v729_v49 }
 0x10c   : > { %15359 = vst [vmem:[#allocation89_spill] sm:$0xff] %v11146_v50  ;;  %15360 = vst [vmem:[#allocation90_spill] sm:$0xff] %v11149_v44  ;;  %v721_v34 = vmul.f32 1.442695, %v11127_v17  ;;  %v11164_v13 = vsub.f32 %v10647_v9, %v10898_v18  ;;  %v6158_v36 = vcombine.high %v6156_v7, %v6156_v7  ;;  %10070 = vpow2.f32 %v731_v27 }
 0x10d   : > { %15361 = vst [vmem:[#allocation91_spill] sm:$0xff] %v11154_v5  ;;  %v723_v44 = vmul.f32 1.442695, %v11135_v0  ;;  %v11171_v14 = vsub.f32 %v10650_v10, %v10898_v18  ;;  %v11174_v54 = vrot.slane %v6156_v7, %v10938_v53  ;;  %10072 = vpow2.f32 %v733_v3 }
 0x10e   : > { %v11116_v63 = vpop.xlane.xlu1 %438  ;;  %15362 = vst [vmem:[#allocation92_spill] sm:$0xff] %v11164_v13  ;;  %v741_v6 = vmul.f32 1.442695, %v11146_v50  ;;  %v11179_v9 = vsub.f32 %v10673_v19, %v10907_v48  ;;  %v11182_v49 = vrot.slane %v6157_v12, %v10938_v53  ;;  %10074 = vpow2.f32 %v735_v51 }
 0x10f   : > { %v11129_v39 = vpop.xlane.xlu0 %435  ;;  %15363 = vst [vmem:[#allocation93_spill] sm:$0xff] %v11171_v14  ;;  %v743_v27 = vmul.f32 1.442695, %v11154_v5  ;;  %v11187_v10 = vsub.f32 %v10676_v20, %v10907_v48  ;;  %v9897_v7 = vsel %vm15229_vm8, 1.0, %v15326_v56  ;;  %10076 = vpow2.f32 %v721_v34 }
 0x110   : > { %15364 = vst [vmem:[#allocation94_spill] sm:$0xff] %v11179_v9  ;;  %v725_v19 = vmul.f32 1.442695, %v11164_v13  ;;  %v11197_v12 = vsub.f32 %v10663_v15, %v10904_v59  ;;  %v11200_v51 = vrot.slane %v5848_v28, %v10938_v53  ;;  %10078 = vpow2.f32 %v723_v44 }
 0x111   : > { %15365 = vst [vmem:[#allocation95_spill] sm:$0xff] %v11187_v10  ;;  %v727_v20 = vmul.f32 1.442695, %v11171_v14  ;;  %v11205_v48 = vsub.f32 %v10666_v16, %v10904_v59  ;;  %v5863_v3 = vcombine.high %v11159_v45, %v11159_v45  ;;  %10080 = vpow2.f32 %v741_v6 }
 0x112   : > { %v11156_v4 = vpop.xlane.xlu1 %444  ;;  %15366 = vst [vmem:[#allocation96_spill] sm:$0xff] %v11197_v12  ;;  %v749_v34 = vmul.f32 1.442695, %v11179_v9  ;;  %v11212_v15 = vsub.f32 %v10689_v25, %v10912_v8  ;;  %v11218_v28 = vrot.slane %v11159_v45, %v10938_v53  ;;  %10082 = vpow2.f32 %v743_v27  ;;  %v15387_v9 = vld [vmem:[#allocation45_spill] sm:$0xff] }
 0x113   : > { %v11166_v24 = vpop.xlane.xlu0 %441  ;;  %15367 = vst [vmem:[#allocation97_spill] sm:$0xff] %v11205_v48  ;;  %v751_v16 = vmul.f32 1.442695, %v11187_v10  ;;  %v11223_v59 = vsub.f32 %v10692_v26, %v10912_v8  ;;  %v6240_v6 = vcombine.high %v9897_v7, %v9897_v7  ;;  %10084 = vpow2.f32 %v725_v19 }
 0x114   : > { %15368 = vst [vmem:[#allocation98_spill] sm:$0xff] %v11212_v15  ;;  %v737_v25 = vmul.f32 1.442695, %v11197_v12  ;;  %v11230_v37 = vsub.f32 %v10679_v21, %v10910_v11  ;;  %v11233_v45 = vrot.slane %v6158_v36, %v10938_v53  ;;  %10086 = vpow2.f32 %v727_v20  ;;  %v15439_v12 = vld [vmem:[#allocation30_spill] sm:$0xff] }
 0x115   : > { %15369 = vst [vmem:[#allocation99_spill] sm:$0xff] %v11223_v59  ;;  %v739_v27 = vmul.f32 1.442695, %v11205_v48  ;;  %v11238_v26 = vsub.f32 %v10682_v22, %v10910_v11  ;;  %v11240_v8 = vpop.eup %10068  ;;  %v8004_v19 = vcombine.low %v11141_v40, %v11182_v49  ;;  %10088 = vpow2.f32 %v749_v34  ;;  %v15374_v11 = vld [vmem:[#allocation13_spill] sm:$0xff] }
 0x116   : > { %v11189_v18 = vpop.xlane.xlu1 %450  ;;  %15371 = vst [vmem:[#allocation101_spill] sm:$0xff] %v11230_v37  ;;  %v757_v46 = vmul.f32 1.442695, %v11212_v15  ;;  %v11247_v21 = vsub.f32 %v10705_v31, %v10917_v62  ;;  %v11249_v36 = vpop.eup %10070  ;;  %v9944_v20 = vcombine.high %v11141_v40, %v11182_v49  ;;  %10090 = vpow2.f32 %v751_v16 }
 0x117   : > { %v11214_v61 = vpop.xlane.xlu0 %447  ;;  %15372 = vst [vmem:[#allocation102_spill] sm:$0xff] %v11238_v26  ;;  %v759_v22 = vmul.f32 1.442695, %v11223_v59  ;;  %v11256_v38 = vsub.f32 %v15374_v11, %v10917_v62  ;;  %v11260_v34 = vpop.eup %10072  ;;  %v11263_v58 = vrot.slane %v9897_v7, %v10938_v53  ;;  %10092 = vpow2.f32 %v737_v25  ;;  %v15379_v7 = vld [vmem:[#allocation12_spill] sm:$0xff] }
 0x118   : > { %15373 = vst [vmem:[#allocation103_spill] sm:$0xff] %v11247_v21  ;;  %v745_v31 = vmul.f32 1.442695, %v11230_v37  ;;  %v11268_v40 = vsub.f32 %v15377_v32, %v15376_v60  ;;  %v11272_v16 = vpop.eup %10074  ;;  %v5864_v62 = vcombine.high %v11200_v51, %v11200_v51  ;;  %10094 = vpow2.f32 %v739_v27 }
 0x119   : > { %15375 = vst [vmem:[#allocation13_spill] sm:$0xff] %v11256_v38  ;;  %v747_v11 = vmul.f32 1.442695, %v11238_v26  ;;  %v11279_v57 = vsub.f32 %v15379_v7, %v15376_v60  ;;  %v11281_v25 = vpop.eup %10076  ;;  %v11285_v32 = vrot.slane %v11200_v51, %v10938_v53  ;;  %10096 = vpow2.f32 %v757_v46  ;;  %v15384_v7 = vld [vmem:[#allocation17_spill] sm:$0xff] }
 0x11a   : > { %v11225_v44 = vpop.permute.xlu1 %535  ;;  %15378 = vst [vmem:[#allocation44_spill] sm:$0xff] %v11268_v40  ;;  %v765_v47 = vmul.f32 1.442695, %v11247_v21  ;;  %v11290_v59 = vsub.f32 %v15382_v42, %v15381_v41  ;;  %v11292_v27 = vpop.eup %10078  ;;  %v11295_v15 = vrot.slane %v5863_v3, %v10938_v53  ;;  %10098 = vpow2.f32 %v759_v22  ;;  %v15388_v3 = vld [vmem:[#allocation14_spill] sm:$0xff] }
 0x11b   : > { %15370 = vst [vmem:[#allocation100_spill] sm:$0xff] %v11225_v44  ;;  %15380 = vst [vmem:[#allocation11_spill] sm:$0xff] %v11279_v57  ;;  %v767_v60 = vmul.f32 1.442695, %v11256_v38  ;;  %v11300_v10 = vsub.f32 %v15384_v7, %v15381_v41  ;;  %v11304_v46 = vpop.eup %10080  ;;  %v11307_v21 = vrot.slane %v6240_v6, %v10938_v53  ;;  %10100 = vpow2.f32 %v745_v31  ;;  %v15391_v6 = vld [vmem:[#allocation15_spill] sm:$0xff] }
 0x11c   : > { %15383 = vst [vmem:[#allocation12_spill] sm:$0xff] %v11290_v59  ;;  %v753_v42 = vmul.f32 1.442695, %v11268_v40  ;;  %v11312_v5 = vsub.f32 %v15388_v3, %v15387_v9  ;;  %v11316_v38 = vpop.eup %10082  ;;  %v8006_v41 = vcombine.low %v11174_v54, %v11233_v45  ;;  %10102 = vpow2.f32 %v747_v11 }
 0x11d   : > { %15385 = vst [vmem:[#allocation46_spill] sm:$0xff] %v11300_v10  ;;  %v755_v7 = vmul.f32 1.442695, %v11279_v57  ;;  %v11323_v50 = vsub.f32 %v15391_v6, %v15387_v9  ;;  %v10085_v31 = vpop.eup %10084  ;;  %v9945_v2 = vcombine.high %v11174_v54, %v11233_v45  ;;  %10104 = vpow2.f32 %v765_v47  ;;  %v15397_v9 = vld [vmem:[#allocation21_spill] sm:$0xff]  ;;  %v15400_v45 = vld [vmem:[#allocation48_spill] sm:$0xff] }
 0x11e   : > { %v11258_v43 = vpop.permute.xlu1 %538  ;;  %15389 = vst [vmem:[#allocation17_spill] sm:$0xff] %v11312_v5  ;;  %v773_v3 = vmul.f32 1.442695, %v11290_v59  ;;  %v10087_v14 = vpop.eup %10086  ;;  %v11333_v11 = vrot.slane %v8004_v19, %v10938_v53  ;;  %10106 = vpow2.f32 %v767_v60  ;;  %v775_v13 = vmul.f32 1.442695, %v11300_v10  ;;  %v15401_v19 = vld [vmem:[#allocation18_spill] sm:$0xff] }
 0x11f   : > { %v11270_v49 = vpop.permute.xlu0 %532  ;;  %15392 = vst [vmem:[#allocation14_spill] sm:$0xff] %v11323_v50  ;;  %v11342_v47 = vpop.eup %10088  ;;  %v11345_v54 = vrot.slane %v9944_v20, %v10938_v53  ;;  %10108 = vpow2.f32 %v753_v42  ;;  %v15404_v20 = vld [vmem:[#allocation19_spill] sm:$0xff]  ;;  %v876_v37 = vadd.f32 %v10087_v14, %v10085_v31  ;;  %v15419_v31 = vld [vmem:[#allocation53_spill] sm:$0xff] }
 0x120   : > { %v11354_v10 = vpop.eup %10090  ;;  %10110 = vpow2.f32 %v755_v7 }
 0x121   : > { %15399 = vst [vmem:[#allocation21_spill] sm:$0xff] %v11345_v54  ;;  %v11362_v54 = vsub.f32 %v15404_v20, %v15400_v45  ;;  %v10093_v42 = vpop.eup %10092  ;;  %10112 = vpow2.f32 %v773_v3  ;;  %877 = vadd.xlane.f32.xlu0 %v876_v37  ;;  %v15427_v37 = vld [vmem:[#allocation26_spill] sm:$0xff] }
 0x122   : > { %v11302_v51 = vpop.permute.xlu1 %541  ;;  %10114 = vpow2.f32 %v775_v13 }
 0x123   : > { %15386 = vst [vmem:[#allocation16_spill] sm:$0xff] %v11302_v51  ;;  %v11314_v22 = vpop.permute.xlu0 %559  ;;  %15405 = vst [vmem:[#allocation19_spill] sm:$0xff] %v11362_v54 }
 0x124   : > { %15390 = vst [vmem:[#allocation45_spill] sm:$0xff] %v11314_v22  ;;  %v15393_v22 = vld [vmem:[#allocation49_spill] sm:$0xff] }
 0x125   : > { %v11330_v51 = vsub.f32 %v15394_v1, %v15393_v22  ;;  %15396 = vst [vmem:[#allocation49_spill] sm:$0xff] %v11333_v11  ;;  %v11338_v6 = vsub.f32 %v15397_v9, %v15393_v22  ;;  %v761_v1 = vmul.f32 1.442695, %v11312_v5  ;;  %v11350_v11 = vsub.f32 %v15401_v19, %v15400_v45  ;;  %v15407_v5 = vld [vmem:[#allocation24_spill] sm:$0xff]  ;;  %v15409_v45 = vld [vmem:[#allocation25_spill] sm:$0xff] }
 0x126   : > { %v11340_v57 = vpop.permute.xlu1 %544  ;;  %v11357_v22 = vrot.slane %v5864_v62, %v10938_v53  ;;  %v763_v9 = vmul.f32 1.442695, %v11323_v50  ;;  %v10095_v62 = vpop.eup %10094 }
 0x127   : > { %15395 = vst [vmem:[#allocation15_spill] sm:$0xff] %v11330_v51  ;;  %15398 = vst [vmem:[#allocation20_spill] sm:$0xff] %v11338_v6  ;;  %v11352_v60 = vpop.permute.xlu0 %565  ;;  %v781_v19 = vmul.f32 1.442695, %v11330_v51  ;;  %v783_v50 = vmul.f32 1.442695, %v11338_v6  ;;  %v11380_v3 = vpop.eup %10096  ;;  %10116 = vpow2.f32 %v761_v1  ;;  %v885_v17 = vadd.f32 %v10095_v62, %v10093_v42 }
 0x128   : > { %15402 = vst [vmem:[#allocation48_spill] sm:$0xff] %v11350_v11  ;;  %15403 = vst [vmem:[#allocation18_spill] sm:$0xff] %v11352_v60  ;;  %v15406_v60 = vld [vmem:[#allocation51_spill] sm:$0xff]  ;;  %v769_v59 = vmul.f32 1.442695, %v11350_v11  ;;  %v15413_v51 = vld [vmem:[#allocation22_spill] sm:$0xff]  ;;  %v11389_v13 = vpop.eup %10098  ;;  %10118 = vpow2.f32 %v763_v9 }
 0x129   : > { %v11369_v40 = vsub.f32 %v15407_v5, %v15406_v60  ;;  %v11376_v20 = vsub.f32 %v15409_v45, %v15406_v60  ;;  %v15412_v5 = vld [vmem:[#allocation50_spill] sm:$0xff]  ;;  %v771_v45 = vmul.f32 1.442695, %v11362_v54  ;;  %v15416_v6 = vld [vmem:[#allocation23_spill] sm:$0xff]  ;;  %v11398_v11 = vpop.eup %10100  ;;  %10120 = vpow2.f32 %v781_v19 }
 0x12a   : > { %v11378_v44 = vpop.permute.xlu1 %547  ;;  %v11385_v26 = vsub.f32 %v15413_v51, %v15412_v5  ;;  %v11396_v1 = vsub.f32 %v15416_v6, %v15412_v5  ;;  %v11401_v51 = vrot.slane %v8006_v41, %v10938_v53  ;;  %v10103_v9 = vpop.eup %10102  ;;  %v11409_v60 = vrot.slane %v9945_v2, %v10938_v53  ;;  %v15423_v5 = vld [vmem:[#allocation29_spill] sm:$0xff] }
 0x12b   : > { %15408 = vst [vmem:[#allocation51_spill] sm:$0xff] %v11369_v40  ;;  %15410 = vst [vmem:[#allocation24_spill] sm:$0xff] %v11376_v20  ;;  %v11387_v7 = vpop.permute.xlu0 %571  ;;  %v789_v14 = vmul.f32 1.442695, %v11369_v40  ;;  %10122 = vpow2.f32 %v783_v50  ;;  %v791_v6 = vmul.f32 1.442695, %v11376_v20  ;;  %v11414_v54 = vsub.f32 %v15423_v5, %v15419_v31  ;;  %v11418_v19 = vpop.eup %10104 }
 0x12c   : > { %15411 = vst [vmem:[#allocation25_spill] sm:$0xff] %v11378_v44  ;;  %15414 = vst [vmem:[#allocation50_spill] sm:$0xff] %v11385_v26  ;;  %10124 = vpow2.f32 %v769_v59  ;;  %v879_v50 = vadd.f32 %v11249_v36, %v11240_v8  ;;  %v779_v5 = vmul.f32 1.442695, %v11396_v1  ;;  %v15430_v59 = vld [vmem:[#allocation27_spill] sm:$0xff] }
 0x12d   : > { %15415 = vst [vmem:[#allocation22_spill] sm:$0xff] %v11387_v7  ;;  %15417 = vst [vmem:[#allocation23_spill] sm:$0xff] %v11396_v1  ;;  %v15420_v7 = vld [vmem:[#allocation28_spill] sm:$0xff]  ;;  %10126 = vpow2.f32 %v771_v45  ;;  %v15432_v36 = vld [vmem:[#allocation55_spill] sm:$0xff] }
 0x12e   : > { %15418 = vst [vmem:[#allocation104_spill] sm:$0xff] %v11401_v51  ;;  %v11406_v44 = vsub.f32 %v15420_v7, %v15419_v31  ;;  %15422 = vst [vmem:[#allocation28_spill] sm:$0xff] %v11409_v60  ;;  %v11416_v41 = vpop.permute.xlu1 %550  ;;  %v777_v7 = vmul.f32 1.442695, %v11385_v26  ;;  %v15426_v51 = vld [vmem:[#allocation52_spill] sm:$0xff]  ;;  %v11429_v60 = vpop.eup %10106  ;;  %v6256_v31 = vcombine.high %v11307_v21, %v11307_v21  ;;  %10128 = vpow2.f32 %v789_v14  ;;  %880 = vadd.xlane.f32.xlu0 %v879_v50 }
 0x12f   : > { %15424 = vst [vmem:[#allocation29_spill] sm:$0xff] %v11414_v54  ;;  %15425 = vst [vmem:[#allocation105_spill] sm:$0xff] %v11416_v41  ;;  %v11423_v40 = vsub.f32 %v15427_v37, %v15426_v51  ;;  %v11427_v2 = vpop.permute.xlu0 %577  ;;  %v11436_v41 = vsub.f32 %v15430_v59, %v15426_v51  ;;  %v11438_v26 = vpop.eup %10108  ;;  %v11442_v37 = vrot.slane %v11263_v58, %v10938_v53  ;;  %10130 = vpow2.f32 %v791_v6  ;;  %v15435_v1 = vld [vmem:[#allocation32_spill] sm:$0xff] }
 0x130   : > { %15421 = vst [vmem:[#allocation53_spill] sm:$0xff] %v11406_v44  ;;  %15429 = vst [vmem:[#allocation26_spill] sm:$0xff] %v11427_v2  ;;  %v797_v8 = vmul.f32 1.442695, %v11406_v44  ;;  %v15433_v2 = vld [vmem:[#allocation31_spill] sm:$0xff]  ;;  %v11449_v45 = vpop.eup %10110  ;;  %v11456_v48 = vsub.f32 %v15435_v1, %v15432_v36  ;;  %10132 = vpow2.f32 %v777_v7  ;;  %v15445_v1 = vld [vmem:[#allocation57_spill] sm:$0xff] }
 0x131   : > { %15428 = vst [vmem:[#allocation52_spill] sm:$0xff] %v11423_v40  ;;  %15431 = vst [vmem:[#allocation27_spill] sm:$0xff] %v11436_v41  ;;  %v11447_v20 = vsub.f32 %v15433_v2, %v15432_v36  ;;  %v799_v59 = vmul.f32 1.442695, %v11414_v54  ;;  %v11460_v44 = vpop.eup %10112  ;;  %v785_v50 = vmul.f32 1.442695, %v11423_v40  ;;  %10134 = vpow2.f32 %v779_v5 }
 0x132   : > { %15436 = vst [vmem:[#allocation31_spill] sm:$0xff] %v11456_v48  ;;  %v11458_v14 = vpop.permute.xlu1 %553  ;;  %v15438_v2 = vld [vmem:[#allocation54_spill] sm:$0xff]  ;;  %v11469_v6 = vpop.eup %10114  ;;  %v787_v36 = vmul.f32 1.442695, %v11436_v41  ;;  %10136 = vpow2.f32 %v797_v8  ;;  %v15446_v5 = vld [vmem:[#allocation33_spill] sm:$0xff]  ;;  %886 = vadd.xlane.f32.xlu0 %v885_v17 }
 0x133   : > { %15434 = vst [vmem:[#allocation55_spill] sm:$0xff] %v11447_v20  ;;  %15437 = vst [vmem:[#allocation32_spill] sm:$0xff] %v11458_v14  ;;  %v11465_v0 = vsub.f32 %v15439_v12, %v15438_v2  ;;  %v11467_v51 = vpop.permute.xlu0 %583  ;;  %v10296_v14 = vld [vmem:[%s10618_s10 + $0x128] sm:$0xff]  ;;  %v11478_v40 = vpop.eup %10116  ;;  %v15443_v12 = vcombine.low %v11218_v28, %v11295_v15  ;;  %v805_v62 = vmul.f32 1.442695, %v11447_v20  ;;  %v11489_v54 = vsub.f32 %v15446_v5, %v15445_v1  ;;  %v10297_v8 = vld [vmem:[%s10618_s10 + $0x178] sm:$0xff] }
 0x134   : > { %15441 = vst [vmem:[#allocation30_spill] sm:$0xff] %v11467_v51  ;;  %v11476_v7 = vsub.f32 %v10296_v14, %v15438_v2  ;;  %v11491_v41 = vpop.eup %10118  ;;  %v15448_v14 = vcombine.high %v11218_v28, %v11295_v15  ;;  %10138 = vpow2.f32 %v799_v59  ;;  %v10298_v51 = vld [vmem:[%s10618_s10 + $0x140] sm:$0xff]  ;;  %v15452_v15 = vld [vmem:[#allocation56_spill] sm:$0xff]  ;;  %v891_v59 = vadd.f32 %v10103_v9, %v11398_v11 }
 0x135   : > { %15440 = vst [vmem:[#allocation54_spill] sm:$0xff] %v11465_v0  ;;  %v11484_v42 = vrot.slane %v15443_v12, %v10938_v53  ;;  %15447 = vst [vmem:[#allocation57_spill] sm:$0xff] %v11489_v54  ;;  %v807_v12 = vmul.f32 1.442695, %v11456_v48  ;;  %v11506_v5 = vpop.eup %10120  ;;  %10140 = vpow2.f32 %v785_v50  ;;  %v793_v17 = vmul.f32 1.442695, %v11465_v0 }
 0x136   : > { %15442 = vst [vmem:[#allocation106_spill] sm:$0xff] %v11476_v7  ;;  %v11497_v2 = vrot.slane %v15448_v14, %v10938_v53  ;;  %v11504_v20 = vpop.permute.xlu1 %556  ;;  %v11511_v28 = vsub.f32 %v10298_v51, %v15452_v15  ;;  %v11514_v14 = vpop.eup %10122  ;;  %10142 = vpow2.f32 %v787_v36  ;;  %v10299_v50 = vld [vmem:[%s10618_s10 + $0x148] sm:$0xff]  ;;  %v15457_v11 = vcombine.high %v11263_v58, %v11263_v58  ;;  %v10300_v36 = vld [vmem:[%s10618_s10 + $0x190] sm:$0xff]  ;;  %892 = vadd.xlane.f32.xlu0 %v891_v59 }
 0x137   : > { %15444 = vst [vmem:[#allocation107_spill] sm:$0xff] %v11484_v42  ;;  %v11502_v42 = vsub.f32 %v10297_v8, %v15445_v1  ;;  %15451 = vst [vmem:[#allocation109_spill] sm:$0xff] %v11504_v20  ;;  %v11518_v1 = vrot.slane %v11307_v21, %v10938_v53  ;;  %v795_v8 = vmul.f32 1.442695, %v11476_v7  ;;  %v11525_v20 = vpop.permute.xlu0 %589  ;;  %v11527_v51 = vpop.eup %10124  ;;  %10144 = vpow2.f32 %v805_v62  ;;  %v15462_v48 = vld [vmem:[#allocation58_spill] sm:$0xff] }
 0x138   : > { %15449 = vst [vmem:[#allocation33_spill] sm:$0xff] %v11497_v2  ;;  %15453 = vst [vmem:[#allocation56_spill] sm:$0xff] %v11511_v28  ;;  %v11523_v2 = vsub.f32 %v10299_v50, %v15452_v15  ;;  %v11533_v9 = vrot.slane %v15457_v11, %v10938_v53  ;;  %v813_v21 = vmul.f32 1.442695, %v11489_v54  ;;  %v11538_v7 = vsub.f32 %v10300_v36, %v11005_v29  ;;  %v11540_v15 = vpop.eup %10126  ;;  %v10301_v11 = vld [vmem:[%s10618_s10 + $0x198] sm:$0xff]  ;;  %v10302_v36 = vld [vmem:[%s10618_s10 + $0x160] sm:$0xff] }
 0x139   : > { %15450 = vst [vmem:[#allocation108_spill] sm:$0xff] %v11502_v42  ;;  %15454 = vst [vmem:[#allocation110_spill] sm:$0xff] %v11518_v1  ;;  %v11543_v50 = vrot.slane %v6256_v31, %v10938_v53  ;;  %10146 = vpow2.f32 %v807_v12  ;;  %v815_v58 = vmul.f32 1.442695, %v11502_v42  ;;  %v11548_v0 = vsub.f32 %v10301_v11, %v11005_v29  ;;  %v11552_v54 = vpop.eup %10128  ;;  %v10303_v11 = vld [vmem:[%s10618_s10 + $0x168] sm:$0xff] }
 0x13a   : > { %15455 = vst [vmem:[#allocation111_spill] sm:$0xff] %v11523_v2  ;;  %15456 = vst [vmem:[#allocation112_spill] sm:$0xff] %v11525_v20  ;;  %v11550_v62 = vpop.permute.xlu1 %562  ;;  %10148 = vpow2.f32 %v793_v17  ;;  %v801_v59 = vmul.f32 1.442695, %v11511_v28  ;;  %v11557_v31 = vsub.f32 %v10302_v36, %v15462_v48  ;;  %v897_v12 = vadd.f32 %v11449_v45, %v11438_v26  ;;  %v11561_v42 = vpop.eup %10130  ;;  %v15465_v20 = vld [vmem:[#allocation43_spill] sm:$0xff] }
 0x13b   : > { %15458 = vst [vmem:[#allocation113_spill] sm:$0xff] %v11538_v7  ;;  %15459 = vst [vmem:[#allocation114_spill] sm:$0xff] %v11543_v50  ;;  %vm1183_vm9 = vcmp.ne.s32.totalorder %v15465_v20, 4294967196  ;;  %10150 = vpow2.f32 %v795_v8  ;;  %v803_v29 = vmul.f32 1.442695, %v11523_v2  ;;  %v11567_v17 = vsub.f32 %v10303_v11, %v15462_v48  ;;  %v10304_v28 = vld [vmem:[%s10618_s10 + $0x1b0] sm:$0xff] }
 0x13c   : > { %15460 = vst [vmem:[#allocation115_spill] sm:$0xff] %v11548_v0  ;;  %15461 = vst [vmem:[#allocation116_spill] sm:$0xff] %v11550_v62  ;;  %v11569_v62 = vpop.eup %10132  ;;  %10152 = vpow2.f32 %v813_v21  ;;  %v821_v36 = vmul.f32 1.442695, %v11538_v7  ;;  %v15467_v26 = vld [vmem:[#allocation67_spill] sm:$0xff]  ;;  %898 = vadd.xlane.f32.xlu0 %v897_v12  ;;  %v873_v8 = vadd.f32 %v11292_v27, %v11281_v25  ;;  %v15469_v48 = vcombine.low %v11285_v32, %v11357_v22  ;;  %v10305_v2 = vld [vmem:[%s10618_s10 + $0x1b8] sm:$0xff]  ;;  %v11591_v12 = vpop.permute.xlu0 %595 }
 0x13d   : > { %15463 = vst [vmem:[#allocation58_spill] sm:$0xff] %v11557_v31  ;;  %15464 = vst [vmem:[#allocation117_spill] sm:$0xff] %v11561_v42  ;;  %v11574_v45 = vsub.f32 %v10304_v28, %v15467_v26  ;;  %v11578_v42 = vpop.eup %10134  ;;  %10154 = vpow2.f32 %v815_v58  ;;  %v823_v21 = vmul.f32 1.442695, %v11548_v0  ;;  %v11589_v28 = vsub.f32 %v10305_v2, %v15467_v26 }
 0x13e   : > { %15466 = vst [vmem:[#allocation118_spill] sm:$0xff] %v11567_v17  ;;  %v11584_v11 = vrot.slane %v15469_v48, %v10938_v53  ;;  %v11593_v7 = vpop.permute.xlu1 %568  ;;  %v11595_v25 = vpop.eup %10136  ;;  %10156 = vpow2.f32 %v801_v59  ;;  %v809_v27 = vmul.f32 1.442695, %v11557_v31  ;;  %v10306_v48 = vld [vmem:[%s10618_s10 + $0x180] sm:$0xff]  ;;  %v903_v0 = vadd.f32 %v11491_v41, %v11478_v40  ;;  %874 = vadd.xlane.f32.xlu1 %v873_v8  ;;  %v10307_v31 = vld [vmem:[%s10618_s10 + $0x188] sm:$0xff]  ;;  %v10308_v41 = vld [vmem:[%s10618_s10 + $0x1d0] sm:$0xff] }
 0x13f   : > { %15468 = vst [vmem:[#allocation67_spill] sm:$0xff] %v11574_v45  ;;  %15471 = vst [vmem:[#allocation120_spill] sm:$0xff] %v11593_v7  ;;  %v11604_v2 = vpop.eup %10138  ;;  %v15475_v26 = vcombine.high %v11285_v32, %v11357_v22  ;;  %10158 = vpow2.f32 %v803_v29  ;;  %v811_v59 = vmul.f32 1.442695, %v11567_v17  ;;  %v829_v40 = vmul.f32 1.442695, %v11574_v45 }
 0x140   : > { %15470 = vst [vmem:[#allocation119_spill] sm:$0xff] %v11584_v11  ;;  %15472 = vst [vmem:[#allocation121_spill] sm:$0xff] %v11595_v25  ;;  %v15473_v11 = vld [vmem:[#allocation62_spill] sm:$0xff]  ;;  %v11617_v25 = vpop.eup %10140  ;;  %10160 = vpow2.f32 %v821_v36  ;;  %v11622_v8 = vsub.f32 %v10308_v41, %v11047_v35  ;;  %904 = vadd.xlane.f32.xlu0 %v903_v0  ;;  %v882_v32 = vadd.f32 %v11272_v16, %v11260_v34  ;;  %v831_v29 = vmul.f32 1.442695, %v11589_v28  ;;  %v10309_v36 = vld [vmem:[%s10618_s10 + $0x1d8] sm:$0xff]  ;;  %v11658_v17 = vpop.permute.xlu0 %601 }
 0x141   : > { %v11600_v58 = vsub.f32 %v10306_v48, %v15473_v11  ;;  %v11610_v7 = vrot.slane %v15475_v26, %v10938_v53  ;;  %v11615_v48 = vsub.f32 %v10307_v31, %v15473_v11  ;;  %v11626_v22 = vpop.eup %10142  ;;  %v11631_v31 = vsel %vm1183_vm9, 1.0, %v15326_v56  ;;  %v10310_v16 = vld [vmem:[%s10618_s10 + $0x1a0] sm:$0xff]  ;;  %v15480_v41 = vld [vmem:[#allocation68_spill] sm:$0xff] }
 0x142   : > { %15478 = vst [vmem:[#allocation124_spill] sm:$0xff] %v11622_v8  ;;  %10162 = vpow2.f32 %v823_v21  ;;  %v11636_v11 = vsub.f32 %v10309_v36, %v11047_v35  ;;  %v11638_v26 = vpop.permute.xlu1 %574  ;;  %v11640_v0 = vpop.eup %10144  ;;  %v909_v21 = vadd.f32 %v11540_v15, %v11527_v51  ;;  %883 = vadd.xlane.f32.xlu1 %v882_v32  ;;  %v10311_v36 = vld [vmem:[%s10618_s10 + $0x1a8] sm:$0xff]  ;;  %v837_v51 = vmul.f32 1.442695, %v11622_v8  ;;  %v10312_v15 = vld [vmem:[%s10618_s10 + $0x1f0] sm:$0xff] }
 0x143   : > { %15474 = vst [vmem:[#allocation62_spill] sm:$0xff] %v11600_v58  ;;  %15476 = vst [vmem:[#allocation122_spill] sm:$0xff] %v11610_v7  ;;  %10164 = vpow2.f32 %v809_v27  ;;  %v817_v34 = vmul.f32 1.442695, %v11600_v58  ;;  %v11645_v7 = vsub.f32 %v10310_v16, %v15480_v41  ;;  %v11649_v20 = vpop.eup %10146  ;;  %v819_v27 = vmul.f32 1.442695, %v11615_v48 }
 0x144   : > { %15477 = vst [vmem:[#allocation123_spill] sm:$0xff] %v11615_v48  ;;  %15479 = vst [vmem:[#allocation125_spill] sm:$0xff] %v11636_v11  ;;  %10166 = vpow2.f32 %v811_v59  ;;  %v11656_v58 = vsub.f32 %v10311_v36, %v15480_v41  ;;  %v11660_v16 = vpop.eup %10148  ;;  %v11665_v32 = vsub.f32 %v10312_v15, %v11078_v52  ;;  %910 = vadd.xlane.f32.xlu0 %v909_v21  ;;  %v839_v36 = vmul.f32 1.442695, %v11636_v11  ;;  %v11683_v21 = vld [vmem:[%s10830_s7 + $0x78] sm:$0xff] }
 0x145   : > { %15481 = vst [vmem:[#allocation68_spill] sm:$0xff] %v11645_v7  ;;  %10168 = vpow2.f32 %v829_v40  ;;  %v888_v59 = vadd.f32 %v11316_v38, %v11304_v46  ;;  %v11669_v35 = vpop.eup %10150  ;;  %v10313_v40 = vld [vmem:[%s10618_s10 + $0x1f8] sm:$0xff]  ;;  %15485 = vst [vmem:[#allocation129_spill] sm:$0xff] %v11683_v21  ;;  %vm15228_vm10 = vcmp.ne.s32.totalorder %v11683_v21, 4294967196  ;;  %v825_v38 = vmul.f32 1.442695, %v11645_v7 }
 0x146   : > { %15482 = vst [vmem:[#allocation126_spill] sm:$0xff] %v11656_v58  ;;  %15483 = vst [vmem:[#allocation127_spill] sm:$0xff] %v11665_v32  ;;  %10170 = vpow2.f32 %v831_v29  ;;  %v11676_v48 = vsub.f32 %v10313_v40, %v11078_v52  ;;  %v11678_v8 = vpop.permute.xlu1 %580  ;;  %v11680_v15 = vpop.eup %10152  ;;  %v10315_v46 = vld [vmem:[%s10618_s10 + $0x1c0] sm:$0xff]  ;;  %v915_v52 = vadd.f32 %v11578_v42, %v11569_v62  ;;  %v827_v45 = vmul.f32 1.442695, %v11656_v58  ;;  %v10317_v42 = vld [vmem:[%s10618_s10 + $0x210] sm:$0xff] }
 0x147   : > { %10172 = vpow2.f32 %v817_v34  ;;  %v11689_v29 = vsub.f32 %v10315_v46, %v11055_v33  ;;  %889 = vadd.xlane.f32.xlu1 %v888_v59  ;;  %v11693_v40 = vpop.eup %10154  ;;  %v10316_v34 = vld [vmem:[%s10618_s10 + $0x1c8] sm:$0xff]  ;;  %v845_v46 = vmul.f32 1.442695, %v11665_v32  ;;  %v11707_v62 = vsub.f32 %v10317_v42, %v11116_v63  ;;  %v11720_v58 = vpop.permute.xlu0 %607 }
 0x148   : > { %15484 = vst [vmem:[#allocation128_spill] sm:$0xff] %v11676_v48  ;;  %10174 = vpow2.f32 %v819_v27  ;;  %v11700_v7 = vsub.f32 %v10316_v34, %v11055_v33  ;;  %v11702_v11 = vpop.eup %10156  ;;  %916 = vadd.xlane.f32.xlu0 %v915_v52  ;;  %v894_v27 = vadd.f32 %v11354_v10, %v11342_v47  ;;  %v847_v34 = vmul.f32 1.442695, %v11676_v48  ;;  %v10319_v47 = vld [vmem:[%s10618_s10 + $0x1e0] sm:$0xff] }
 0x149   : > { %15486 = vst [vmem:[#allocation130_spill] sm:$0xff] %v11689_v29  ;;  %10176 = vpow2.f32 %v837_v51  ;;  %15488 = vst [vmem:[#allocation132_spill] sm:$0xff] %v11707_v62  ;;  %v11711_v59 = vpop.eup %10158  ;;  %v10318_v51 = vld [vmem:[%s10618_s10 + $0x218] sm:$0xff]  ;;  %v833_v10 = vmul.f32 1.442695, %v11689_v29  ;;  %v921_v33 = vadd.f32 %v11626_v22, %v11617_v25  ;;  %v10321_v22 = vld [vmem:[%s10618_s10 + $0x200] sm:$0xff] }
 0x14a   : > { %15487 = vst [vmem:[#allocation131_spill] sm:$0xff] %v11700_v7  ;;  %10178 = vpow2.f32 %v839_v36  ;;  %v11718_v41 = vsub.f32 %v10318_v51, %v11116_v63  ;;  %v11722_v42 = vpop.permute.xlu1 %586  ;;  %v11724_v52 = vpop.eup %10160  ;;  %v11729_v36 = vsub.f32 %v10319_v47, %v11090_v30  ;;  %v835_v32 = vmul.f32 1.442695, %v11700_v7 }
 0x14b   : > { %10180 = vpow2.f32 %v825_v38  ;;  %895 = vadd.xlane.f32.xlu1 %v894_v27  ;;  %v10320_v38 = vld [vmem:[%s10618_s10 + $0x1e8] sm:$0xff]  ;;  %v853_v25 = vmul.f32 1.442695, %v11707_v62  ;;  %v11747_v27 = vsub.f32 %v10321_v22, %v11129_v39 }
 0x14c   : > { %15489 = vst [vmem:[#allocation133_spill] sm:$0xff] %v11729_v36  ;;  %v11733_v63 = vpop.eup %10162  ;;  %10182 = vpow2.f32 %v827_v45  ;;  %v11740_v29 = vsub.f32 %v10320_v38, %v11090_v30  ;;  %922 = vadd.xlane.f32.xlu0 %v921_v33  ;;  %v900_v45 = vadd.f32 %v11389_v13, %v11380_v3  ;;  %v11755_v30 = vrot.slane %v11631_v31, %v10938_v53  ;;  %v10322_v38 = vld [vmem:[%s10618_s10 + $0x208] sm:$0xff]  ;;  %v10323_v13 = vld [vmem:[%s10618_s10 + $0x220] sm:$0xff] }
 0x14d   : > { %v11742_v48 = vpop.eup %10164  ;;  %10184 = vpow2.f32 %v845_v46  ;;  %15491 = vst [vmem:[#allocation135_spill] sm:$0xff] %v11747_v27  ;;  %v855_v46 = vmul.f32 1.442695, %v11718_v41  ;;  %v11760_v51 = vsub.f32 %v10322_v38, %v11129_v39  ;;  %v841_v3 = vmul.f32 1.442695, %v11729_v36  ;;  %v10324_v38 = vld [vmem:[%s10618_s10 + $0x228] sm:$0xff] }
 0x14e   : > { %15490 = vst [vmem:[#allocation134_spill] sm:$0xff] %v11740_v29  ;;  %v11751_v47 = vpop.eup %10166  ;;  %15492 = vst [vmem:[#allocation136_spill] sm:$0xff] %v11755_v30  ;;  %10186 = vpow2.f32 %v847_v34  ;;  %v11762_v22 = vpop.permute.xlu1 %592  ;;  %v11769_v7 = vsub.f32 %v10323_v13, %v11166_v24  ;;  %v927_v34 = vadd.f32 %v11669_v35, %v11660_v16  ;;  %v11778_v39 = vsel %vm15228_vm10, 1.0, %v15326_v56  ;;  %v10325_v35 = vld [vmem:[%s10618_s10 + $0x230] sm:$0xff] }
 0x14f   : > { %15493 = vst [vmem:[#allocation137_spill] sm:$0xff] %v11760_v51  ;;  %v11764_v33 = vpop.eup %10168  ;;  %10188 = vpow2.f32 %v833_v10  ;;  %901 = vadd.xlane.f32.xlu1 %v900_v45  ;;  %15495 = vst [vmem:[#allocation139_spill] sm:$0xff] %v11778_v39  ;;  %v843_v10 = vmul.f32 1.442695, %v11740_v29  ;;  %v11783_v36 = vsub.f32 %v10324_v38, %v11166_v24  ;;  %v11785_v13 = vpop.permute.xlu0 %613  ;;  %v11791_v16 = vsub.f32 %v10325_v35, %v11156_v4 }
 0x150   : > { %15494 = vst [vmem:[#allocation138_spill] sm:$0xff] %v11769_v7  ;;  %v11773_v30 = vpop.eup %10170  ;;  %10190 = vpow2.f32 %v835_v32  ;;  %v849_v45 = vmul.f32 1.442695, %v11747_v27  ;;  %928 = vadd.xlane.f32.xlu0 %v927_v34  ;;  %v906_v32 = vadd.f32 %v11429_v60, %v11418_v19  ;;  %v851_v24 = vmul.f32 1.442695, %v11760_v51  ;;  %v10327_v19 = vld [vmem:[%s10618_s10 + $0x248] sm:$0xff] }
 0x151   : > { %15496 = vst [vmem:[#allocation140_spill] sm:$0xff] %v11783_v36  ;;  %v11787_v62 = vpop.eup %10172  ;;  %10192 = vpow2.f32 %v853_v25  ;;  %v15497_v38 = vlaneseq  ;;  %v10326_v25 = vld [vmem:[%s10618_s10 + $0x240] sm:$0xff]  ;;  %v857_v60 = vmul.f32 1.442695, %v11769_v7  ;;  %v933_v34 = vadd.f32 %v11711_v59, %v11702_v11  ;;  %v10329_v59 = vld [vmem:[%s10618_s10 + $0x250] sm:$0xff] }
 0x152   : > { %v10175_v21 = vpop.eup %10174  ;;  %10194 = vpow2.f32 %v855_v46  ;;  %v11802_v39 = vsub.f32 %v10326_v25, %v11214_v61  ;;  %v11804_v35 = vpop.permute.xlu1 %598  ;;  %v11811_v46 = vsub.f32 %v10327_v19, %v11214_v61  ;;  %v15501_v25 = vcombine.low %v11442_v37, %v11533_v9 }
 0x153   : > { %v11798_v56 = vand.u32 127, %v15497_v38  ;;  %v11806_v29 = vpop.eup %10176  ;;  %10196 = vpow2.f32 %v841_v3  ;;  %907 = vadd.xlane.f32.xlu1 %v906_v32  ;;  %v10328_v3 = vld [vmem:[%s10618_s10 + $0x238] sm:$0xff]  ;;  %v859_v61 = vmul.f32 1.442695, %v11783_v36  ;;  %v861_v11 = vmul.f32 1.442695, %v11791_v16 }
 0x154   : > { %15499 = vst [vmem:[#allocation142_spill] sm:$0xff] %v11802_v39  ;;  %15500 = vst [vmem:[#allocation143_spill] sm:$0xff] %v11811_v46  ;;  %v11815_v38 = vpop.eup %10178  ;;  %v11821_v27 = vrot.slane %v15501_v25, %v10938_v53  ;;  %10198 = vpow2.f32 %v843_v10  ;;  %v11825_v7 = vsub.f32 %v10328_v3, %v11156_v4  ;;  %v11833_v32 = vsub.f32 %v10329_v59, %v11189_v18 }
 0x155   : > { %15498 = vst [vmem:[#allocation141_spill] sm:$0xff] %v11798_v56  ;;  %v11828_v19 = vpop.eup %10180  ;;  %10200 = vpow2.f32 %v849_v45  ;;  %934 = vadd.xlane.f32.xlu0 %v933_v34  ;;  %v912_v25 = vadd.f32 %v11469_v6, %v11460_v44  ;;  %v11842_v3 = vadd.s32 128, %v11798_v56  ;;  %v865_v36 = vmul.f32 1.442695, %v11802_v39  ;;  %v11845_v45 = vpop.permute.xlu0 %619 }
 0x156   : > { %15502 = vst [vmem:[#allocation144_spill] sm:$0xff] %v11821_v27  ;;  %v10183_v10 = vpop.eup %10182  ;;  %10202 = vpow2.f32 %v851_v24  ;;  %v10330_v27 = vld [vmem:[%s10618_s10 + $0x258] sm:$0xff]  ;;  %v11847_v51 = vpop.permute.xlu1 %604  ;;  %v867_v44 = vmul.f32 1.442695, %v11811_v46  ;;  %vm649_vm11 = vcmp.eq.s32.totalorder %v11798_v56, %v11258_v43  ;;  %v863_v39 = vmul.f32 1.442695, %v11825_v7 }
 0x157   : > { %v11839_v4 = vsub.f32 %v10330_v27, %v11189_v18  ;;  %v11849_v59 = vpop.eup %10184  ;;  %10204 = vpow2.f32 %v857_v60  ;;  %v939_v18 = vadd.f32 %v11751_v47, %v11742_v48  ;;  %913 = vadd.xlane.f32.xlu1 %v912_v25  ;;  %v15503_v27 = vcombine.high %v11442_v37, %v11533_v9  ;;  %s10394_s10 = scalar_lea.vmem %s10393_s9, 96 }
 0x158   : > { %v11856_v6 = vpop.eup %10186  ;;  %v15505_v60 = vcombine.low %v11518_v1, %v11543_v50  ;;  %10206 = vpow2.f32 %v859_v61  ;;  %v869_v48 = vmul.f32 1.442695, %v11833_v32  ;;  %vm650_vm12 = vcmp.eq.s32.totalorder %v11842_v3, %v11258_v43  ;;  %v15523_v50 = vld [vmem:[#allocation31_spill] sm:$0xff]  ;;  %p10396_p0 = scmp.lt.s32.totalorder %s10394_s10, %s10388_s29 }
 0x159   : > { %v11862_v24 = vrot.slane %v15503_v27, %v10938_v53  ;;  %v10189_v46 = vpop.eup %10188  ;;  %10208 = vpow2.f32 %v861_v11  ;;  %940 = vadd.xlane.f32.xlu0 %v939_v18  ;;  %v918_v37 = vadd.f32 %v11514_v14, %v11506_v5  ;;  %v15507_v47 = vcombine.high %v11631_v31, %v11631_v31  ;;  %v11910_v31 = vpop.permute.xlu0 %625 }
 0x15a   : > { %v11868_v34 = vrot.slane %v15505_v60, %v10938_v53  ;;  %v10191_v9 = vpop.eup %10190  ;;  %v871_v61 = vmul.f32 1.442695, %v11839_v4  ;;  %10210 = vpow2.f32 %v865_v36  ;;  %v11887_v11 = vsel %vm649_vm11, %v11088_v55, 0.0  ;;  %v11889_v18 = vpop.permute.xlu1 %610  ;;  %v15512_v60 = vld [vmem:[#allocation87_spill] sm:$0xff]  ;;  %p10397_p2 = por %p10396_p0, %p10395_p10 }
 0x15b   : > { %15504 = vst [vmem:[#allocation145_spill] sm:$0xff] %v11862_v24  ;;  %v11880_v25 = vrot.slane %v15507_v47, %v10938_v53  ;;  %v11891_v27 = vpop.eup %10192  ;;  %10212 = vpow2.f32 %v867_v44  ;;  %vm645_vm13 = vcmp.eq.s32.totalorder %v11798_v56, %v11270_v49  ;;  %vm646_vm14 = vcmp.eq.s32.totalorder %v11842_v3, %v11270_v49  ;;  %919 = vadd.xlane.f32.xlu1 %v918_v37  ;;  %v15516_v24 = vld [vmem:[#allocation51_spill] sm:$0xff] }
 0x15c   : > { %15506 = vst [vmem:[#allocation146_spill] sm:$0xff] %v11868_v34  ;;  %v945_v5 = vadd.f32 %v10175_v21, %v11787_v62  ;;  %v11898_v14 = vpop.eup %10194  ;;  %10214 = vpow2.f32 %v863_v39  ;;  %v11904_v55 = vsel %vm650_vm12, %v11098_v23, 0.0  ;;  %vm653_vm15 = vcmp.eq.s32.totalorder %v11798_v56, %v11340_v57  ;;  %v15509_v21 = vld [vmem:[#allocation117_spill] sm:$0xff]  ;;  %v15510_v39 = vld [vmem:[#allocation30_spill] sm:$0xff]  ;;  %p10398_p4 = pnand %p10397_p2, %p10391_p8 }
 0x15d   : > { %15508 = vst [vmem:[#allocation147_spill] sm:$0xff] %v11880_v25  ;;  %vm654_vm11 = vcmp.eq.s32.totalorder %v11842_v3, %v11340_v57  ;;  %v10197_v36 = vpop.eup %10196  ;;  %10216 = vpow2.f32 %v869_v48  ;;  %v924_v62 = vadd.f32 %v15509_v21, %v11552_v54  ;;  %vm679_vm10 = vcmp.eq.s32.totalorder %v11798_v56, %v15510_v39  ;;  %v15511_v23 = vld [vmem:[#allocation86_spill] sm:$0xff]  ;;  %v15513_v54 = vld [vmem:[#allocation112_spill] sm:$0xff]  ;;  %v15515_v21 = vld [vmem:[#allocation97_spill] sm:$0xff] }
 0x15e   : > { %946 = vadd.xlane.f32.xlu0 %v945_v5  ;;  %vm680_vm12 = vcmp.eq.s32.totalorder %v11842_v3, %v15510_v39  ;;  %v10199_v43 = vpop.eup %10198  ;;  %10218 = vpow2.f32 %v871_v61  ;;  %v11922_v44 = vsel %vm645_vm13, %v15511_v23, 0.0  ;;  %v11928_v48 = vsel %vm646_vm14, %v15512_v60, 0.0  ;;  %v11932_v37 = vpop.permute.xlu1 %616  ;;  %v15514_v5 = vld [vmem:[#allocation96_spill] sm:$0xff]  ;;  %v15520_v39 = vld [vmem:[#allocation29_spill] sm:$0xff] }
 0x15f   : > { %vm683_vm8 = vcmp.eq.s32.totalorder %v11798_v56, %v15513_v54  ;;  %v10201_v47 = vpop.eup %10200  ;;  %v11938_v61 = vsel %vm653_vm15, %v15514_v5, 0.0  ;;  %v11944_v23 = vsel %vm654_vm11, %v15515_v21, 0.0  ;;  %v951_v49 = vadd.f32 %v10183_v10, %v11828_v19  ;;  %925 = vadd.xlane.f32.xlu1 %v924_v62  ;;  %v15517_v25 = vld [vmem:[#allocation24_spill] sm:$0xff]  ;;  %v15518_v10 = vld [vmem:[#allocation121_spill] sm:$0xff] }
 0x160   : > { %vm684_vm13 = vcmp.eq.s32.totalorder %v11842_v3, %v15513_v54  ;;  %v10203_v60 = vpop.eup %10202  ;;  %v957_v34 = vadd.f32 %v10191_v9, %v10189_v46  ;;  %v11953_v5 = vsel %vm679_vm10, %v15516_v24, 0.0  ;;  %v11959_v57 = vsel %vm680_vm12, %v15517_v25, 0.0  ;;  %v15519_v62 = vld [vmem:[#allocation53_spill] sm:$0xff]  ;;  %v15521_v54 = vld [vmem:[#allocation55_spill] sm:$0xff] }
 0x161   : > { %vm687_vm14 = vcmp.eq.s32.totalorder %v11798_v56, %v11591_v12  ;;  %v10205_v19 = vpop.eup %10204  ;;  %v930_v46 = vadd.f32 %v11604_v2, %v15518_v10  ;;  %v963_v9 = vadd.f32 %v10199_v43, %v10197_v36  ;;  %v11969_v24 = vsel %vm683_vm8, %v15519_v62, 0.0  ;;  %v11982_v2 = vpop.permute.xlu0 %631 }
 0x162   : > { %952 = vadd.xlane.f32.xlu0 %v951_v49  ;;  %vm688_vm10 = vcmp.eq.s32.totalorder %v11842_v3, %v11591_v12  ;;  %v10207_v25 = vpop.eup %10206  ;;  %v11974_v21 = vsel %vm684_vm13, %v15520_v39, 0.0  ;;  %v936_v49 = vadd.f32 %v11649_v20, %v11640_v0  ;;  %vm691_vm15 = vcmp.eq.s32.totalorder %v11798_v56, %v11658_v17  ;;  %v15522_v20 = vld [vmem:[#allocation115_spill] sm:$0xff]  ;;  %v11997_v62 = vpop.permute.xlu1 %622 }
 0x163   : > { %vm696_vm11 = vcmp.eq.s32.totalorder %v11842_v3, %v11720_v58  ;;  %v11984_v36 = vpop.eup %10208  ;;  %931 = vadd.xlane.f32.xlu1 %v930_v46  ;;  %v969_v43 = vadd.f32 %v10203_v60, %v10201_v47  ;;  %v11990_v10 = vsel %vm687_vm14, %v15521_v54, 0.0  ;;  %vm692_vm8 = vcmp.eq.s32.totalorder %v11842_v3, %v11658_v17  ;;  %v15524_v46 = vld [vmem:[#allocation57_spill] sm:$0xff] }
 0x164   : > { %v11995_v0 = vsel %vm696_vm11, %v15522_v20, 0.0  ;;  %v10211_v39 = vpop.eup %10210  ;;  %v12000_v1 = vsel %vm688_vm10, %v15523_v50, 0.0  ;;  %v942_v47 = vadd.f32 %v11693_v40, %v11680_v15  ;;  %vm673_vm12 = vcmp.eq.s32.totalorder %v11798_v56, %v11638_v26  ;;  %v15526_v15 = vld [vmem:[#allocation108_spill] sm:$0xff] }
 0x165   : > { %vm674_vm13 = vcmp.eq.s32.totalorder %v11842_v3, %v11638_v26  ;;  %v10213_v12 = vpop.eup %10212  ;;  %v975_v60 = vadd.f32 %v10207_v25, %v10205_v19  ;;  %v12012_v54 = vsel %vm691_vm15, %v15524_v46, 0.0  ;;  %vm695_vm14 = vcmp.eq.s32.totalorder %v11798_v56, %v11720_v58  ;;  %v15528_v58 = vld [vmem:[#allocation50_spill] sm:$0xff]  ;;  %v15529_v19 = vld [vmem:[#allocation23_spill] sm:$0xff] }
 0x166   : > { %958 = vadd.xlane.f32.xlu0 %v957_v34  ;;  %vm700_vm10 = vcmp.eq.s32.totalorder %v11842_v3, %v11785_v13  ;;  %v12018_v50 = vpop.eup %10214  ;;  %v12021_v40 = vsel %vm692_vm8, %v15526_v15, 0.0  ;;  %vm677_vm11 = vcmp.eq.s32.totalorder %v11798_v56, %v11678_v8  ;;  %vm678_vm6 = vcmp.eq.s32.totalorder %v11842_v3, %v11678_v8  ;;  %v15534_v8 = vld [vmem:[#allocation67_spill] sm:$0xff] }
 0x167   : > { %15525 = vst [vmem:[#allocation117_spill] sm:$0xff] %v12018_v50  ;;  %v12028_v17 = vsel %vm700_vm10, %v11589_v28, 0.0  ;;  %v12030_v26 = vpop.eup %10216  ;;  %937 = vadd.xlane.f32.xlu1 %v936_v49  ;;  %v12033_v34 = vsel %vm673_vm12, %v15528_v58, 0.0  ;;  %v12036_v25 = vsel %vm674_vm13, %v15529_v19, 0.0  ;;  %v948_v20 = vadd.f32 %v11733_v63, %v11724_v52  ;;  %v15530_v28 = vld [vmem:[#allocation113_spill] sm:$0xff]  ;;  %v638_v19 = vpop.permute.xlu0 %637  ;;  %v15533_v63 = vld [vmem:[#allocation27_spill] sm:$0xff] }
 0x168   : > { %15527 = vst [vmem:[#allocation30_spill] sm:$0xff] %v12030_v26  ;;  %vm704_vm15 = vcmp.eq.s32.totalorder %v11842_v3, %v11845_v45  ;;  %v12042_v46 = vpop.eup %10218  ;;  %v12044_v15 = vadd.f32 %v10213_v12, %v10211_v39  ;;  %v12047_v50 = vsel %vm695_vm14, %v15530_v28, 0.0  ;;  %vm699_vm8 = vcmp.eq.s32.totalorder %v11798_v56, %v11785_v13  ;;  %v15531_v49 = vld [vmem:[#allocation125_spill] sm:$0xff]  ;;  %v15532_v26 = vld [vmem:[#allocation52_spill] sm:$0xff]  ;;  %v12070_v13 = vpop.permute.xlu1 %628 }
 0x169   : > { %v12052_v58 = vsel %vm704_vm15, %v15531_v49, 0.0  ;;  %v12058_v52 = vsel %vm677_vm11, %v15532_v26, 0.0  ;;  %v12064_v39 = vsel %vm678_vm6, %v15533_v63, 0.0  ;;  %vm681_vm12 = vcmp.eq.s32.totalorder %v11798_v56, %v11722_v42  ;;  %v15538_v28 = vld [vmem:[#allocation124_spill] sm:$0xff] }
 0x16a   : > { %964 = vadd.xlane.f32.xlu0 %v963_v9  ;;  %vm682_vm13 = vcmp.eq.s32.totalorder %v11842_v3, %v11722_v42  ;;  %v954_v9 = vadd.f32 %v11773_v30, %v11764_v33  ;;  %v12076_v12 = vadd.f32 %v11928_v48, %v11922_v44  ;;  %vm703_vm14 = vcmp.eq.s32.totalorder %v11798_v56, %v11845_v45  ;;  %v15535_v42 = vld [vmem:[#allocation128_spill] sm:$0xff]  ;;  %v15536_v33 = vld [vmem:[#allocation54_spill] sm:$0xff] }
 0x16b   : > { %vm708_vm6 = vcmp.eq.s32.totalorder %v11842_v3, %v11910_v31  ;;  %943 = vadd.xlane.f32.xlu1 %v942_v47  ;;  %v12083_v26 = vsel %vm699_vm8, %v15534_v8, 0.0  ;;  %vm685_vm10 = vcmp.eq.s32.totalorder %v11798_v56, %v11762_v22  ;;  %vm686_vm11 = vcmp.eq.s32.totalorder %v11842_v3, %v11762_v22  ;;  %v15537_v48 = vld [vmem:[#allocation106_spill] sm:$0xff]  ;;  %v15539_v8 = vld [vmem:[#allocation56_spill] sm:$0xff] }
 0x16c   : > { %v12090_v30 = vsel %vm708_vm6, %v15535_v42, 0.0  ;;  %v1023_v44 = vsel %vm681_vm12, %v15536_v33, 0.0  ;;  %v1024_v45 = vsel %vm682_vm13, %v15537_v48, 0.0  ;;  %vm707_vm15 = vcmp.eq.s32.totalorder %v11798_v56, %v11910_v31  ;;  %v15540_v31 = vld [vmem:[#allocation111_spill] sm:$0xff] }
 0x16d   : > { %vm712_vm8 = vcmp.eq.s32.totalorder %v11842_v3, %v11982_v2  ;;  %v960_v47 = vadd.f32 %v11815_v38, %v11806_v29  ;;  %v12102_v22 = vadd.f32 %v11904_v55, %v11887_v11  ;;  %v12105_v49 = vsel %vm703_vm14, %v15538_v28, 0.0  ;;  %v12118_v29 = vpop.permute.xlu0 %643  ;;  %v15541_v38 = vld [vmem:[#allocation127_spill] sm:$0xff]  ;;  %v15543_v55 = vld [vmem:[#allocation118_spill] sm:$0xff] }
 0x16e   : > { %970 = vadd.xlane.f32.xlu0 %v969_v43  ;;  %v12108_v63 = vsel %vm712_vm8, %v11718_v41, 0.0  ;;  %v1027_v42 = vsel %vm685_vm10, %v15539_v8, 0.0  ;;  %v1028_v33 = vsel %vm686_vm11, %v15540_v31, 0.0  ;;  %v12114_v43 = vadd.f32 %v11856_v6, %v11849_v59  ;;  %v635_v41 = vpop.permute.xlu1 %634  ;;  %v15542_v6 = vld [vmem:[#allocation58_spill] sm:$0xff]  ;;  %v15546_v28 = vld [vmem:[#allocation123_spill] sm:$0xff] }
 0x16f   : > { %vm689_vm12 = vcmp.eq.s32.totalorder %v11798_v56, %v11804_v35  ;;  %949 = vadd.xlane.f32.xlu1 %v948_v20  ;;  %v12121_v11 = vsel %vm707_vm15, %v15541_v38, 0.0  ;;  %vm690_vm13 = vcmp.eq.s32.totalorder %v11842_v3, %v11804_v35  ;;  %vm711_vm14 = vcmp.eq.s32.totalorder %v11798_v56, %v11982_v2  ;;  %v15548_v38 = vld [vmem:[#allocation126_spill] sm:$0xff] }
 0x170   : > { %vm716_vm6 = vcmp.eq.s32.totalorder %v11842_v3, %v638_v19  ;;  %vm693_vm10 = vcmp.eq.s32.totalorder %v11798_v56, %v11847_v51  ;;  %vm694_vm11 = vcmp.eq.s32.totalorder %v11842_v3, %v11847_v51  ;;  %vm715_vm8 = vcmp.eq.s32.totalorder %v11798_v56, %v638_v19  ;;  %v15545_v19 = vld [vmem:[#allocation62_spill] sm:$0xff] }
 0x171   : > { %v12134_v59 = vsel %vm716_vm6, %v11825_v7, 0.0  ;;  %v1031_v35 = vsel %vm689_vm12, %v15542_v6, 0.0  ;;  %vm697_vm15 = vcmp.eq.s32.totalorder %v11798_v56, %v11889_v18  ;;  %vm698_vm4 = vcmp.eq.s32.totalorder %v11842_v3, %v11889_v18  ;;  %v15549_v6 = vld [vmem:[#allocation105_spill] sm:$0xff] }
 0x172   : > { %976 = vadd.xlane.f32.xlu0 %v975_v60  ;;  %vm720_vm7 = vcmp.eq.s32.totalorder %v11842_v3, %v12118_v29  ;;  %v1032_v20 = vsel %vm690_vm13, %v15543_v55, 0.0  ;;  %v12146_v51 = vadd.f32 %v11898_v14, %v11891_v27  ;;  %vm701_vm12 = vcmp.eq.s32.totalorder %v11798_v56, %v11932_v37  ;;  %v15544_v60 = vld [vmem:[#allocation132_spill] sm:$0xff]  ;;  %v15553_v55 = vld [vmem:[#allocation131_spill] sm:$0xff] }
 0x173   : > { %v12149_v7 = vsel %vm720_vm7, %v11839_v4, 0.0  ;;  %955 = vadd.xlane.f32.xlu1 %v954_v9  ;;  %v1053_v18 = vsel %vm711_vm14, %v15544_v60, 0.0  ;;  %v1035_v48 = vsel %vm693_vm10, %v15545_v19, 0.0  ;;  %v1036_v8 = vsel %vm694_vm11, %v15546_v28, 0.0  ;;  %v15547_v27 = vld [vmem:[#allocation68_spill] sm:$0xff]  ;;  %v15555_v28 = vld [vmem:[#allocation133_spill] sm:$0xff] }
 0x174   : > { %v1057_v31 = vsel %vm715_vm8, %v11791_v16, 0.0  ;;  %v1039_v14 = vsel %vm697_vm15, %v15547_v27, 0.0  ;;  %v1040_v4 = vsel %vm698_vm4, %v15548_v38, 0.0  ;;  %vm702_vm7 = vcmp.eq.s32.totalorder %v11842_v3, %v11932_v37  ;;  %v15550_v16 = vld [vmem:[#allocation130_spill] sm:$0xff]  ;;  %v641_v37 = vpop.permute.xlu1 %640  ;;  %v15556_v38 = vld [vmem:[#allocation140_spill] sm:$0xff] }
 0x175   : > { %v12166_v9 = vadd.f32 %v12036_v25, %v12033_v34  ;;  %vm657_vm13 = vcmp.eq.s32.totalorder %v11798_v56, %v15549_v6  ;;  %vm658_vm14 = vcmp.eq.s32.totalorder %v11842_v3, %v15549_v6  ;;  %vm719_vm6 = vcmp.eq.s32.totalorder %v11798_v56, %v12118_v29  ;;  %v15551_v34 = vld [vmem:[#allocation137_spill] sm:$0xff] }
 0x176   : > { %982 = vadd.xlane.f32.xlu0 %v12044_v15  ;;  %v1043_v2 = vsel %vm701_vm12, %v15550_v16, 0.0  ;;  %vm705_vm4 = vcmp.eq.s32.totalorder %v11798_v56, %v11997_v62  ;;  %vm710_vm10 = vcmp.eq.s32.totalorder %v11842_v3, %v12070_v13  ;;  %vm706_vm11 = vcmp.eq.s32.totalorder %v11842_v3, %v11997_v62 }
 0x177   : > { %vm709_vm8 = vcmp.eq.s32.totalorder %v11798_v56, %v12070_v13  ;;  %v1052_v25 = vsel %vm710_vm10, %v15551_v34, 0.0  ;;  %v12187_v15 = vadd.f32 %v12064_v39, %v12058_v52  ;;  %961 = vadd.xlane.f32.xlu1 %v960_v47  ;;  %v1044_v60 = vsel %vm702_vm7, %v15553_v55, 0.0  ;;  %v12199_v34 = vld [vmem:[%s10830_s7 + $0x38] sm:$0xff]  ;;  %v15557_v52 = vld [vmem:[#allocation134_spill] sm:$0xff]  ;;  %v15559_v47 = vld [vmem:[#allocation143_spill] sm:$0xff] }
 0x178   : > { %vm713_vm15 = vcmp.eq.s32.totalorder %v11798_v56, %v635_v41  ;;  %vm714_vm12 = vcmp.eq.s32.totalorder %v11842_v3, %v635_v41  ;;  %v12192_v19 = vadd.f32 %v1024_v45, %v1023_v44  ;;  %v1047_v27 = vsel %vm705_vm4, %v15555_v28, 0.0  ;;  %v15558_v44 = vld [vmem:[#allocation135_spill] sm:$0xff] }
 0x179   : > { %15552 = vst [vmem:[#allocation86_spill] sm:$0xff] %v12187_v15  ;;  %v1056_v16 = vsel %vm714_vm12, %v15556_v38, 0.0  ;;  %vm717_vm3 = vcmp.eq.s32.totalorder %v11798_v56, %v641_v37  ;;  %vm718_vm10 = vcmp.eq.s32.totalorder %v11842_v3, %v641_v37  ;;  %vm1184_vm0 = vcmp.ne.s32.totalorder %v12199_v34, 4294967196  ;;  %v15560_v37 = vld [vmem:[#allocation138_spill] sm:$0xff] }
 0x17a   : > { %15554 = vst [vmem:[#allocation87_spill] sm:$0xff] %v12192_v19  ;;  %1064 = vadd.xlane.f32.xlu0 %v12076_v12  ;;  %v1048_v39 = vsel %vm706_vm11, %v15557_v52, 0.0  ;;  %v1051_v45 = vsel %vm709_vm8, %v15558_v44, 0.0  ;;  %v1060_v41 = vsel %vm718_vm10, %v15559_v47, 0.0  ;;  %v12212_v55 = vadd.f32 %v1028_v33, %v1027_v42  ;;  %v15561_v38 = vld [vmem:[#allocation142_spill] sm:$0xff]  ;;  %v15576_v44 = vld [vmem:[#allocation11_spill] sm:$0xff] }
 0x17b   : > { %v1055_v28 = vsel %vm713_vm15, %v15560_v37, 0.0  ;;  %v1059_v19 = vsel %vm717_vm3, %v15561_v38, 0.0  ;;  %v12216_v15 = vadd.f32 %v1032_v20, %v1031_v35  ;;  %v12218_v12 = vadd.f32 %v1036_v8, %v1035_v48  ;;  %967 = vadd.xlane.f32.xlu1 %v12114_v43  ;;  %v15572_v8 = vld [vmem:[#allocation147_spill] sm:$0xff]  ;;  %v15578_v37 = vld [vmem:[#allocation30_spill] sm:$0xff] }
 0x17c   : > { %v1061_v62 = vsel %vm719_vm6, %v11833_v32, 0.0  ;;  %v12225_v13 = vadd.f32 %v1040_v4, %v1039_v14  ;;  %v12227_v52 = vadd.f32 %v1044_v60, %v1043_v2  ;;  %v12231_v42 = vadd.f32 %v11959_v57, %v11953_v5  ;;  %v15574_v60 = vld [vmem:[#allocation100_spill] sm:$0xff] }
 0x17d   : > { %v12233_v33 = vadd.f32 %v1048_v39, %v1047_v27  ;;  %v12237_v35 = vadd.f32 %v11974_v21, %v11969_v24  ;;  %v12239_v43 = vadd.f32 %v1052_v25, %v1051_v45  ;;  %v12243_v29 = vadd.f32 %v12000_v1, %v11990_v10 }
 0x17e   : > { %1070 = vadd.xlane.f32.xlu0 %v12102_v22  ;;  %v12246_v32 = vadd.f32 %v1056_v16, %v1055_v28  ;;  %v12250_v5 = vadd.f32 %v12021_v40, %v12012_v54  ;;  %v12252_v57 = vadd.f32 %v1060_v41, %v1059_v19  ;;  %v12256_v24 = vadd.f32 %v11995_v0, %v12047_v50  ;;  %v15562_v40 = vld [vmem:[#allocation136_spill] sm:$0xff] }
 0x17f   : > { %v12260_v21 = vadd.f32 %v12028_v17, %v12083_v26  ;;  %v12264_v1 = vadd.f32 %v12052_v58, %v12105_v49  ;;  %v12268_v10 = vadd.f32 %v12090_v30, %v12121_v11  ;;  %v12271_v54 = vadd.f32 %v12108_v63, %v1053_v18  ;;  %973 = vadd.xlane.f32.xlu1 %v12146_v51  ;;  %v15563_v58 = vld [vmem:[#allocation139_spill] sm:$0xff]  ;;  %v15564_v49 = vld [vmem:[#allocation101_spill] sm:$0xff]  ;;  %v15566_v11 = vld [vmem:[#allocation110_spill] sm:$0xff] }
 0x180   : > { %v5912_v22 = vcombine.high %v15562_v40, %v15562_v40  ;;  %v1075_v0 = vadd.f32 %v11944_v23, %v11938_v61  ;;  %v12279_v50 = vadd.f32 %v12134_v59, %v1057_v31  ;;  %v12282_v17 = vadd.f32 %v12149_v7, %v1061_v62  ;;  %v15565_v61 = vld [vmem:[#allocation102_spill] sm:$0xff]  ;;  %v15570_v7 = vld [vmem:[#allocation109_spill] sm:$0xff]  ;;  %v15575_v16 = vld [vmem:[#allocation44_spill] sm:$0xff] }
 0x181   : > { %v6338_v26 = vcombine.high %v15563_v58, %v15563_v58  ;;  %v6345_v30 = vrot.slane %v15563_v58, %v10938_v53  ;;  %v999_v63 = vsel %vm657_vm13, %v15564_v49, 0.0  ;;  %v1000_v23 = vsel %vm658_vm14, %v15565_v61, 0.0  ;;  %v15567_v59 = vld [vmem:[#allocation114_spill] sm:$0xff]  ;;  %v15571_v18 = vld [vmem:[#allocation117_spill] sm:$0xff]  ;;  %v15577_v41 = vld [vmem:[#allocation116_spill] sm:$0xff] }
 0x182   : > { %v15568_v20 = vcombine.high %v15566_v11, %v15567_v59  ;;  %vm661_vm3 = vcmp.eq.s32.totalorder %v11798_v56, %v15570_v7  ;;  %vm662_vm7 = vcmp.eq.s32.totalorder %v11842_v3, %v15570_v7  ;;  %1076 = vadd.xlane.f32.xlu0 %v1075_v0  ;;  %v978_v48 = vadd.f32 %v15571_v18, %v11984_v36  ;;  %v15580_v0 = vld [vmem:[#allocation93_spill] sm:$0xff]  ;;  %v15581_v49 = vld [vmem:[#allocation16_spill] sm:$0xff]  ;;  %v15583_v59 = vld [vmem:[#allocation14_spill] sm:$0xff] }
 0x183   : > { %v5913_v31 = vcombine.high %v15572_v8, %v15572_v8  ;;  %v5920_v14 = vrot.slane %v15562_v40, %v10938_v53  ;;  %v12314_v4 = vrot.slane %v15572_v8, %v10938_v53  ;;  %v15573_v6 = vmov 0.0   ;;  %v15579_v40 = vld [vmem:[#allocation92_spill] sm:$0xff]  ;;  %v12357_v18 = vld [vmem:[%s10830_s7 + $0x40] sm:$0xff] }
 0x184   : > { %v12300_v51 = vrot.slane %v15568_v20, %v10938_v53  ;;  %v9891_v2 = vsel %vm1184_vm0, 1.0, %v15573_v6  ;;  %v5934_v25 = vrot.slane %v5912_v22, %v10938_v53  ;;  %vm647_vm13 = vcmp.eq.s32.totalorder %v11798_v56, %v15574_v60  ;;  %979 = vadd.xlane.f32.xlu1 %v978_v48  ;;  %v15584_v48 = vld [vmem:[#allocation120_spill] sm:$0xff] }
 0x185   : > { %vm648_vm14 = vcmp.eq.s32.totalorder %v11842_v3, %v15574_v60  ;;  %v1081_v36 = vadd.f32 %v1000_v23, %v999_v63  ;;  %v6352_v19 = vrot.slane %v6338_v26, %v10938_v53  ;;  %v6353_v27 = vcombine.high %v6345_v30, %v6345_v30  ;;  %v15582_v23 = vld [vmem:[#allocation17_spill] sm:$0xff]  ;;  %v15586_v60 = vld [vmem:[#allocation84_spill] sm:$0xff] }
 0x186   : > { %15569 = vst [vmem:[#allocation112_spill] sm:$0xff] %v12300_v51  ;;  %v1003_v39 = vsel %vm661_vm3, %v15575_v16, 0.0  ;;  %v1004_v45 = vsel %vm662_vm7, %v15576_v44, 0.0  ;;  %v12328_v47 = vrot.slane %v6345_v30, %v10938_v53  ;;  %vm665_vm6 = vcmp.eq.s32.totalorder %v11798_v56, %v15577_v41  ;;  %v12341_v30 = vld [vmem:[%s10830_s7 + $0x88] sm:$0xff] }
 0x187   : > { %vm666_vm4 = vcmp.eq.s32.totalorder %v11842_v3, %v15577_v41  ;;  %1082 = vadd.xlane.f32.xlu0 %v1081_v36  ;;  %v984_v28 = vadd.f32 %v12042_v46, %v15578_v37  ;;  %v5946_v38 = vcombine.high %v9891_v2, %v9891_v2  ;;  %v5953_v62 = vrot.slane %v9891_v2, %v10938_v53  ;;  %v15585_v2 = vld [vmem:[#allocation82_spill] sm:$0xff]  ;;  %v15589_v37 = vld [vmem:[#allocation19_spill] sm:$0xff] }
 0x188   : > { %v989_v22 = vsel %vm647_vm13, %v15579_v40, 0.0  ;;  %v990_v58 = vsel %vm648_vm14, %v15580_v0, 0.0  ;;  %v5941_v26 = vrot.slane %v5913_v31, %v10938_v53  ;;  %vm15248_vm11 = vcmp.ne.s32.totalorder %v12341_v30, 4294967196 }
 0x189   : > { %vm651_vm8 = vcmp.eq.s32.totalorder %v11798_v56, %v15581_v49  ;;  %vm652_vm15 = vcmp.eq.s32.totalorder %v11842_v3, %v15581_v49  ;;  %v1087_v46 = vadd.f32 %v1004_v45, %v1003_v39  ;;  %985 = vadd.xlane.f32.xlu1 %v984_v28  ;;  %v7759_v63 = vcombine.low %v5920_v14, %v5934_v25  ;;  %v15587_v39 = vld [vmem:[#allocation25_spill] sm:$0xff]  ;;  %v15588_v45 = vld [vmem:[#allocation48_spill] sm:$0xff] }
 0x18a   : > { %v9934_v61 = vcombine.high %v5920_v14, %v5934_v25  ;;  %v1007_v11 = vsel %vm665_vm6, %v15582_v23, 0.0  ;;  %v1008_v20 = vsel %vm666_vm4, %v15583_v59, 0.0  ;;  %v6354_v7 = vcombine.high %v6352_v19, %v6352_v19 }
 0x18b   : > { %vm1185_vm12 = vcmp.ne.s32.totalorder %v12357_v18, 4294967196  ;;  %vm669_vm10 = vcmp.eq.s32.totalorder %v11798_v56, %v15584_v48  ;;  %vm670_vm3 = vcmp.eq.s32.totalorder %v11842_v3, %v15584_v48  ;;  %1088 = vadd.xlane.f32.xlu0 %v1087_v46  ;;  %v1066_v8 = vadd.f32 %v990_v58, %v989_v22  ;;  %v15592_v46 = vld [vmem:[#allocation89_spill] sm:$0xff]  ;;  %v15594_v48 = vld [vmem:[#allocation32_spill] sm:$0xff] }
 0x18c   : > { %v6368_v31 = vrot.slane %v6352_v19, %v10938_v53  ;;  %v6375_v14 = vrot.slane %v6353_v27, %v10938_v53  ;;  %v993_v25 = vsel %vm651_vm8, %v15585_v2, 0.0  ;;  %v994_v36 = vsel %vm652_vm15, %v15586_v60, 0.0 }
 0x18d   : > { %v5960_v16 = vrot.slane %v5946_v38, %v10938_v53  ;;  %vm655_vm7 = vcmp.eq.s32.totalorder %v11798_v56, %v15587_v39  ;;  %vm656_vm13 = vcmp.eq.s32.totalorder %v11842_v3, %v15587_v39  ;;  %v1093_v19 = vadd.f32 %v1008_v20, %v1007_v11  ;;  %1067 = vadd.xlane.f32.xlu1 %v1066_v8  ;;  %v15593_v11 = vld [vmem:[#allocation91_spill] sm:$0xff] }
 0x18e   : > { %v7761_v27 = vcombine.low %v12314_v4, %v5941_v26  ;;  %v5961_v44 = vcombine.high %v5953_v62, %v5953_v62  ;;  %v1011_v41 = vsel %vm669_vm10, %v15588_v45, 0.0  ;;  %v1012_v28 = vsel %vm670_vm3, %v15589_v37, 0.0 }
 0x18f   : > { %v9935_v40 = vcombine.high %v12314_v4, %v5941_v26  ;;  %v12384_v22 = vrot.slane %v7759_v63, %v10938_v53  ;;  %v6382_v38 = vrot.slane %v6354_v7, %v10938_v53  ;;  %1094 = vadd.xlane.f32.xlu0 %v1093_v19  ;;  %v1072_v0 = vadd.f32 %v994_v36, %v993_v25  ;;  %v15597_v36 = vld [vmem:[#allocation94_spill] sm:$0xff] }
 0x190   : > { %v12388_v58 = vrot.slane %v9934_v61, %v10938_v53  ;;  %v8200_v49 = vcombine.low %v12328_v47, %v6375_v14  ;;  %v997_v23 = vsel %vm655_vm7, %v15592_v46, 0.0  ;;  %v998_v59 = vsel %vm656_vm13, %v15593_v11, 0.0  ;;  %v15604_v11 = vld [vmem:[#allocation98_spill] sm:$0xff] }
 0x191   : > { %15590 = vst [vmem:[#allocation96_spill] sm:$0xff] %v12384_v22  ;;  %v9952_v20 = vcombine.high %v12328_v47, %v6375_v14  ;;  %vm659_vm14 = vcmp.eq.s32.totalorder %v11798_v56, %v15594_v48  ;;  %vm660_vm6 = vcmp.eq.s32.totalorder %v11842_v3, %v15594_v48  ;;  %v1099_v4 = vadd.f32 %v1012_v28, %v1011_v41  ;;  %v15599_v41 = vld [vmem:[#allocation45_spill] sm:$0xff] }
 0x192   : > { %15591 = vst [vmem:[#allocation97_spill] sm:$0xff] %v12388_v58  ;;  %1073 = vadd.xlane.f32.xlu1 %v1072_v0  ;;  %v12399_v26 = vrot.slane %v7761_v27, %v10938_v53  ;;  %v5962_v63 = vcombine.high %v5960_v16, %v5960_v16  ;;  %v5969_v61 = vrot.slane %v5953_v62, %v10938_v53  ;;  %v9901_v7 = vsel %vm15248_vm11, 1.0, %v15573_v6  ;;  %v15598_v62 = vld [vmem:[#allocation95_spill] sm:$0xff] }
 0x193   : > { %v8202_v8 = vcombine.low %v6368_v31, %v6382_v38  ;;  %v9953_v47 = vcombine.high %v6368_v31, %v6382_v38  ;;  %v5983_v14 = vrot.slane %v5961_v44, %v10938_v53  ;;  %1100 = vadd.xlane.f32.xlu0 %v1099_v4  ;;  %v1078_v2 = vadd.f32 %v998_v59, %v997_v23 }
 0x194   : > { %15595 = vst [vmem:[#allocation51_spill] sm:$0xff] %v12399_v26  ;;  %v12407_v25 = vrot.slane %v9935_v40, %v10938_v53  ;;  %v9892_v60 = vsel %vm1185_vm12, 1.0, %v15573_v6  ;;  %v1001_v39 = vsel %vm659_vm14, %v15597_v36, 0.0  ;;  %v1002_v19 = vsel %vm660_vm6, %v15598_v62, 0.0  ;;  %v15609_v36 = vld [vmem:[#allocation86_spill] sm:$0xff] }
 0x195   : > { %v6436_v27 = vcombine.high %v9901_v7, %v9901_v7  ;;  %v6443_v45 = vrot.slane %v9901_v7, %v10938_v53  ;;  %vm663_vm4 = vcmp.eq.s32.totalorder %v11798_v56, %v15599_v41  ;;  %vm664_vm8 = vcmp.eq.s32.totalorder %v11842_v3, %v15599_v41  ;;  %v15612_v41 = vld [vmem:[#allocation13_spill] sm:$0xff] }
 0x196   : > { %15596 = vst [vmem:[#allocation24_spill] sm:$0xff] %v12407_v25  ;;  %1079 = vadd.xlane.f32.xlu1 %v1078_v2  ;;  %v12420_v31 = vrot.slane %v8200_v49, %v10938_v53  ;;  %v12423_v44 = vrot.slane %v9952_v20, %v10938_v53  ;;  %v12426_v37 = vrot.slane %v5960_v16, %v10938_v53  ;;  %v1005_v59 = vsel %vm663_vm4, %v15604_v11, 0.0  ;;  %v15605_v16 = vld [vmem:[#allocation99_spill] sm:$0xff] }
 0x197   : > { %v12429_v28 = vrot.slane %v5962_v63, %v10938_v53  ;;  %v12432_v40 = vrot.slane %v8202_v8, %v10938_v53  ;;  %v12435_v38 = vrot.slane %v9953_v47, %v10938_v53  ;;  %v7808_v0 = vcombine.low %v5969_v61, %v5983_v14  ;;  %1106 = vadd.xlane.f32.xlu0 %v12166_v9  ;;  %v15606_v63 = vld [vmem:[#allocation18_spill] sm:$0xff]  ;;  %v12451_v8 = vld [vmem:[%s10830_s7 + $0x98] sm:$0xff] }
 0x198   : > { %15600 = vst [vmem:[#allocation121_spill] sm:$0xff] %v12420_v31  ;;  %15601 = vst [vmem:[#allocation53_spill] sm:$0xff] %v12423_v44  ;;  %v1084_v49 = vadd.f32 %v1002_v19, %v1001_v39  ;;  %v9936_v46 = vcombine.high %v5969_v61, %v5983_v14  ;;  %v5995_v23 = vcombine.high %v9892_v60, %v9892_v60  ;;  %v1006_v20 = vsel %vm664_vm8, %v15605_v16, 0.0  ;;  %v15611_v19 = vld [vmem:[#allocation103_spill] sm:$0xff] }
 0x199   : > { %15602 = vst [vmem:[#allocation29_spill] sm:$0xff] %v12432_v40  ;;  %15603 = vst [vmem:[#allocation55_spill] sm:$0xff] %v12435_v38  ;;  %v6450_v48 = vrot.slane %v6436_v27, %v10938_v53  ;;  %v6451_v4 = vcombine.high %v6443_v45, %v6443_v45  ;;  %vm667_vm15 = vcmp.eq.s32.totalorder %v11798_v56, %v15606_v63  ;;  %vm15247_vm3 = vcmp.ne.s32.totalorder %v12451_v8, 4294967196  ;;  %v12479_v16 = vld [vmem:[%s10830_s7 + $0x50] sm:$0xff] }
 0x19a   : > { %vm668_vm10 = vcmp.eq.s32.totalorder %v11842_v3, %v15606_v63  ;;  %1085 = vadd.xlane.f32.xlu1 %v1084_v49  ;;  %v7810_v9 = vcombine.low %v12426_v37, %v12429_v28  ;;  %v9937_v61 = vcombine.high %v12426_v37, %v12429_v28  ;;  %v6002_v7 = vrot.slane %v9892_v60, %v10938_v53 }
 0x19b   : > { %15607 = vst [vmem:[#allocation115_spill] sm:$0xff] %v12451_v8  ;;  %v12455_v47 = vrot.slane %v7808_v0, %v10938_v53  ;;  %v6459_v14 = vrot.slane %v6443_v45, %v10938_v53  ;;  %v9903_v2 = vsel %vm15247_vm3, 1.0, %v15573_v6  ;;  %1112 = vadd.xlane.f32.xlu0 %v15609_v36  ;;  %v1090_v39 = vadd.f32 %v1006_v20, %v1005_v59  ;;  %v15613_v0 = vld [vmem:[#allocation22_spill] sm:$0xff] }
 0x19c   : > { %v12463_v62 = vrot.slane %v9936_v46, %v10938_v53  ;;  %v6009_v60 = vrot.slane %v5995_v23, %v10938_v53  ;;  %v1009_v27 = vsel %vm667_vm15, %v15611_v19, 0.0  ;;  %v1010_v37 = vsel %vm668_vm10, %v15612_v41, 0.0  ;;  %v12483_v20 = vld [vmem:[%s10830_s7 + $0xa8] sm:$0xff] }
 0x19d   : > { %15608 = vst [vmem:[#allocation31_spill] sm:$0xff] %v12455_v47  ;;  %v6452_v28 = vcombine.high %v6450_v48, %v6450_v48  ;;  %v6473_v45 = vrot.slane %v6451_v4, %v10938_v53  ;;  %vm671_vm7 = vcmp.eq.s32.totalorder %v11798_v56, %v15613_v0  ;;  %vm672_vm13 = vcmp.eq.s32.totalorder %v11842_v3, %v15613_v0  ;;  %v15616_v4 = vld [vmem:[#allocation87_spill] sm:$0xff] }
 0x19e   : > { %15610 = vst [vmem:[#allocation57_spill] sm:$0xff] %v12463_v62  ;;  %1091 = vadd.xlane.f32.xlu1 %v1090_v39  ;;  %v12474_v49 = vrot.slane %v7810_v9, %v10938_v53  ;;  %v6466_v46 = vrot.slane %v6450_v48, %v10938_v53  ;;  %v6010_v23 = vcombine.high %v6002_v7, %v6002_v7  ;;  %vm1187_vm14 = vcmp.ne.s32.totalorder %v12479_v16, 4294967196  ;;  %v15617_v9 = vld [vmem:[#allocation12_spill] sm:$0xff]  ;;  %v15618_v39 = vld [vmem:[#allocation46_spill] sm:$0xff] }
 0x19f   : > { %v6534_v11 = vcombine.high %v9903_v2, %v9903_v2  ;;  %v6541_v59 = vrot.slane %v9903_v2, %v10938_v53  ;;  %15615 = vst [vmem:[#allocation50_spill] sm:$0xff] %v12483_v20  ;;  %vm15245_vm6 = vcmp.ne.s32.totalorder %v12483_v20, 4294967196  ;;  %1118 = vadd.xlane.f32.xlu0 %v15616_v4  ;;  %v1096_v63 = vadd.f32 %v1010_v37, %v1009_v27  ;;  %v15619_v4 = vld [vmem:[#allocation26_spill] sm:$0xff] }
 0x1a0   : > { %15614 = vst [vmem:[#allocation108_spill] sm:$0xff] %v12474_v49  ;;  %v6011_v36 = vcombine.high %v6009_v60, %v6009_v60  ;;  %v9894_v48 = vsel %vm1187_vm14, 1.0, %v15573_v6  ;;  %v1013_v2 = vsel %vm671_vm7, %v15617_v9, 0.0  ;;  %v1014_v19 = vsel %vm672_vm13, %v15618_v39, 0.0 }
 0x1a1   : > { %v6480_v41 = vrot.slane %v6452_v28, %v10938_v53  ;;  %v8298_v40 = vcombine.low %v6459_v14, %v6473_v45  ;;  %vm675_vm4 = vcmp.eq.s32.totalorder %v11798_v56, %v15619_v4  ;;  %vm676_vm8 = vcmp.eq.s32.totalorder %v11842_v3, %v15619_v4  ;;  %v15620_v3 = vld [vmem:[#allocation15_spill] sm:$0xff] }
 0x1a2   : > { %1097 = vadd.xlane.f32.xlu1 %v1096_v63  ;;  %v9956_v27 = vcombine.high %v6459_v14, %v6473_v45  ;;  %v6018_v37 = vrot.slane %v6002_v7, %v10938_v53  ;;  %v6032_v9 = vrot.slane %v6010_v23, %v10938_v53  ;;  %v6548_v38 = vrot.slane %v6534_v11, %v10938_v53  ;;  %v15621_v14 = vld [vmem:[#allocation20_spill] sm:$0xff] }
 0x1a3   : > { %v6025_v0 = vrot.slane %v6009_v60, %v10938_v53  ;;  %v6549_v39 = vcombine.high %v6541_v59, %v6541_v59  ;;  %v6093_v31 = vcombine.high %v9894_v48, %v9894_v48  ;;  %1124 = vadd.xlane.f32.xlu0 %v12212_v55  ;;  %v1102_v28 = vadd.f32 %v1014_v19, %v1013_v2 }
 0x1a4   : > { %v6039_v56 = vrot.slane %v6011_v36, %v10938_v53  ;;  %v6100_v44 = vrot.slane %v9894_v48, %v10938_v53  ;;  %v1017_v63 = vsel %vm675_vm4, %v15620_v3, 0.0  ;;  %v1018_v45 = vsel %vm676_vm8, %v15621_v14, 0.0 }
 0x1a5   : > { %v12513_v7 = vrot.slane %v9937_v61, %v10938_v53  ;;  %v8300_v23 = vcombine.low %v6466_v46, %v6480_v41  ;;  %v9957_v11 = vcombine.high %v6466_v46, %v6480_v41  ;;  %v9905_v60 = vsel %vm15245_vm6, 1.0, %v15573_v6 }
 0x1a6   : > { %1103 = vadd.xlane.f32.xlu1 %v1102_v28  ;;  %v12519_v55 = vrot.slane %v8298_v40, %v10938_v53  ;;  %v7857_v36 = vcombine.low %v6018_v37, %v6032_v9  ;;  %v9938_v48 = vcombine.high %v6018_v37, %v6032_v9  ;;  %v6550_v2 = vcombine.high %v6548_v38, %v6548_v38 }
 0x1a7   : > { %15622 = vst [vmem:[#allocation23_spill] sm:$0xff] %v12513_v7  ;;  %v6557_v19 = vrot.slane %v6541_v59, %v10938_v53  ;;  %v6571_v4 = vrot.slane %v6549_v39, %v10938_v53  ;;  %v6107_v61 = vrot.slane %v6093_v31, %v10938_v53  ;;  %1130 = vadd.xlane.f32.xlu0 %v12216_v15  ;;  %v12533_v59 = vld [vmem:[%s10830_s7 + $0x60] sm:$0xff] }
 0x1a8   : > { %15623 = vst [vmem:[#allocation113_spill] sm:$0xff] %v12519_v55  ;;  %v1108_v46 = vadd.f32 %v1018_v45, %v1017_v63  ;;  %v12526_v41 = vrot.slane %v9956_v27, %v10938_v53  ;;  %v7859_v28 = vcombine.low %v6025_v0, %v6039_v56  ;;  %v6108_v3 = vcombine.high %v6100_v44, %v6100_v44 }
 0x1a9   : > { %v6632_v40 = vcombine.high %v9905_v60, %v9905_v60  ;;  %v12529_v14 = vrot.slane %v8300_v23, %v10938_v53  ;;  %v9939_v37 = vcombine.high %v6025_v0, %v6039_v56  ;;  %v6639_v9 = vrot.slane %v9905_v60, %v10938_v53 }
 0x1aa   : > { %15624 = vst [vmem:[#allocation125_spill] sm:$0xff] %v12526_v41  ;;  %vm1189_vm15 = vcmp.ne.s32.totalorder %v12533_v59, 4294967196  ;;  %1109 = vadd.xlane.f32.xlu1 %v1108_v46  ;;  %v12537_v15 = vrot.slane %v9957_v11, %v10938_v53  ;;  %v6564_v31 = vrot.slane %v6548_v38, %v10938_v53  ;;  %v6578_v27 = vrot.slane %v6550_v2, %v10938_v53 }
 0x1ab   : > { %15625 = vst [vmem:[#allocation52_spill] sm:$0xff] %v12529_v14  ;;  %v9896_v39 = vsel %vm1189_vm15, 1.0, %v15573_v6  ;;  %v12545_v56 = vrot.slane %v7857_v36, %v10938_v53  ;;  %v12548_v0 = vrot.slane %v9938_v48, %v10938_v53  ;;  %v8396_v63 = vcombine.low %v6557_v19, %v6571_v4  ;;  %1136 = vadd.xlane.f32.xlu0 %v12218_v12 }
 0x1ac   : > { %15626 = vst [vmem:[#allocation27_spill] sm:$0xff] %v12537_v15  ;;  %v6109_v45 = vcombine.high %v6107_v61, %v6107_v61  ;;  %v12552_v23 = vrot.slane %v7859_v28, %v10938_v53  ;;  %v6116_v38 = vrot.slane %v6100_v44, %v10938_v53  ;;  %v6130_v11 = vrot.slane %v6108_v3, %v10938_v53  ;;  %v12564_v15 = vld [vmem:[%s10830_s7 + $0xb8] sm:$0xff] }
 0x1ad   : > { %15627 = vst [vmem:[#allocation67_spill] sm:$0xff] %v12545_v56  ;;  %15628 = vst [vmem:[#allocation128_spill] sm:$0xff] %v12548_v0  ;;  %v6646_v60 = vrot.slane %v6632_v40, %v10938_v53  ;;  %v12558_v36 = vrot.slane %v9939_v37, %v10938_v53  ;;  %v9960_v2 = vcombine.high %v6557_v19, %v6571_v4  ;;  %vm15242_vm10 = vcmp.ne.s32.totalorder %v12564_v15, 4294967196  ;;  %v12577_v37 = vld [vmem:[%s10830_s7 + $0x70] sm:$0xff] }
 0x1ae   : > { %15629 = vst [vmem:[#allocation54_spill] sm:$0xff] %v12552_v23  ;;  %v6647_v48 = vcombine.high %v6639_v9, %v6639_v9  ;;  %v6191_v46 = vcombine.high %v9896_v39, %v9896_v39  ;;  %1115 = vadd.xlane.f32.xlu1 %v12231_v42  ;;  %v8398_v14 = vcombine.low %v6564_v31, %v6578_v27  ;;  %15631 = vst [vmem:[#allocation124_spill] sm:$0xff] %v12564_v15  ;;  %v12778_v23 = vld [vmem:[%s10830_s7 + $0xf8] sm:$0xff] }
 0x1af   : > { %15630 = vst [vmem:[#allocation106_spill] sm:$0xff] %v12558_v36  ;;  %v6123_v12 = vrot.slane %v6107_v61, %v10938_v53  ;;  %v6198_v28 = vrot.slane %v9896_v39, %v10938_v53  ;;  %v9961_v44 = vcombine.high %v6564_v31, %v6578_v27  ;;  %v12568_v3 = vrot.slane %v8396_v63, %v10938_v53 }
 0x1b0   : > { %v6137_v19 = vrot.slane %v6109_v45, %v10938_v53  ;;  %v9907_v4 = vsel %vm15242_vm10, 1.0, %v15573_v6  ;;  %1142 = vadd.xlane.f32.xlu0 %v12225_v13  ;;  %v7955_v42 = vcombine.low %v6116_v38, %v6130_v11  ;;  %v6648_v61 = vcombine.high %v6646_v60, %v6646_v60  ;;  %15664 = vst [vmem:[#allocation11_spill] sm:$0xff] %v12778_v23 }
 0x1b1   : > { %15632 = vst [vmem:[#allocation56_spill] sm:$0xff] %v12568_v3  ;;  %v6655_v40 = vrot.slane %v6639_v9, %v10938_v53  ;;  %vm1191_vm7 = vcmp.ne.s32.totalorder %v12577_v37, 4294967196  ;;  %v9942_v31 = vcombine.high %v6116_v38, %v6130_v11  ;;  %v6669_v27 = vrot.slane %v6647_v48, %v10938_v53 }
 0x1b2   : > { %v6205_v39 = vrot.slane %v6191_v46, %v10938_v53  ;;  %v9898_v63 = vsel %vm1191_vm7, 1.0, %v15573_v6  ;;  %1121 = vadd.xlane.f32.xlu1 %v12237_v35  ;;  %v12587_v13 = vrot.slane %v9960_v2, %v10938_v53  ;;  %v12590_v9 = vrot.slane %v8398_v14, %v10938_v53 }
 0x1b3   : > { %v6206_v45 = vcombine.high %v6198_v28, %v6198_v28  ;;  %v6730_v3 = vcombine.high %v9907_v4, %v9907_v4  ;;  %v12593_v38 = vrot.slane %v9961_v44, %v10938_v53  ;;  %v7957_v11 = vcombine.low %v6123_v12, %v6137_v19 }
 0x1b4   : > { %15633 = vst [vmem:[#allocation111_spill] sm:$0xff] %v12587_v13  ;;  %15634 = vst [vmem:[#allocation127_spill] sm:$0xff] %v12590_v9  ;;  %v6662_v48 = vrot.slane %v6646_v60, %v10938_v53  ;;  %v6737_v46 = vrot.slane %v9907_v4, %v10938_v53  ;;  %1148 = vadd.xlane.f32.xlu0 %v12227_v52  ;;  %v9943_v35 = vcombine.high %v6123_v12, %v6137_v19  ;;  %v12610_v12 = vld [vmem:[%s10830_s7 + $0xc8] sm:$0xff] }
 0x1b5   : > { %15635 = vst [vmem:[#allocation58_spill] sm:$0xff] %v12593_v38  ;;  %v12599_v2 = vrot.slane %v7955_v42, %v10938_v53  ;;  %v6676_v14 = vrot.slane %v6648_v61, %v10938_v53  ;;  %v6289_v9 = vcombine.high %v9898_v63, %v9898_v63  ;;  %v12603_v13 = vrot.slane %v9942_v31, %v10938_v53 }
 0x1b6   : > { %v8494_v44 = vcombine.low %v6655_v40, %v6669_v27  ;;  %v9964_v38 = vcombine.high %v6655_v40, %v6669_v27  ;;  %v6207_v55 = vcombine.high %v6205_v39, %v6205_v39  ;;  %1127 = vadd.xlane.f32.xlu1 %v12243_v29  ;;  %v6214_v60 = vrot.slane %v6198_v28, %v10938_v53 }
 0x1b7   : > { %15636 = vst [vmem:[#allocation118_spill] sm:$0xff] %v12599_v2  ;;  %15637 = vst [vmem:[#allocation132_spill] sm:$0xff] %v12603_v13  ;;  %v6228_v4 = vrot.slane %v6206_v45, %v10938_v53  ;;  %v6744_v52 = vrot.slane %v6730_v3, %v10938_v53  ;;  %vm15241_vm13 = vcmp.ne.s32.totalorder %v12610_v12, 4294967196  ;;  %v12614_v19 = vrot.slane %v7957_v11, %v10938_v53 }
 0x1b8   : > { %15638 = vst [vmem:[#allocation62_spill] sm:$0xff] %v12610_v12  ;;  %v6745_v42 = vcombine.high %v6737_v46, %v6737_v46  ;;  %v6296_v61 = vrot.slane %v9898_v63, %v10938_v53  ;;  %v9909_v29 = vsel %vm15241_vm13, 1.0, %v15573_v6  ;;  %1154 = vadd.xlane.f32.xlu0 %v12233_v33  ;;  %v12622_v28 = vrot.slane %v9943_v35, %v10938_v53 }
 0x1b9   : > { %15639 = vst [vmem:[#allocation123_spill] sm:$0xff] %v12614_v19  ;;  %v8496_v3 = vcombine.low %v6662_v48, %v6676_v14  ;;  %v9965_v40 = vcombine.high %v6662_v48, %v6676_v14  ;;  %v6303_v31 = vrot.slane %v6289_v9, %v10938_v53  ;;  %v12626_v27 = vrot.slane %v8494_v44, %v10938_v53  ;;  %v12637_v44 = vld [vmem:[%s10830_s7 + $0x80] sm:$0xff] }
 0x1ba   : > { %15640 = vst [vmem:[#allocation68_spill] sm:$0xff] %v12622_v28  ;;  %v12629_v45 = vrot.slane %v9964_v38, %v10938_v53  ;;  %v6221_v63 = vrot.slane %v6205_v39, %v10938_v53  ;;  %v6235_v11 = vrot.slane %v6207_v55, %v10938_v53  ;;  %1133 = vadd.xlane.f32.xlu1 %v12250_v5  ;;  %vm1193_vm4 = vcmp.ne.s32.totalorder %v12637_v44, 4294967196 }
 0x1bb   : > { %15641 = vst [vmem:[#allocation126_spill] sm:$0xff] %v12626_v27  ;;  %v8053_v33 = vcombine.low %v6214_v60, %v6228_v4  ;;  %v9946_v35 = vcombine.high %v6214_v60, %v6228_v4  ;;  %v6746_v41 = vcombine.high %v6744_v52, %v6744_v52  ;;  %v6828_v51 = vcombine.high %v9909_v29, %v9909_v29 }
 0x1bc   : > { %15642 = vst [vmem:[#allocation105_spill] sm:$0xff] %v12629_v45  ;;  %v6753_v48 = vrot.slane %v6737_v46, %v10938_v53  ;;  %v6767_v9 = vrot.slane %v6745_v42, %v10938_v53  ;;  %v6304_v14 = vcombine.high %v6296_v61, %v6296_v61  ;;  %1160 = vadd.xlane.f32.xlu0 %v12239_v43  ;;  %v9900_v38 = vsel %vm1193_vm4, 1.0, %v15573_v6  ;;  %v12648_v46 = vpop.xlane.xlu0 %877 }
 0x1bd   : > { %v12642_v39 = vrot.slane %v8496_v3, %v10938_v53  ;;  %v6305_v55 = vcombine.high %v6303_v31, %v6303_v31  ;;  %v6835_v5 = vrot.slane %v9909_v29, %v10938_v53  ;;  %v12651_v60 = vrot.slane %v9965_v40, %v10938_v53 }
 0x1be   : > { %v8055_v4 = vcombine.low %v6221_v63, %v6235_v11  ;;  %v9947_v42 = vcombine.high %v6221_v63, %v6235_v11  ;;  %v6760_v43 = vrot.slane %v6744_v52, %v10938_v53  ;;  %1139 = vadd.xlane.f32.xlu1 %v12256_v24  ;;  %v12656_v3 = vrot.slane %v8053_v33, %v10938_v53  ;;  %v12669_v33 = vld [vmem:[%s10830_s7 + $0xd8] sm:$0xff] }
 0x1bf   : > { %15643 = vst [vmem:[#allocation130_spill] sm:$0xff] %v12642_v39  ;;  %15644 = vst [vmem:[#allocation137_spill] sm:$0xff] %v12651_v60  ;;  %v12659_v29 = vrot.slane %v9946_v35, %v10938_v53  ;;  %v6774_v39 = vrot.slane %v6746_v41, %v10938_v53  ;;  %v6842_v27 = vrot.slane %v6828_v51, %v10938_v53  ;;  %vm15240_vm8 = vcmp.ne.s32.totalorder %v12669_v33, 4294967196 }
 0x1c0   : > { %15645 = vst [vmem:[#allocation131_spill] sm:$0xff] %v12656_v3  ;;  %v8592_v45 = vcombine.low %v6753_v48, %v6767_v9  ;;  %v6312_v40 = vrot.slane %v6296_v61, %v10938_v53  ;;  %v6326_v60 = vrot.slane %v6304_v14, %v10938_v53  ;;  %v6387_v63 = vcombine.high %v9900_v38, %v9900_v38  ;;  %v12672_v41 = vpop.xlane.xlu0 %880 }
 0x1c1   : > { %15646 = vst [vmem:[#allocation133_spill] sm:$0xff] %v12659_v29  ;;  %1166 = vadd.xlane.f32.xlu0 %v12246_v32  ;;  %v6319_v24 = vrot.slane %v6303_v31, %v10938_v53  ;;  %v6333_v52 = vrot.slane %v6305_v55, %v10938_v53  ;;  %v6843_v11 = vcombine.high %v6835_v5, %v6835_v5  ;;  %15647 = vst [vmem:[#allocation140_spill] sm:$0xff] %v12669_v33 }
 0x1c2   : > { %v12675_v51 = vrot.slane %v8055_v4, %v10938_v53  ;;  %v9968_v61 = vcombine.high %v6753_v48, %v6767_v9  ;;  %v6394_v35 = vrot.slane %v9900_v38, %v10938_v53  ;;  %v9911_v32 = vsel %vm15240_vm8, 1.0, %v15573_v6  ;;  %1145 = vadd.xlane.f32.xlu1 %v12260_v21 }
 0x1c3   : > { %v12683_v31 = vrot.slane %v9947_v42, %v10938_v53  ;;  %v8594_v14 = vcombine.low %v6760_v43, %v6774_v39  ;;  %v9969_v55 = vcombine.high %v6760_v43, %v6774_v39  ;;  %v6844_v3 = vcombine.high %v6842_v27, %v6842_v27 }
 0x1c4   : > { %15648 = vst [vmem:[#allocation134_spill] sm:$0xff] %v12675_v51  ;;  %v12686_v29 = vrot.slane %v8592_v45, %v10938_v53  ;;  %v8151_v4 = vcombine.low %v6312_v40, %v6326_v60  ;;  %v9950_v48 = vcombine.high %v6312_v40, %v6326_v60  ;;  %v6401_v9 = vrot.slane %v6387_v63, %v10938_v53 }
 0x1c5   : > { %15649 = vst [vmem:[#allocation135_spill] sm:$0xff] %v12683_v31  ;;  %1172 = vadd.xlane.f32.xlu0 %v12252_v57  ;;  %v8153_v38 = vcombine.low %v6319_v24, %v6333_v52  ;;  %v6851_v51 = vrot.slane %v6835_v5, %v10938_v53  ;;  %v6865_v21 = vrot.slane %v6843_v11, %v10938_v53  ;;  %v12692_v31 = vpop.xlane.xlu0 %886  ;;  %10220 = vlog2.f32 %v12648_v46 }
 0x1c6   : > { %15650 = vst [vmem:[#allocation143_spill] sm:$0xff] %v12686_v29  ;;  %v6926_v42 = vcombine.high %v9911_v32, %v9911_v32  ;;  %v12695_v39 = vrot.slane %v9968_v61, %v10938_v53  ;;  %v9951_v43 = vcombine.high %v6319_v24, %v6333_v52  ;;  %v6402_v45 = vcombine.high %v6394_v35, %v6394_v35  ;;  %v12698_v29 = vld [vmem:[%s10830_s7 + $0x90] sm:$0xff] }
 0x1c7   : > { %vm1195_vm8 = vcmp.ne.s32.totalorder %v12698_v29, 4294967196  ;;  %1151 = vadd.xlane.f32.xlu1 %v12264_v1  ;;  %v6858_v57 = vrot.slane %v6842_v27, %v10938_v53  ;;  %v6872_v5 = vrot.slane %v6844_v3, %v10938_v53  ;;  %v6933_v60 = vrot.slane %v9911_v32, %v10938_v53 }
 0x1c8   : > { %15651 = vst [vmem:[#allocation138_spill] sm:$0xff] %v12695_v39  ;;  %v9902_v40 = vsel %vm1195_vm8, 1.0, %v15573_v6  ;;  %v12709_v63 = vrot.slane %v8594_v14, %v10938_v53  ;;  %v12712_v24 = vrot.slane %v9969_v55, %v10938_v53  ;;  %v12715_v52 = vrot.slane %v8151_v4, %v10938_v53  ;;  %v12733_v39 = vld [vmem:[%s10830_s7 + $0xe8] sm:$0xff] }
 0x1c9   : > { %v6403_v1 = vcombine.high %v6401_v9, %v6401_v9  ;;  %v12718_v27 = vrot.slane %v9950_v48, %v10938_v53  ;;  %v12721_v3 = vrot.slane %v8153_v38, %v10938_v53  ;;  %v8690_v11 = vcombine.low %v6851_v51, %v6865_v21  ;;  %v12724_v32 = vpop.xlane.xlu0 %892  ;;  %15658 = vst [vmem:[#allocation114_spill] sm:$0xff] %v12733_v39 }
 0x1ca   : > { %15652 = vst [vmem:[#allocation142_spill] sm:$0xff] %v12709_v63  ;;  %15653 = vst [vmem:[#allocation136_spill] sm:$0xff] %v12712_v24  ;;  %v6940_v61 = vrot.slane %v6926_v42, %v10938_v53  ;;  %v9972_v14 = vcombine.high %v6851_v51, %v6865_v21  ;;  %v6410_v55 = vrot.slane %v6394_v35, %v10938_v53  ;;  %vm15243_vm13 = vcmp.ne.s32.totalorder %v12733_v39, 4294967196 }
 0x1cb   : > { %15654 = vst [vmem:[#allocation139_spill] sm:$0xff] %v12715_v52  ;;  %15655 = vst [vmem:[#allocation101_spill] sm:$0xff] %v12718_v27  ;;  %v6424_v63 = vrot.slane %v6402_v45, %v10938_v53  ;;  %v6485_v4 = vcombine.high %v9902_v40, %v9902_v40  ;;  %1157 = vadd.xlane.f32.xlu1 %v12268_v10  ;;  %v12730_v48 = vrot.slane %v9951_v43, %v10938_v53 }
 0x1cc   : > { %15656 = vst [vmem:[#allocation102_spill] sm:$0xff] %v12721_v3  ;;  %v8692_v24 = vcombine.low %v6858_v57, %v6872_v5  ;;  %v6941_v38 = vcombine.high %v6933_v60, %v6933_v60  ;;  %v9973_v42 = vcombine.high %v6858_v57, %v6872_v5  ;;  %v6417_v51 = vrot.slane %v6401_v9, %v10938_v53  ;;  %v12746_v3 = vld [vmem:[%s10830_s7 + $0xa0] sm:$0xff] }
 0x1cd   : > { %15657 = vst [vmem:[#allocation110_spill] sm:$0xff] %v12730_v48  ;;  %v6431_v35 = vrot.slane %v6403_v1, %v10938_v53  ;;  %v9913_v21 = vsel %vm15243_vm13, 1.0, %v15573_v6  ;;  %v12742_v10 = vrot.slane %v8690_v11, %v10938_v53  ;;  %v6942_v43 = vcombine.high %v6940_v61, %v6940_v61  ;;  %v12749_v48 = vpop.xlane.xlu0 %898 }
 0x1ce   : > { %v6492_v45 = vrot.slane %v9902_v40, %v10938_v53  ;;  %vm1197_vm10 = vcmp.ne.s32.totalorder %v12746_v3, 4294967196  ;;  %v12752_v9 = vrot.slane %v9972_v14, %v10938_v53  ;;  %v8249_v57 = vcombine.low %v6410_v55, %v6424_v63  ;;  %v12764_v14 = vpop.xlane.xlu1 %874 }
 0x1cf   : > { %15659 = vst [vmem:[#allocation109_spill] sm:$0xff] %v12742_v10  ;;  %v6499_v5 = vrot.slane %v6485_v4, %v10938_v53  ;;  %v9904_v1 = vsel %vm1197_vm10, 1.0, %v15573_v6  ;;  %1163 = vadd.xlane.f32.xlu1 %v12271_v54  ;;  %v12760_v40 = vrot.slane %v8692_v24, %v10938_v53  ;;  %v6949_v11 = vrot.slane %v6933_v60, %v10938_v53 }
 0x1d0   : > { %15660 = vst [vmem:[#allocation117_spill] sm:$0xff] %v12752_v9  ;;  %v6963_v10 = vrot.slane %v6941_v38, %v10938_v53  ;;  %v7024_v52 = vcombine.high %v9913_v21, %v9913_v21  ;;  %v12767_v9 = vrot.slane %v9973_v42, %v10938_v53  ;;  %v9954_v4 = vcombine.high %v6410_v55, %v6424_v63 }
 0x1d1   : > { %15661 = vst [vmem:[#allocation147_spill] sm:$0xff] %v12760_v40  ;;  %v8251_v27 = vcombine.low %v6417_v51, %v6431_v35  ;;  %v7031_v19 = vrot.slane %v9913_v21, %v10938_v53  ;;  %v6956_v54 = vrot.slane %v6940_v61, %v10938_v53  ;;  %v6970_v24 = vrot.slane %v6942_v43, %v10938_v53  ;;  %v12772_v60 = vpop.xlane.xlu0 %904 }
 0x1d2   : > { %15662 = vst [vmem:[#allocation100_spill] sm:$0xff] %v12767_v9  ;;  %v6500_v40 = vcombine.high %v6492_v45, %v6492_v45  ;;  %v6583_v28 = vcombine.high %v9904_v1, %v9904_v1  ;;  %v9955_v2 = vcombine.high %v6417_v51, %v6431_v35  ;;  %v12775_v38 = vrot.slane %v8249_v57, %v10938_v53  ;;  %v12786_v21 = vpop.xlane.xlu1 %883 }
 0x1d3   : > { %v6501_v13 = vcombine.high %v6499_v5, %v6499_v5  ;;  %vm15244_vm13 = vcmp.ne.s32.totalorder %v12778_v23, 4294967196  ;;  %1169 = vadd.xlane.f32.xlu1 %v12279_v50  ;;  %v8788_v63 = vcombine.low %v6949_v11, %v6963_v10  ;;  %v9976_v55 = vcombine.high %v6949_v11, %v6963_v10 }
 0x1d4   : > { %15663 = vst [vmem:[#allocation44_spill] sm:$0xff] %v12775_v38  ;;  %v7038_v61 = vrot.slane %v7024_v52, %v10938_v53  ;;  %v9915_v42 = vsel %vm15244_vm13, 1.0, %v15573_v6  ;;  %v12789_v51 = vrot.slane %v9954_v4, %v10938_v53  ;;  %v12792_v35 = vrot.slane %v8251_v27, %v10938_v53 }
 0x1d5   : > { %v7039_v43 = vcombine.high %v7031_v19, %v7031_v19  ;;  %v6590_v57 = vrot.slane %v9904_v1, %v10938_v53  ;;  %v8790_v50 = vcombine.low %v6956_v54, %v6970_v24  ;;  %v6508_v10 = vrot.slane %v6492_v45, %v10938_v53  ;;  %v12798_v9 = vpop.xlane.xlu0 %910 }
 0x1d6   : > { %15665 = vst [vmem:[#allocation116_spill] sm:$0xff] %v12789_v51  ;;  %15666 = vst [vmem:[#allocation30_spill] sm:$0xff] %v12792_v35  ;;  %v6522_v52 = vrot.slane %v6500_v40, %v10938_v53  ;;  %v6597_v11 = vrot.slane %v6583_v28, %v10938_v53  ;;  %v12801_v38 = vrot.slane %v9955_v2, %v10938_v53  ;;  %v12812_v51 = vpop.xlane.xlu1 %889  ;;  %10222 = vlog2.f32 %v12672_v41 }
 0x1d7   : > { %v6515_v4 = vrot.slane %v6499_v5, %v10938_v53  ;;  %v6529_v27 = vrot.slane %v6501_v13, %v10938_v53  ;;  %v7122_v35 = vcombine.high %v9915_v42, %v9915_v42  ;;  %1175 = vadd.xlane.f32.xlu1 %v12282_v17  ;;  %v9977_v1 = vcombine.high %v6956_v54, %v6970_v24  ;;  %v12821_v24 = vld [vmem:[%s10830_s7 + $0xb0] sm:$0xff] }
 0x1d8   : > { %15667 = vst [vmem:[#allocation92_spill] sm:$0xff] %v12801_v38  ;;  %v12807_v45 = vrot.slane %v8788_v63, %v10938_v53  ;;  %v12810_v40 = vrot.slane %v9976_v55, %v10938_v53  ;;  %v7040_v28 = vcombine.high %v7038_v61, %v7038_v61  ;;  %v7047_v2 = vrot.slane %v7031_v19, %v10938_v53 }
 0x1d9   : > { %v7061_v5 = vrot.slane %v7039_v43, %v10938_v53  ;;  %v6598_v38 = vcombine.high %v6590_v57, %v6590_v57  ;;  %v7129_v13 = vrot.slane %v9915_v42, %v10938_v53  ;;  %v12818_v36 = vrot.slane %v8790_v50, %v10938_v53  ;;  %v12824_v63 = vpop.xlane.xlu0 %916 }
 0x1da   : > { %15668 = vst [vmem:[#allocation93_spill] sm:$0xff] %v12807_v45  ;;  %15669 = vst [vmem:[#allocation16_spill] sm:$0xff] %v12810_v40  ;;  %v8347_v17 = vcombine.low %v6508_v10, %v6522_v52  ;;  %v6599_v54 = vcombine.high %v6597_v11, %v6597_v11  ;;  %vm1199_vm13 = vcmp.ne.s32.totalorder %v12821_v24, 4294967196  ;;  %v9958_v55 = vcombine.high %v6508_v10, %v6522_v52  ;;  %v12835_v56 = vpop.xlane.xlu1 %895 }
 0x1db   : > { %15670 = vst [vmem:[#allocation17_spill] sm:$0xff] %v12818_v36  ;;  %v8349_v45 = vcombine.low %v6515_v4, %v6529_v27  ;;  %v7136_v19 = vrot.slane %v7122_v35, %v10938_v53  ;;  %v9906_v43 = vsel %vm1199_vm13, 1.0, %v15573_v6  ;;  %v12831_v42 = vrot.slane %v9977_v1, %v10938_v53 }
 0x1dc   : > { %v9959_v50 = vcombine.high %v6515_v4, %v6529_v27  ;;  %v7054_v36 = vrot.slane %v7038_v61, %v10938_v53  ;;  %v7068_v40 = vrot.slane %v7040_v28, %v10938_v53  ;;  %v8886_v0 = vcombine.low %v7047_v2, %v7061_v5 }
 0x1dd   : > { %15671 = vst [vmem:[#allocation14_spill] sm:$0xff] %v12831_v42  ;;  %v6606_v10 = vrot.slane %v6590_v57, %v10938_v53  ;;  %v6620_v52 = vrot.slane %v6598_v38, %v10938_v53  ;;  %v7137_v35 = vcombine.high %v7129_v13, %v7129_v13  ;;  %v6613_v26 = vrot.slane %v6597_v11, %v10938_v53  ;;  %v12842_v4 = vpop.xlane.xlu0 %922 }
 0x1de   : > { %v6627_v25 = vrot.slane %v6599_v54, %v10938_v53  ;;  %v6681_v22 = vcombine.high %v9906_v43, %v9906_v43  ;;  %v6688_v1 = vrot.slane %v9906_v43, %v10938_v53  ;;  %v12845_v61 = vrot.slane %v8347_v17, %v10938_v53  ;;  %v12856_v43 = vpop.xlane.xlu1 %901 }
 0x1df   : > { %v12848_v27 = vrot.slane %v9958_v55, %v10938_v53  ;;  %v12851_v57 = vrot.slane %v8349_v45, %v10938_v53  ;;  %v7138_v38 = vcombine.high %v7136_v19, %v7136_v19  ;;  %v12854_v28 = vrot.slane %v9959_v50, %v10938_v53 }
 0x1e0   : > { %15672 = vst [vmem:[#allocation120_spill] sm:$0xff] %v12845_v61  ;;  %v9980_v11 = vcombine.high %v7047_v2, %v7061_v5  ;;  %v8888_v54 = vcombine.low %v7054_v36, %v7068_v40  ;;  %v9981_v42 = vcombine.high %v7054_v36, %v7068_v40  ;;  %v8445_v58 = vcombine.low %v6606_v10, %v6620_v52  ;;  %v12869_v5 = vld [vmem:[%s10830_s7 + $0x108] sm:$0xff] }
 0x1e1   : > { %15673 = vst [vmem:[#allocation82_spill] sm:$0xff] %v12848_v27  ;;  %15674 = vst [vmem:[#allocation84_spill] sm:$0xff] %v12851_v57  ;;  %v9962_v49 = vcombine.high %v6606_v10, %v6620_v52  ;;  %v7145_v17 = vrot.slane %v7129_v13, %v10938_v53  ;;  %v7159_v55 = vrot.slane %v7137_v35, %v10938_v53  ;;  %vm15246_vm6 = vcmp.ne.s32.totalorder %v12869_v5, 4294967196 }
 0x1e2   : > { %15675 = vst [vmem:[#allocation25_spill] sm:$0xff] %v12854_v28  ;;  %v12861_v61 = vrot.slane %v8886_v0, %v10938_v53  ;;  %v8447_v45 = vcombine.low %v6613_v26, %v6627_v25  ;;  %v6695_v57 = vrot.slane %v6681_v22, %v10938_v53  ;;  %v6696_v50 = vcombine.high %v6688_v1, %v6688_v1  ;;  %v12864_v28 = vpop.xlane.xlu0 %928 }
 0x1e3   : > { %v9963_v2 = vcombine.high %v6613_v26, %v6627_v25  ;;  %v7152_v36 = vrot.slane %v7136_v19, %v10938_v53  ;;  %v7166_v40 = vrot.slane %v7138_v38, %v10938_v53  ;;  %15677 = vst [vmem:[#allocation19_spill] sm:$0xff] %v12869_v5  ;;  %v12873_v13 = vrot.slane %v9980_v11, %v10938_v53  ;;  %v12884_v25 = vpop.xlane.xlu1 %907 }
 0x1e4   : > { %15676 = vst [vmem:[#allocation48_spill] sm:$0xff] %v12861_v61  ;;  %v12876_v0 = vrot.slane %v8888_v54, %v10938_v53  ;;  %v12879_v22 = vrot.slane %v9981_v42, %v10938_v53  ;;  %v9917_v26 = vsel %vm15246_vm6, 1.0, %v15573_v6  ;;  %v12887_v19 = vrot.slane %v8445_v58, %v10938_v53 }
 0x1e5   : > { %15678 = vst [vmem:[#allocation89_spill] sm:$0xff] %v12873_v13  ;;  %v12890_v10 = vrot.slane %v9962_v49, %v10938_v53  ;;  %v8984_v52 = vcombine.low %v7145_v17, %v7159_v55  ;;  %v9984_v35 = vcombine.high %v7145_v17, %v7159_v55  ;;  %v12893_v38 = vrot.slane %v8447_v45, %v10938_v53  ;;  %v12907_v55 = vld [vmem:[%s10830_s7 + $0xc0] sm:$0xff] }
 0x1e6   : > { %15679 = vst [vmem:[#allocation91_spill] sm:$0xff] %v12876_v0  ;;  %15680 = vst [vmem:[#allocation32_spill] sm:$0xff] %v12879_v22  ;;  %v6697_v42 = vcombine.high %v6695_v57, %v6695_v57  ;;  %v6704_v11 = vrot.slane %v6688_v1, %v10938_v53  ;;  %v6718_v54 = vrot.slane %v6696_v50, %v10938_v53  ;;  %v12897_v0 = vpop.xlane.xlu0 %934  ;;  %vm1201_vm6 = vcmp.ne.s32.totalorder %v12907_v55, 4294967196 }
 0x1e7   : > { %15681 = vst [vmem:[#allocation94_spill] sm:$0xff] %v12887_v19  ;;  %15682 = vst [vmem:[#allocation95_spill] sm:$0xff] %v12890_v10  ;;  %v12900_v22 = vrot.slane %v9963_v2, %v10938_v53  ;;  %v8986_v58 = vcombine.low %v7152_v36, %v7166_v40  ;;  %v12903_v61 = vrot.slane %v6695_v57, %v10938_v53  ;;  %v12911_v1 = vpop.xlane.xlu1 %913  ;;  %v9908_v57 = vsel %vm1201_vm6, 1.0, %v15573_v6 }
 0x1e8   : > { %15683 = vst [vmem:[#allocation45_spill] sm:$0xff] %v12893_v38  ;;  %v7220_v49 = vcombine.high %v9917_v26, %v9917_v26  ;;  %v9985_v13 = vcombine.high %v7152_v36, %v7166_v40  ;;  %v7227_v17 = vrot.slane %v9917_v26, %v10938_v53  ;;  %v12914_v45 = vrot.slane %v8984_v52, %v10938_v53 }
 0x1e9   : > { %15684 = vst [vmem:[#allocation98_spill] sm:$0xff] %v12900_v22  ;;  %v12917_v50 = vrot.slane %v9984_v35, %v10938_v53  ;;  %v6725_v2 = vrot.slane %v6697_v42, %v10938_v53  ;;  %v8543_v36 = vcombine.low %v6704_v11, %v6718_v54  ;;  %v9966_v40 = vcombine.high %v6704_v11, %v6718_v54  ;;  %v12932_v35 = vld [vmem:[%s10830_s7 + $0x118] sm:$0xff] }
 0x1ea   : > { %15685 = vst [vmem:[#allocation99_spill] sm:$0xff] %v12914_v45  ;;  %10224 = vlog2.f32 %v12692_v31  ;;  %v12925_v46 = vpop.xlane.xlu0 %940  ;;  %v12928_v26 = vrot.slane %v8986_v58, %v10938_v53  ;;  %v7234_v52 = vrot.slane %v7220_v49, %v10938_v53  ;;  %15688 = vst [vmem:[#allocation103_spill] sm:$0xff] %v12932_v35  ;;  %vm15251_vm3 = vcmp.ne.s32.totalorder %v12932_v35, 4294967196  ;;  %v12947_v49 = vld [vmem:[%s10830_s7 + $0xd0] sm:$0xff] }
 0x1eb   : > { %15686 = vst [vmem:[#allocation18_spill] sm:$0xff] %v12917_v50  ;;  %10226 = vlog2.f32 %v12724_v32  ;;  %v7235_v41 = vcombine.high %v7227_v17, %v7227_v17  ;;  %v6779_v42 = vcombine.high %v9908_v57, %v9908_v57  ;;  %v9919_v11 = vsel %vm15251_vm3, 1.0, %v15573_v6  ;;  %v12940_v31 = vpop.xlane.xlu1 %919 }
 0x1ec   : > { %15687 = vst [vmem:[#allocation86_spill] sm:$0xff] %v12928_v26  ;;  %10228 = vlog2.f32 %v12749_v48  ;;  %v12943_v54 = vrot.slane %v9985_v13, %v10938_v53  ;;  %v6786_v58 = vrot.slane %v9908_v57, %v10938_v53  ;;  %vm15252_vm11 = vcmp.ne.s32.totalorder %v12947_v49, 4294967196 }
 0x1ed   : > { %10230 = vlog2.f32 %v12764_v14  ;;  %v8545_v32 = vcombine.low %v12903_v61, %v6725_v2  ;;  %v9967_v26 = vcombine.high %v12903_v61, %v6725_v2  ;;  %v9910_v48 = vsel %vm15252_vm11, 1.0, %v15573_v6 }
 0x1ee   : > { %15689 = vst [vmem:[#allocation13_spill] sm:$0xff] %v12943_v54  ;;  %10232 = vlog2.f32 %v12772_v60  ;;  %v12957_v13 = vpop.xlane.xlu0 %946  ;;  %v12960_v57 = vrot.slane %v8543_v36, %v10938_v53  ;;  %v7236_v54 = vcombine.high %v7234_v52, %v7234_v52  ;;  %v7318_v45 = vcombine.high %v9919_v11, %v9919_v11 }
 0x1ef   : > { %10234 = vlog2.f32 %v12786_v21  ;;  %v7243_v14 = vrot.slane %v7227_v17, %v10938_v53  ;;  %v7257_v50 = vrot.slane %v7235_v41, %v10938_v53  ;;  %v6793_v61 = vrot.slane %v6779_v42, %v10938_v53  ;;  %v12967_v2 = vpop.xlane.xlu1 %925 }
 0x1f0   : > { %15690 = vst [vmem:[#allocation22_spill] sm:$0xff] %v12960_v57  ;;  %10236 = vlog2.f32 %v12798_v9  ;;  %v12970_v60 = vrot.slane %v9966_v40, %v10938_v53  ;;  %v6794_v38 = vcombine.high %v6786_v58, %v6786_v58  ;;  %v6877_v36 = vcombine.high %v9910_v48, %v9910_v48  ;;  %v12973_v57 = vpop.eup %10220 }
 0x1f1   : > { %10238 = vlog2.f32 %v12812_v51  ;;  %v12976_v21 = vrot.slane %v8545_v32, %v10938_v53  ;;  %v12979_v17 = vrot.slane %v7234_v52, %v10938_v53  ;;  %v7325_v41 = vrot.slane %v9919_v11, %v10938_v53  ;;  %v12985_v40 = vpop.eup %10222 }
 0x1f2   : > { %15691 = vst [vmem:[#allocation87_spill] sm:$0xff] %v12970_v60  ;;  %10240 = vlog2.f32 %v12824_v63  ;;  %v12983_v9 = vpop.xlane.xlu0 %952  ;;  %v7264_v42 = vrot.slane %v7236_v54, %v10938_v53  ;;  %v12989_v51 = vrot.slane %v6786_v58, %v10938_v53  ;;  %v7332_v60 = vrot.slane %v7318_v45, %v10938_v53 }
 0x1f3   : > { %15692 = vst [vmem:[#allocation12_spill] sm:$0xff] %v12976_v21  ;;  %10242 = vlog2.f32 %v12835_v56  ;;  %v9082_v52 = vcombine.low %v7243_v14, %v7257_v50  ;;  %v6795_v21 = vcombine.high %v6793_v61, %v6793_v61  ;;  %v6884_v11 = vrot.slane %v9910_v48, %v10938_v53  ;;  %v932_v63 = vpop.xlane.xlu1 %931 }
 0x1f4   : > { %v12993_v32 = vpop.eup %10224  ;;  %10244 = vlog2.f32 %v12842_v4  ;;  %v9988_v19 = vcombine.high %v7243_v14, %v7257_v50  ;;  %v6816_v54 = vrot.slane %v6794_v38, %v10938_v53  ;;  %v6891_v58 = vrot.slane %v6877_v36, %v10938_v53 }
 0x1f5   : > { %v12997_v22 = vpop.eup %10226  ;;  %10246 = vlog2.f32 %v12856_v43  ;;  %v13005_v56 = vrot.slane %v9967_v26, %v10938_v53  ;;  %v6809_v10 = vrot.slane %v6793_v61, %v10938_v53  ;;  %v7333_v48 = vcombine.high %v7325_v41, %v7325_v41 }
 0x1f6   : > { %v13002_v45 = vpop.eup %10228  ;;  %10248 = vlog2.f32 %v12864_v28  ;;  %v959_v4 = vpop.xlane.xlu0 %958  ;;  %v9084_v50 = vcombine.low %v12979_v17, %v7264_v42  ;;  %v9989_v38 = vcombine.high %v12979_v17, %v7264_v42  ;;  %v7334_v14 = vcombine.high %v7332_v60, %v7332_v60 }
 0x1f7   : > { %15693 = vst [vmem:[#allocation46_spill] sm:$0xff] %v13005_v56  ;;  %v13009_v27 = vpop.eup %10230  ;;  %10250 = vlog2.f32 %v12884_v25  ;;  %v13017_v26 = vrot.slane %v9082_v52, %v10938_v53  ;;  %v6823_v61 = vrot.slane %v6795_v21, %v10938_v53  ;;  %v6892_v36 = vcombine.high %v6884_v11, %v6884_v11  ;;  %v938_v28 = vpop.xlane.xlu1 %937 }
 0x1f8   : > { %v13014_v43 = vpop.eup %10232  ;;  %10252 = vlog2.f32 %v12897_v0  ;;  %v13024_v7 = vrot.slane %v9988_v19, %v10938_v53  ;;  %v8641_v17 = vcombine.low %v12989_v51, %v6816_v54  ;;  %v6893_v42 = vcombine.high %v6891_v58, %v6891_v58 }
 0x1f9   : > { %15694 = vst [vmem:[#allocation26_spill] sm:$0xff] %v13017_v26  ;;  %v13021_v56 = vpop.eup %10234  ;;  %10254 = vlog2.f32 %v12911_v1  ;;  %v9970_v52 = vcombine.high %v12989_v51, %v6816_v54  ;;  %v7341_v21 = vrot.slane %v7325_v41, %v10938_v53  ;;  %v7355_v26 = vrot.slane %v7333_v48, %v10938_v53 }
 0x1fa   : > { %15695 = vst [vmem:[#allocation15_spill] sm:$0xff] %v13024_v7  ;;  %v13028_v25 = vpop.eup %10236  ;;  %10256 = vlog2.f32 %v12925_v46  ;;  %v965_v0 = vpop.xlane.xlu0 %964  ;;  %v13037_v19 = vrot.slane %v9084_v50, %v10938_v53  ;;  %v7348_v7 = vrot.slane %v7332_v60, %v10938_v53  ;;  %v7362_v1 = vrot.slane %v7334_v14, %v10938_v53 }
 0x1fb   : > { %v13034_v47 = vpop.eup %10238  ;;  %10258 = vlog2.f32 %v12940_v31  ;;  %v8643_v51 = vcombine.low %v6809_v10, %v6823_v61  ;;  %v6900_v41 = vrot.slane %v6884_v11, %v10938_v53  ;;  %v6914_v54 = vrot.slane %v6892_v36, %v10938_v53  ;;  %v944_v46 = vpop.xlane.xlu1 %943 }
 0x1fc   : > { %15696 = vst [vmem:[#allocation20_spill] sm:$0xff] %v13037_v19  ;;  %v13042_v62 = vpop.eup %10240  ;;  %10260 = vlog2.f32 %v12957_v13  ;;  %v9971_v50 = vcombine.high %v6809_v10, %v6823_v61  ;;  %v6907_v19 = vrot.slane %v6891_v58, %v10938_v53  ;;  %v6921_v60 = vrot.slane %v6893_v42, %v10938_v53 }
 0x1fd   : > { %v13047_v48 = vpop.eup %10242  ;;  %10262 = vlog2.f32 %v12967_v2  ;;  %v13055_v14 = vrot.slane %v9989_v38, %v10938_v53  ;;  %v13058_v11 = vrot.slane %v8641_v17, %v10938_v53  ;;  %v9180_v36 = vcombine.low %v7341_v21, %v7355_v26 }
 0x1fe   : > { %v13052_v31 = vpop.eup %10244  ;;  %10264 = vlog2.f32 %v12983_v9  ;;  %v971_v13 = vpop.xlane.xlu0 %970  ;;  %v13064_v10 = vrot.slane %v9970_v52, %v10938_v53  ;;  %v9992_v58 = vcombine.high %v7341_v21, %v7355_v26  ;;  %v9182_v61 = vcombine.low %v7348_v7, %v7362_v1 }
 0x1ff   : > { %15697 = vst [vmem:[#allocation148_spill] sm:$0xff] %v13055_v14  ;;  %15698 = vst [vmem:[#allocation149_spill] sm:$0xff] %v13058_v11  ;;  %v13061_v35 = vpop.eup %10246  ;;  %10266 = vlog2.f32 %v932_v63  ;;  %v13069_v38 = vrot.slane %v8643_v51, %v10938_v53  ;;  %v9993_v17 = vcombine.high %v7348_v7, %v7362_v1  ;;  %v8739_v42 = vcombine.low %v6900_v41, %v6914_v54  ;;  %v950_v14 = vpop.xlane.xlu1 %949 }
 0x200   : > { %15699 = vst [vmem:[#allocation150_spill] sm:$0xff] %v13064_v10  ;;  %v13066_v2 = vpop.eup %10248  ;;  %10268 = vlog2.f32 %v959_v4  ;;  %v13072_v11 = vrot.slane %v9971_v50, %v10938_v53  ;;  %v9974_v5 = vcombine.high %v6900_v41, %v6914_v54  ;;  %v8741_v52 = vcombine.low %v6907_v19, %v6921_v60  ;;  %v13078_v10 = vld [vmem:[%s10830_s7 + $0x128] sm:$0xff] }
 0x201   : > { %15700 = vst [vmem:[#allocation151_spill] sm:$0xff] %v13069_v38  ;;  %v10251_v9 = vpop.eup %10250  ;;  %10270 = vlog2.f32 %v938_v28  ;;  %v13075_v63 = vrot.slane %v9180_v36, %v10938_v53  ;;  %v9975_v21 = vcombine.high %v6907_v19, %v6921_v60  ;;  %15703 = vst [vmem:[#allocation154_spill] sm:$0xff] %v13078_v10  ;;  %vm1214_vm3 = vcmp.ne.s32.totalorder %v13078_v10, 4294967196 }
 0x202   : > { %15701 = vst [vmem:[#allocation152_spill] sm:$0xff] %v13072_v11  ;;  %v10253_v26 = vpop.eup %10252  ;;  %10272 = vlog2.f32 %v965_v0  ;;  %v977_v7 = vpop.xlane.xlu0 %976  ;;  %v13082_v1 = vrot.slane %v9992_v58, %v10938_v53  ;;  %v13085_v51 = vrot.slane %v9182_v61, %v10938_v53  ;;  %v9921_v28 = vsel %vm1214_vm3, 1.0, %v15573_v6  ;;  %v13097_v0 = vld [vmem:[%s10830_s7 + $0xe0] sm:$0xff] }
 0x203   : > { %15702 = vst [vmem:[#allocation153_spill] sm:$0xff] %v13075_v63  ;;  %v10255_v4 = vpop.eup %10254  ;;  %10274 = vlog2.f32 %v944_v46  ;;  %v13091_v19 = vrot.slane %v9993_v17, %v10938_v53  ;;  %v13094_v54 = vrot.slane %v8739_v42, %v10938_v53  ;;  %vm1205_vm11 = vcmp.ne.s32.totalorder %v13097_v0, 4294967196  ;;  %v956_v50 = vpop.xlane.xlu1 %955 }
 0x204   : > { %15704 = vst [vmem:[#allocation155_spill] sm:$0xff] %v13082_v1  ;;  %15705 = vst [vmem:[#allocation156_spill] sm:$0xff] %v13085_v51  ;;  %v10257_v41 = vpop.eup %10256  ;;  %10276 = vlog2.f32 %v971_v13  ;;  %v13101_v36 = vrot.slane %v9974_v5, %v10938_v53  ;;  %v13104_v58 = vrot.slane %v8741_v52, %v10938_v53  ;;  %v13109_v46 = vsel %vm1205_vm11, 1.0, %v15573_v6 }
 0x205   : > { %15706 = vst [vmem:[#allocation157_spill] sm:$0xff] %v13091_v19  ;;  %15707 = vst [vmem:[#allocation158_spill] sm:$0xff] %v13094_v54  ;;  %v10259_v60 = vpop.eup %10258  ;;  %10278 = vlog2.f32 %v950_v14  ;;  %v13112_v17 = vrot.slane %v9975_v21, %v10938_v53  ;;  %v7416_v42 = vcombine.high %v9921_v28, %v9921_v28  ;;  %v13115_v51 = vmul.f32 0.6931472, %v12973_v57 }
 0x206   : > { %15708 = vst [vmem:[#allocation159_spill] sm:$0xff] %v13101_v36  ;;  %15709 = vst [vmem:[#allocation160_spill] sm:$0xff] %v13104_v58  ;;  %v10261_v61 = vpop.eup %10260  ;;  %10280 = vlog2.f32 %v977_v7  ;;  %v983_v13 = vpop.xlane.xlu0 %982  ;;  %v13118_v52 = vrot.slane %v9921_v28, %v10938_v53  ;;  %v1220_v19 = vmul.f32 0.6931472, %v12985_v40  ;;  %v13122_v63 = vmul.f32 0.6931472, %v12993_v32 }
 0x207   : > { %15710 = vst [vmem:[#allocation161_spill] sm:$0xff] %v13109_v46  ;;  %15711 = vst [vmem:[#allocation162_spill] sm:$0xff] %v13112_v17  ;;  %v10263_v5 = vpop.eup %10262  ;;  %v13125_v14 = vmul.f32 0.6931472, %v12997_v22  ;;  %10282 = vlog2.f32 %v983_v13  ;;  %v1216_v7 = vmul.f32 0.6931472, %v13009_v27  ;;  %v962_v1 = vpop.xlane.xlu1 %961 }
 0x208   : > { %15712 = vst [vmem:[#allocation163_spill] sm:$0xff] %v13118_v52  ;;  %v10265_v21 = vpop.eup %10264  ;;  %v13129_v57 = vmul.f32 0.6931472, %v13002_v45  ;;  %v13132_v58 = vmul.f32 0.6931472, %v13014_v43  ;;  %v13147_v45 = vrot.slane %v13109_v46, %v10938_v53  ;;  %10284 = vlog2.f32 %v956_v50 }
 0x209   : > { %v10267_v28 = vpop.eup %10266  ;;  %v13137_v32 = vmul.f32 0.6931472, %v13028_v25  ;;  %v13140_v22 = vmul.f32 0.6931472, %v13021_v56  ;;  %v13143_v13 = vmul.f32 0.6931472, %v13034_v47  ;;  %10286 = vlog2.f32 %v962_v1 }
 0x20a   : > { %v10269_v27 = vpop.eup %10268  ;;  %15713 = vst [vmem:[#allocation164_spill] sm:$0xff] %v13147_v45  ;;  %v1065_v43 = vpop.xlane.xlu0 %1064  ;;  %v13150_v17 = vmul.f32 0.6931472, %v13042_v62  ;;  %v13153_v40 = vmul.f32 0.6931472, %v13052_v31  ;;  %v13167_v62 = vrot.slane %v7416_v42, %v10938_v53 }
 0x20b   : > { %v13156_v25 = vmul.f32 0.6931472, %v13047_v48  ;;  %v10271_v56 = vpop.eup %10270  ;;  %v1291_v54 = vsub.f32 %v1216_v7, %v1065_v43  ;;  %v13159_v47 = vmul.f32 0.6931472, %v13066_v2  ;;  %v13162_v36 = vmul.f32 0.6931472, %v13061_v35  ;;  %v968_v6 = vpop.xlane.xlu1 %967 }
 0x20c   : > { %v13164_v38 = vmul.f32 0.6931472, %v10251_v9  ;;  %v10273_v11 = vpop.eup %10272  ;;  %15714 = vst [vmem:[#allocation165_spill] sm:$0xff] %v13167_v62  ;;  %v13169_v31 = vmul.f32 0.6931472, %v10253_v26  ;;  %10288 = vlog2.f32 %v968_v6 }
 0x20d   : > { %v13171_v45 = vmul.f32 0.6931472, %v10257_v41  ;;  %v13173_v48 = vmul.f32 0.6931472, %v10255_v4  ;;  %v10275_v7 = vpop.eup %10274  ;;  %v1329_v35 = vsel %vm1177_vm2, %v1291_v54, 0.0 }
 0x20e   : > { %v13179_v9 = vmul.f32 0.6931472, %v10261_v61  ;;  %v13181_v46 = vmul.f32 0.6931472, %v10259_v60  ;;  %v10277_v42 = vpop.eup %10276  ;;  %v1405_v62 = vcombine.high %v1329_v35, %v1329_v35  ;;  %v1412_v26 = vrot.slane %v1329_v35, %v10938_v53  ;;  %v1071_v10 = vpop.xlane.xlu0 %1070 }
 0x20f   : > { %v13184_v41 = vmul.f32 0.6931472, %v10265_v21  ;;  %v13186_v4 = vmul.f32 0.6931472, %v10263_v5  ;;  %v10279_v23 = vpop.eup %10278  ;;  %v1293_v39 = vsub.f32 %v1220_v19, %v1071_v10  ;;  %v13188_v33 = vmul.f32 0.6931472, %v10269_v27  ;;  %v974_v52 = vpop.xlane.xlu1 %973 }
 0x210   : > { %v13190_v2 = vmul.f32 0.6931472, %v10267_v28  ;;  %v13192_v54 = vmul.f32 0.6931472, %v10271_v56  ;;  %v10281_v61 = vpop.eup %10280  ;;  %v1419_v60 = vrot.slane %v1405_v62, %v10938_v53  ;;  %v1420_v43 = vcombine.high %v1412_v26, %v1412_v26 }
 0x211   : > { %v13195_v35 = vmul.f32 0.6931472, %v10273_v11  ;;  %v1331_v5 = vsel %vm1179_vm1, %v1293_v39, 0.0  ;;  %v13199_v12 = vmul.f32 0.6931472, %v10277_v42  ;;  %v10283_v19 = vpop.eup %10282  ;;  %v1428_v39 = vrot.slane %v1412_v26, %v10938_v53 }
 0x212   : > { %15716 = vst [vmem:[#allocation36_spill] sm:$0xff] %v13190_v2  ;;  %15717 = vst [vmem:[#allocation166_spill] sm:$0xff] %v13192_v54  ;;  %v13201_v10 = vmul.f32 0.6931472, %v10275_v7  ;;  %v1421_v28 = vcombine.high %v1419_v60, %v1419_v60  ;;  %v1442_v27 = vrot.slane %v1420_v43, %v10938_v53  ;;  %v1503_v56 = vcombine.high %v1331_v5, %v1331_v5  ;;  %v1077_v50 = vpop.xlane.xlu0 %1076 }
 0x213   : > { %15718 = vst [vmem:[#allocation167_spill] sm:$0xff] %v13195_v35  ;;  %15720 = vst [vmem:[#allocation35_spill] sm:$0xff] %v13199_v12  ;;  %v1510_v62 = vrot.slane %v1331_v5, %v10938_v53  ;;  %v1295_v11 = vsub.f32 %v13122_v63, %v1077_v50  ;;  %v13206_v15 = vmul.f32 0.6931472, %v10281_v61  ;;  %v13208_v1 = vmul.f32 0.6931472, %v10279_v23  ;;  %v980_v5 = vpop.xlane.xlu1 %979 }
 0x214   : > { %15721 = vst [vmem:[#allocation168_spill] sm:$0xff] %v13201_v10  ;;  %v1435_v7 = vrot.slane %v1419_v60, %v10938_v53  ;;  %v1449_v42 = vrot.slane %v1421_v28, %v10938_v53  ;;  %v1517_v21 = vrot.slane %v1503_v56, %v10938_v53  ;;  %10290 = vlog2.f32 %v974_v52 }
 0x215   : > { %15722 = vst [vmem:[#allocation169_spill] sm:$0xff] %v13206_v15  ;;  %15723 = vst [vmem:[#allocation170_spill] sm:$0xff] %v13208_v1  ;;  %v1518_v43 = vcombine.high %v1510_v62, %v1510_v62  ;;  %v1333_v6 = vsel %vm1181_vm5, %v1295_v11, 0.0  ;;  %v13216_v12 = vmul.f32 0.6931472, %v10283_v19  ;;  %v3267_v63 = vcombine.low %v1428_v39, %v1442_v27 }
 0x216   : > { %v9808_v61 = vcombine.high %v1428_v39, %v1442_v27  ;;  %v3269_v23 = vcombine.low %v1435_v7, %v1449_v42  ;;  %v1526_v50 = vrot.slane %v1510_v62, %v10938_v53  ;;  %v1083_v26 = vpop.xlane.xlu0 %1082  ;;  %v9809_v1 = vcombine.high %v1435_v7, %v1449_v42  ;;  %v13225_v62 = vpop.eup %10284 }
 0x217   : > { %15725 = vst [vmem:[#allocation39_spill] sm:$0xff] %v13216_v12  ;;  %v1519_v60 = vcombine.high %v1517_v21, %v1517_v21  ;;  %v1540_v28 = vrot.slane %v1518_v43, %v10938_v53  ;;  %v1601_v15 = vcombine.high %v1333_v6, %v1333_v6  ;;  %v1533_v56 = vrot.slane %v1517_v21, %v10938_v53 }
 0x218   : > { %v1608_v10 = vrot.slane %v1333_v6, %v10938_v53  ;;  %v1297_v52 = vsub.f32 %v13125_v14, %v1083_v26  ;;  %10292 = vlog2.f32 %v980_v5  ;;  %15726 = vst [vmem:[#allocation171_spill] sm:$0xff] %v13225_v62  ;;  %v13228_v7 = vrot.slane %v3267_v63, %v10938_v53  ;;  %v13235_v5 = vpop.eup %10286 }
 0x219   : > { %v1547_v19 = vrot.slane %v1519_v60, %v10938_v53  ;;  %v3365_v11 = vcombine.low %v1526_v50, %v1540_v28  ;;  %v9812_v27 = vcombine.high %v1526_v50, %v1540_v28  ;;  %v1615_v39 = vrot.slane %v1601_v15, %v10938_v53  ;;  %15728 = vst [vmem:[#allocation43_spill] sm:$0xff] %v13235_v5  ;;  %v13244_v60 = vpop.eup %10288 }
 0x21a   : > { %v13231_v42 = vrot.slane %v9808_v61, %v10938_v53  ;;  %v1616_v21 = vcombine.high %v1608_v10, %v1608_v10  ;;  %v1335_v6 = vsel %vm1183_vm9, %v1297_v52, 0.0  ;;  %v1089_v14 = vpop.xlane.xlu0 %1088  ;;  %v13238_v26 = vrot.slane %v3269_v23, %v10938_v53  ;;  %15729 = vst [vmem:[#allocation172_spill] sm:$0xff] %v13244_v60 }
 0x21b   : > { %v13241_v15 = vrot.slane %v9809_v1, %v10938_v53  ;;  %v3367_v50 = vcombine.low %v1533_v56, %v1547_v19  ;;  %v1624_v63 = vrot.slane %v1608_v10, %v10938_v53  ;;  %v9813_v61 = vcombine.high %v1533_v56, %v1547_v19 }
 0x21c   : > { %v1617_v28 = vcombine.high %v1615_v39, %v1615_v39  ;;  %v1638_v62 = vrot.slane %v1616_v21, %v10938_v53  ;;  %v1699_v43 = vcombine.high %v1335_v6, %v1335_v6  ;;  %v13248_v52 = vrot.slane %v3365_v11, %v10938_v53 }
 0x21d   : > { %v13251_v5 = vrot.slane %v9812_v27, %v10938_v53  ;;  %v1706_v23 = vrot.slane %v1335_v6, %v10938_v53  ;;  %v1299_v1 = vsub.f32 %v13129_v57, %v1089_v14  ;;  %v1631_v12 = vrot.slane %v1615_v39, %v10938_v53  ;;  %v13265_v6 = vpop.xlane.xlu1 %985 }
 0x21e   : > { %v1645_v10 = vrot.slane %v1617_v28, %v10938_v53  ;;  %v3463_v60 = vcombine.low %v1624_v63, %v1638_v62  ;;  %v1713_v56 = vrot.slane %v1699_v43, %v10938_v53  ;;  %v1095_v19 = vpop.xlane.xlu0 %1094  ;;  %v13258_v21 = vpop.eup %10290  ;;  %v13261_v11 = vrot.slane %v3367_v50, %v10938_v53  ;;  %15731 = vst [vmem:[#allocation174_spill] sm:$0xff] %v13265_v6 }
 0x21f   : > { %15730 = vst [vmem:[#allocation173_spill] sm:$0xff] %v13258_v21  ;;  %v1714_v20 = vcombine.high %v1706_v23, %v1706_v23  ;;  %v1337_v27 = vsel %vm1185_vm12, %v1299_v1, 0.0  ;;  %v1301_v57 = vsub.f32 %v13132_v58, %v1095_v19  ;;  %v13269_v39 = vrot.slane %v9813_v61, %v10938_v53 }
 0x220   : > { %v9816_v14 = vcombine.high %v1624_v63, %v1638_v62  ;;  %v3465_v28 = vcombine.low %v1631_v12, %v1645_v10  ;;  %v1722_v43 = vrot.slane %v1706_v23, %v10938_v53  ;;  %v9817_v54 = vcombine.high %v1631_v12, %v1645_v10 }
 0x221   : > { %v1715_v21 = vcombine.high %v1713_v56, %v1713_v56  ;;  %v1736_v50 = vrot.slane %v1714_v20, %v10938_v53  ;;  %v1797_v8 = vcombine.high %v1337_v27, %v1337_v27  ;;  %v13276_v18 = vrot.slane %v3463_v60, %v10938_v53 }
 0x222   : > { %v13273_v35 = vpop.eup %10292  ;;  %v1729_v1 = vrot.slane %v1713_v56, %v10938_v53  ;;  %v1804_v58 = vrot.slane %v1337_v27, %v10938_v53  ;;  %v1339_v62 = vsel %vm1187_vm14, %v1301_v57, 0.0  ;;  %v13285_v20 = vrot.slane %v9816_v14, %v10938_v53  ;;  %v1068_v57 = vpop.xlane.xlu1 %1067 }
 0x223   : > { %15732 = vst [vmem:[#allocation175_spill] sm:$0xff] %v13273_v35  ;;  %v1743_v63 = vrot.slane %v1715_v21, %v10938_v53  ;;  %v3561_v61 = vcombine.low %v1722_v43, %v1736_v50  ;;  %v9820_v12 = vcombine.high %v1722_v43, %v1736_v50  ;;  %v1811_v23 = vrot.slane %v1797_v8, %v10938_v53 }
 0x224   : > { %v1812_v10 = vcombine.high %v1804_v58, %v1804_v58  ;;  %v1895_v19 = vcombine.high %v1339_v62, %v1339_v62  ;;  %v1902_v60 = vrot.slane %v1339_v62, %v10938_v53  ;;  %v13289_v56 = vrot.slane %v3465_v28, %v10938_v53 }
 0x225   : > { %v13292_v27 = vrot.slane %v9817_v54, %v10938_v53  ;;  %v3563_v16 = vcombine.low %v1729_v1, %v1743_v63  ;;  %v1820_v21 = vrot.slane %v1804_v58, %v10938_v53  ;;  %v9821_v43 = vcombine.high %v1729_v1, %v1743_v63 }
 0x226   : > { %v1813_v50 = vcombine.high %v1811_v23, %v1811_v23  ;;  %v1834_v8 = vrot.slane %v1812_v10, %v10938_v53  ;;  %v1909_v14 = vrot.slane %v1895_v19, %v10938_v53  ;;  %v13298_v35 = vrot.slane %v3561_v61, %v10938_v53 }
 0x227   : > { %v13301_v62 = vrot.slane %v9820_v12, %v10938_v53  ;;  %v1827_v28 = vrot.slane %v1811_v23, %v10938_v53  ;;  %v1910_v54 = vcombine.high %v1902_v60, %v1902_v60  ;;  %v1918_v1 = vrot.slane %v1902_v60, %v10938_v53  ;;  %v1101_v12 = vpop.xlane.xlu0 %1100 }
 0x228   : > { %15733 = vst [vmem:[#allocation176_spill] sm:$0xff] %v13298_v35  ;;  %v1841_v6 = vrot.slane %v1813_v50, %v10938_v53  ;;  %v3659_v2 = vcombine.low %v1820_v21, %v1834_v8  ;;  %v1911_v58 = vcombine.high %v1909_v14, %v1909_v14  ;;  %v9824_v63 = vcombine.high %v1820_v21, %v1834_v8 }
 0x229   : > { %15734 = vst [vmem:[#allocation177_spill] sm:$0xff] %v13301_v62  ;;  %v1932_v10 = vrot.slane %v1910_v54, %v10938_v53  ;;  %v3299_v19 = vcombine.low %v13228_v7, %v13231_v42  ;;  %v3300_v61 = vcombine.low %v13238_v26, %v13241_v15  ;;  %v13312_v35 = vrot.slane %v3563_v16, %v10938_v53  ;;  %v1074_v42 = vpop.xlane.xlu1 %1073 }
 0x22a   : > { %v13315_v23 = vrot.slane %v9821_v43, %v10938_v53  ;;  %v3661_v50 = vcombine.low %v1827_v28, %v1841_v6  ;;  %v1925_v62 = vrot.slane %v1909_v14, %v10938_v53  ;;  %v9825_v60 = vcombine.high %v1827_v28, %v1841_v6 }
 0x22b   : > { %v13319_v21 = vrot.slane %v3659_v2, %v10938_v53  ;;  %v1939_v8 = vrot.slane %v1911_v58, %v10938_v53  ;;  %v3757_v7 = vcombine.low %v1918_v1, %v1932_v10  ;;  %v9828_v54 = vcombine.high %v1918_v1, %v1932_v10 }
 0x22c   : > { %v3307_v26 = vrot.slane %v3299_v19, %v10938_v53  ;;  %v3314_v15 = vrot.slane %v3300_v61, %v10938_v53  ;;  %v1292_v16 = vsub.f32 %v13115_v51, %v1068_v57  ;;  %v13326_v43 = vrot.slane %v9824_v63, %v10938_v53  ;;  %v1107_v61 = vpop.xlane.xlu0 %1106 }
 0x22d   : > { %15735 = vst [vmem:[#allocation178_spill] sm:$0xff] %v13319_v21  ;;  %v13329_v14 = vrot.slane %v3661_v50, %v10938_v53  ;;  %v3759_v6 = vcombine.low %v1925_v62, %v1939_v8  ;;  %v9829_v2 = vcombine.high %v1925_v62, %v1939_v8  ;;  %v15737_v21 = vld [vmem:[#allocation34_spill] sm:$0xff]  ;;  %v1303_v1 = vsub.f32 %v13137_v32, %v1101_v12 }
 0x22e   : > { %v3315_v28 = vcombine.low %v3307_v26, %v3314_v15  ;;  %vm15738_vm1 = vcmp.ne.s32.totalorder %v15737_v21, 4294967196  ;;  %v1294_v10 = vsub.f32 %v13140_v22, %v1074_v42  ;;  %v13336_v19 = vrot.slane %v9825_v60, %v10938_v53  ;;  %v15743_v22 = vld [vmem:[#allocation37_spill] sm:$0xff]  ;;  %v1080_v42 = vpop.xlane.xlu1 %1079 }
 0x22f   : > { %15736 = vst [vmem:[#allocation179_spill] sm:$0xff] %v13329_v14  ;;  %v1330_v58 = vsel %vm15738_vm1, %v1292_v16, 0.0  ;;  %v13339_v51 = vrot.slane %v3757_v7, %v10938_v53  ;;  %v13343_v62 = vrot.slane %v9828_v54, %v10938_v53  ;;  %v13346_v50 = vrot.slane %v3759_v6, %v10938_v53 }
 0x230   : > { %15739 = vst [vmem:[#allocation34_spill] sm:$0xff] %v13336_v19  ;;  %v1454_v57 = vcombine.high %v1330_v58, %v1330_v58  ;;  %v1461_v63 = vrot.slane %v1330_v58, %v10938_v53  ;;  %5130 = vperm.xlu0 %10066, %v3315_v28   ;;  %v1341_v32 = vsel %vm1189_vm15, %v1303_v1, 0.0  ;;  %vm15744_vm2 = vcmp.ne.s32.totalorder %v15743_v22, 4294967196 }
 0x231   : > { %15740 = vst [vmem:[#allocation180_spill] sm:$0xff] %v13339_v51  ;;  %15741 = vst [vmem:[#allocation181_spill] sm:$0xff] %v13343_v62  ;;  %v1332_v12 = vsel %vm15744_vm2, %v1294_v10, 0.0  ;;  %v13353_v60 = vrot.slane %v9829_v2, %v10938_v53  ;;  %v1993_v7 = vcombine.high %v1341_v32, %v1341_v32  ;;  %v2000_v54 = vrot.slane %v1341_v32, %v10938_v53 }
 0x232   : > { %15742 = vst [vmem:[#allocation182_spill] sm:$0xff] %v13346_v50  ;;  %v1468_v21 = vrot.slane %v1454_v57, %v10938_v53  ;;  %v1469_v8 = vcombine.high %v1461_v63, %v1461_v63  ;;  %v1552_v26 = vcombine.high %v1332_v12, %v1332_v12  ;;  %v1559_v15 = vrot.slane %v1332_v12, %v10938_v53 }
 0x233   : > { %15745 = vst [vmem:[#allocation37_spill] sm:$0xff] %v13353_v60  ;;  %v1305_v16 = vsub.f32 %v13150_v17, %v1107_v61  ;;  %v1477_v6 = vrot.slane %v1461_v63, %v10938_v53  ;;  %v2007_v2 = vrot.slane %v1993_v7, %v10938_v53  ;;  %v2008_v1 = vcombine.high %v2000_v54, %v2000_v54 }
 0x234   : > { %v1470_v59 = vcombine.high %v1468_v21, %v1468_v21  ;;  %v1491_v28 = vrot.slane %v1469_v8, %v10938_v53  ;;  %v1484_v58 = vrot.slane %v1468_v21, %v10938_v53  ;;  %v1566_v10 = vrot.slane %v1552_v26, %v10938_v53 }
 0x235   : > { %v1296_v57 = vsub.f32 %v13143_v13, %v1080_v42  ;;  %v2009_v12 = vcombine.high %v2007_v2, %v2007_v2  ;;  %v1567_v50 = vcombine.high %v1559_v15, %v1559_v15  ;;  %v2016_v61 = vrot.slane %v2000_v54, %v10938_v53 }
 0x236   : > { %v1498_v32 = vrot.slane %v1470_v59, %v10938_v53  ;;  %v3316_v22 = vcombine.low %v1477_v6, %v1491_v28  ;;  %v9810_v17 = vcombine.high %v1477_v6, %v1491_v28  ;;  %v2030_v63 = vrot.slane %v2008_v1, %v10938_v53 }
 0x237   : > { %v1568_v8 = vcombine.high %v1566_v10, %v1566_v10  ;;  %v2023_v21 = vrot.slane %v2007_v2, %v10938_v53  ;;  %v1343_v26 = vsel %vm1191_vm7, %v1305_v16, 0.0  ;;  %v2037_v42 = vrot.slane %v2009_v12, %v10938_v53 }
 0x238   : > { %v3318_v60 = vcombine.low %v1484_v58, %v1498_v32  ;;  %v9811_v7 = vcombine.high %v1484_v58, %v1498_v32  ;;  %v13372_v13 = vrot.slane %v3316_v22, %v10938_v53  ;;  %v3855_v59 = vcombine.low %v2016_v61, %v2030_v63 }
 0x239   : > { %v1575_v6 = vrot.slane %v1559_v15, %v10938_v53  ;;  %v9832_v28 = vcombine.high %v2016_v61, %v2030_v63  ;;  %v1582_v54 = vrot.slane %v1566_v10, %v10938_v53  ;;  %v1589_v1 = vrot.slane %v1567_v50, %v10938_v53 }
 0x23a   : > { %v1596_v58 = vrot.slane %v1568_v8, %v10938_v53  ;;  %v13380_v2 = vrot.slane %v9810_v17, %v10938_v53  ;;  %v13383_v37 = vrot.slane %v3318_v60, %v10938_v53  ;;  %v3857_v16 = vcombine.low %v2023_v21, %v2037_v42  ;;  %v1113_v17 = vpop.xlane.xlu0 %1112 }
 0x23b   : > { %v9833_v32 = vcombine.high %v2023_v21, %v2037_v42  ;;  %v13386_v22 = vrot.slane %v9811_v7, %v10938_v53  ;;  %v3414_v12 = vcombine.low %v1575_v6, %v1589_v1  ;;  %v9814_v15 = vcombine.high %v1575_v6, %v1589_v1 }
 0x23c   : > { %v3416_v61 = vcombine.low %v1582_v54, %v1596_v58  ;;  %v13389_v10 = vrot.slane %v3855_v59, %v10938_v53  ;;  %v9815_v50 = vcombine.high %v1582_v54, %v1596_v58  ;;  %v2091_v63 = vcombine.high %v1343_v26, %v1343_v26 }
 0x23d   : > { %v2098_v8 = vrot.slane %v1343_v26, %v10938_v53  ;;  %v13393_v51 = vrot.slane %v9832_v28, %v10938_v53  ;;  %v13396_v60 = vrot.slane %v3857_v16, %v10938_v53  ;;  %v13399_v7 = vrot.slane %v9833_v32, %v10938_v53  ;;  %v15750_v26 = vld [vmem:[#allocation41_spill] sm:$0xff] }
 0x23e   : > { %15746 = vst [vmem:[#allocation183_spill] sm:$0xff] %v13389_v10  ;;  %v13402_v21 = vrot.slane %v3414_v12, %v10938_v53  ;;  %v13405_v42 = vrot.slane %v9814_v15, %v10938_v53  ;;  %v2105_v59 = vrot.slane %v2091_v63, %v10938_v53  ;;  %vm15751_vm5 = vcmp.ne.s32.totalorder %v15750_v26, 4294967196 }
 0x23f   : > { %15747 = vst [vmem:[#allocation184_spill] sm:$0xff] %v13393_v51  ;;  %15748 = vst [vmem:[#allocation185_spill] sm:$0xff] %v13396_v60  ;;  %v2106_v6 = vcombine.high %v2098_v8, %v2098_v8  ;;  %v1334_v54 = vsel %vm15751_vm5, %v1296_v57, 0.0  ;;  %v13411_v28 = vrot.slane %v3416_v61, %v10938_v53  ;;  %v1307_v16 = vsub.f32 %v13153_v40, %v1113_v17 }
 0x240   : > { %15749 = vst [vmem:[#allocation186_spill] sm:$0xff] %v13399_v7  ;;  %v1650_v1 = vcombine.high %v1334_v54, %v1334_v54  ;;  %v1657_v58 = vrot.slane %v1334_v54, %v10938_v53  ;;  %v13416_v32 = vrot.slane %v9815_v50, %v10938_v53  ;;  %v2107_v12 = vcombine.high %v2105_v59, %v2105_v59  ;;  %v1086_v7 = vpop.xlane.xlu1 %1085 }
 0x241   : > { %v2114_v15 = vrot.slane %v2098_v8, %v10938_v53  ;;  %v2128_v63 = vrot.slane %v2106_v6, %v10938_v53  ;;  %v2121_v60 = vrot.slane %v2105_v59, %v10938_v53  ;;  %v1345_v61 = vsel %vm1193_vm4, %v1307_v16, 0.0  ;;  %v1119_v59 = vpop.xlane.xlu0 %1118 }
 0x242   : > { %v1664_v57 = vrot.slane %v1650_v1, %v10938_v53  ;;  %v1665_v26 = vcombine.high %v1657_v58, %v1657_v58  ;;  %v2135_v54 = vrot.slane %v2107_v12, %v10938_v53  ;;  %v2189_v50 = vcombine.high %v1345_v61, %v1345_v61 }
 0x243   : > { %v3953_v40 = vcombine.low %v2114_v15, %v2128_v63  ;;  %v9836_v17 = vcombine.high %v2114_v15, %v2128_v63  ;;  %v1673_v51 = vrot.slane %v1657_v58, %v10938_v53  ;;  %v2196_v6 = vrot.slane %v1345_v61, %v10938_v53 }
 0x244   : > { %v1666_v10 = vcombine.high %v1664_v57, %v1664_v57  ;;  %v1687_v8 = vrot.slane %v1665_v26, %v10938_v53  ;;  %v3955_v62 = vcombine.low %v2121_v60, %v2135_v54  ;;  %v9837_v1 = vcombine.high %v2121_v60, %v2135_v54 }
 0x245   : > { %v1680_v14 = vrot.slane %v1664_v57, %v10938_v53  ;;  %v1298_v44 = vsub.f32 %v13156_v25, %v1086_v7  ;;  %v2203_v15 = vrot.slane %v2189_v50, %v10938_v53  ;;  %v13433_v63 = vrot.slane %v3953_v40, %v10938_v53 }
 0x246   : > { %v1694_v16 = vrot.slane %v1666_v10, %v10938_v53  ;;  %v3512_v12 = vcombine.low %v1673_v51, %v1687_v8  ;;  %v9818_v19 = vcombine.high %v1673_v51, %v1687_v8  ;;  %v13436_v58 = vrot.slane %v9836_v17, %v10938_v53 }
 0x247   : > { %15752 = vst [vmem:[#allocation41_spill] sm:$0xff] %v13433_v63  ;;  %v2204_v26 = vcombine.high %v2196_v6, %v2196_v6  ;;  %v1309_v61 = vsub.f32 %v13159_v47, %v1119_v59  ;;  %v13440_v60 = vrot.slane %v3955_v62, %v10938_v53  ;;  %v13443_v25 = vrot.slane %v9837_v1, %v10938_v53 }
 0x248   : > { %v3514_v10 = vcombine.low %v1680_v14, %v1694_v16  ;;  %v2212_v51 = vrot.slane %v2196_v6, %v10938_v53  ;;  %v9819_v7 = vcombine.high %v1680_v14, %v1694_v16  ;;  %v2205_v57 = vcombine.high %v2203_v15, %v2203_v15 }
 0x249   : > { %15753 = vst [vmem:[#allocation187_spill] sm:$0xff] %v13440_v60  ;;  %15754 = vst [vmem:[#allocation188_spill] sm:$0xff] %v13443_v25  ;;  %v2226_v54 = vrot.slane %v2204_v26, %v10938_v53  ;;  %v1336_v40 = vsel %vm1184_vm0, %v1298_v44, 0.0  ;;  %v13450_v17 = vrot.slane %v3512_v12, %v10938_v53  ;;  %v13453_v47 = vrot.slane %v9818_v19, %v10938_v53  ;;  %v1092_v19 = vpop.xlane.xlu1 %1091 }
 0x24a   : > { %v1748_v62 = vcombine.high %v1336_v40, %v1336_v40  ;;  %v1755_v50 = vrot.slane %v1336_v40, %v10938_v53  ;;  %v2219_v8 = vrot.slane %v2203_v15, %v10938_v53  ;;  %v2233_v6 = vrot.slane %v2205_v57, %v10938_v53 }
 0x24b   : > { %v4051_v14 = vcombine.low %v2212_v51, %v2226_v54  ;;  %v1347_v59 = vsel %vm1195_vm8, %v1309_v61, 0.0  ;;  %v13461_v34 = vrot.slane %v3514_v10, %v10938_v53  ;;  %v13465_v12 = vrot.slane %v9819_v7, %v10938_v53 }
 0x24c   : > { %v1762_v1 = vrot.slane %v1748_v62, %v10938_v53  ;;  %v1763_v44 = vcombine.high %v1755_v50, %v1755_v50  ;;  %v2287_v16 = vcombine.high %v1347_v59, %v1347_v59  ;;  %v9840_v26 = vcombine.high %v2212_v51, %v2226_v54 }
 0x24d   : > { %v4053_v40 = vcombine.low %v2219_v8, %v2233_v6  ;;  %v1771_v15 = vrot.slane %v1755_v50, %v10938_v53  ;;  %v9841_v57 = vcombine.high %v2219_v8, %v2233_v6  ;;  %v2294_v61 = vrot.slane %v1347_v59, %v10938_v53 }
 0x24e   : > { %v1764_v60 = vcombine.high %v1762_v1, %v1762_v1  ;;  %v1785_v29 = vrot.slane %v1763_v44, %v10938_v53  ;;  %v13471_v10 = vrot.slane %v4051_v14, %v10938_v53  ;;  %v1778_v62 = vrot.slane %v1762_v1, %v10938_v53  ;;  %v15758_v14 = vld [vmem:[#allocation38_spill] sm:$0xff]  ;;  %v1125_v1 = vpop.xlane.xlu0 %1124 }
 0x24f   : > { %v2301_v25 = vrot.slane %v2287_v16, %v10938_v53  ;;  %v1300_v7 = vsub.f32 %v13162_v36, %v1092_v19  ;;  %v2302_v50 = vcombine.high %v2294_v61, %v2294_v61  ;;  %v13478_v8 = vrot.slane %v9840_v26, %v10938_v53  ;;  %v1098_v19 = vpop.xlane.xlu1 %1097 }
 0x250   : > { %15755 = vst [vmem:[#allocation189_spill] sm:$0xff] %v13471_v10  ;;  %v1792_v51 = vrot.slane %v1764_v60, %v10938_v53  ;;  %v3610_v54 = vcombine.low %v1771_v15, %v1785_v29  ;;  %v9822_v63 = vcombine.high %v1771_v15, %v1785_v29  ;;  %v13481_v6 = vrot.slane %v4053_v40, %v10938_v53 }
 0x251   : > { %15756 = vst [vmem:[#allocation190_spill] sm:$0xff] %v13478_v8  ;;  %v2303_v59 = vcombine.high %v2301_v25, %v2301_v25  ;;  %vm15759_vm0 = vcmp.ne.s32.totalorder %v15758_v14, 4294967196  ;;  %v2310_v36 = vrot.slane %v2294_v61, %v10938_v53  ;;  %v2317_v60 = vrot.slane %v2301_v25, %v10938_v53 }
 0x252   : > { %15757 = vst [vmem:[#allocation191_spill] sm:$0xff] %v13481_v6  ;;  %v1338_v44 = vsel %vm15759_vm0, %v1300_v7, 0.0  ;;  %v3612_v10 = vcombine.low %v1778_v62, %v1792_v51  ;;  %v9823_v16 = vcombine.high %v1778_v62, %v1792_v51  ;;  %v2324_v15 = vrot.slane %v2302_v50, %v10938_v53 }
 0x253   : > { %v2331_v26 = vrot.slane %v2303_v59, %v10938_v53  ;;  %v1846_v29 = vcombine.high %v1338_v44, %v1338_v44  ;;  %v1853_v40 = vrot.slane %v1338_v44, %v10938_v53  ;;  %v13491_v6 = vrot.slane %v9841_v57, %v10938_v53 }
 0x254   : > { %v13494_v7 = vrot.slane %v3610_v54, %v10938_v53  ;;  %v13497_v62 = vrot.slane %v9822_v63, %v10938_v53  ;;  %v1311_v61 = vsub.f32 %v13169_v31, %v1125_v1  ;;  %v4149_v25 = vcombine.low %v2310_v36, %v2324_v15 }
 0x255   : > { %15760 = vst [vmem:[#allocation38_spill] sm:$0xff] %v13491_v6  ;;  %v9844_v51 = vcombine.high %v2310_v36, %v2324_v15  ;;  %v4151_v14 = vcombine.low %v2317_v60, %v2331_v26  ;;  %v1302_v50 = vsub.f32 %v13164_v38, %v1098_v19  ;;  %v13502_v59 = vrot.slane %v3612_v10, %v10938_v53 }
 0x256   : > { %v1860_v44 = vrot.slane %v1846_v29, %v10938_v53  ;;  %v1861_v57 = vcombine.high %v1853_v40, %v1853_v40  ;;  %v1349_v54 = vsel %vm1197_vm10, %v1311_v61, 0.0  ;;  %v13508_v6 = vrot.slane %v9823_v16, %v10938_v53  ;;  %v1131_v29 = vpop.xlane.xlu0 %1130 }
 0x257   : > { %v9845_v63 = vcombine.high %v2317_v60, %v2331_v26  ;;  %v13511_v31 = vrot.slane %v4149_v25, %v10938_v53  ;;  %v1869_v1 = vrot.slane %v1853_v40, %v10938_v53  ;;  %v13515_v38 = vrot.slane %v9844_v51, %v10938_v53  ;;  %v15764_v60 = vld [vmem:[#allocation40_spill] sm:$0xff] }
 0x258   : > { %v1862_v10 = vcombine.high %v1860_v44, %v1860_v44  ;;  %v1883_v36 = vrot.slane %v1861_v57, %v10938_v53  ;;  %v2385_v19 = vcombine.high %v1349_v54, %v1349_v54  ;;  %v13519_v15 = vrot.slane %v4151_v14, %v10938_v53 }
 0x259   : > { %15761 = vst [vmem:[#allocation192_spill] sm:$0xff] %v13511_v31  ;;  %15762 = vst [vmem:[#allocation193_spill] sm:$0xff] %v13515_v38  ;;  %v1876_v3 = vrot.slane %v1860_v44, %v10938_v53  ;;  %v2392_v16 = vrot.slane %v1349_v54, %v10938_v53  ;;  %vm15765_vm9 = vcmp.ne.s32.totalorder %v15764_v60, 4294967196  ;;  %v13528_v57 = vrot.slane %v9845_v63, %v10938_v53 }
 0x25a   : > { %15763 = vst [vmem:[#allocation194_spill] sm:$0xff] %v13519_v15  ;;  %v1340_v26 = vsel %vm15765_vm9, %v1302_v50, 0.0  ;;  %v1890_v40 = vrot.slane %v1862_v10, %v10938_v53  ;;  %v3708_v61 = vcombine.low %v1869_v1, %v1883_v36  ;;  %v9826_v25 = vcombine.high %v1869_v1, %v1883_v36 }
 0x25b   : > { %v2399_v51 = vrot.slane %v2385_v19, %v10938_v53  ;;  %15766 = vst [vmem:[#allocation40_spill] sm:$0xff] %v13528_v57  ;;  %v2400_v31 = vcombine.high %v2392_v16, %v2392_v16  ;;  %v1944_v14 = vcombine.high %v1340_v26, %v1340_v26  ;;  %v1951_v15 = vrot.slane %v1340_v26, %v10938_v53 }
 0x25c   : > { %v3710_v44 = vcombine.low %v1876_v3, %v1890_v40  ;;  %v2408_v54 = vrot.slane %v2392_v16, %v10938_v53  ;;  %v1313_v60 = vsub.f32 %v13171_v45, %v1131_v29  ;;  %v3348_v50 = vcombine.low %v13372_v13, %v13380_v2 }
 0x25d   : > { %v9827_v10 = vcombine.high %v1876_v3, %v1890_v40  ;;  %v2401_v38 = vcombine.high %v2399_v51, %v2399_v51  ;;  %v2422_v1 = vrot.slane %v2400_v31, %v10938_v53  ;;  %v1958_v36 = vrot.slane %v1944_v14, %v10938_v53 }
 0x25e   : > { %v13538_v63 = vrot.slane %v3708_v61, %v10938_v53  ;;  %v13541_v19 = vrot.slane %v9826_v25, %v10938_v53  ;;  %v2415_v26 = vrot.slane %v2399_v51, %v10938_v53  ;;  %v1959_v16 = vcombine.high %v1951_v15, %v1951_v15 }
 0x25f   : > { %v2429_v45 = vrot.slane %v2401_v38, %v10938_v53  ;;  %v4247_v29 = vcombine.low %v2408_v54, %v2422_v1  ;;  %v9848_v57 = vcombine.high %v2408_v54, %v2422_v1  ;;  %v1960_v13 = vcombine.high %v1958_v36, %v1958_v36 }
 0x260   : > { %v13546_v2 = vrot.slane %v3710_v44, %v10938_v53  ;;  %v1967_v31 = vrot.slane %v1951_v15, %v10938_v53  ;;  %v1981_v3 = vrot.slane %v1959_v16, %v10938_v53  ;;  %v1351_v40 = vsel %vm1199_vm13, %v1313_v60, 0.0 }
 0x261   : > { %v4249_v61 = vcombine.low %v2415_v26, %v2429_v45  ;;  %v9849_v25 = vcombine.high %v2415_v26, %v2429_v45  ;;  %v1974_v51 = vrot.slane %v1958_v36, %v10938_v53  ;;  %v3349_v38 = vcombine.low %v13383_v37, %v13386_v22  ;;  %v1104_v36 = vpop.xlane.xlu1 %1103  ;;  %v1137_v26 = vpop.xlane.xlu0 %1136 }
 0x262   : > { %v1988_v14 = vrot.slane %v1960_v13, %v10938_v53  ;;  %v3806_v54 = vcombine.low %v1967_v31, %v1981_v3  ;;  %v9830_v1 = vcombine.high %v1967_v31, %v1981_v3  ;;  %v2483_v44 = vcombine.high %v1351_v40, %v1351_v40 }
 0x263   : > { %v13557_v8 = vrot.slane %v9827_v10, %v10938_v53  ;;  %v13560_v15 = vrot.slane %v4247_v29, %v10938_v53  ;;  %v13563_v24 = vrot.slane %v9848_v57, %v10938_v53  ;;  %v2490_v60 = vrot.slane %v1351_v40, %v10938_v53 }
 0x264   : > { %v13567_v37 = vrot.slane %v4249_v61, %v10938_v53  ;;  %v13570_v22 = vrot.slane %v9849_v25, %v10938_v53  ;;  %v3808_v16 = vcombine.low %v1974_v51, %v1988_v14  ;;  %v3356_v10 = vrot.slane %v3348_v50, %v10938_v53 }
 0x265   : > { %v9831_v45 = vcombine.high %v1974_v51, %v1988_v14  ;;  %v2497_v29 = vrot.slane %v2483_v44, %v10938_v53  ;;  %v2498_v13 = vcombine.high %v2490_v60, %v2490_v60  ;;  %v3363_v57 = vrot.slane %v3349_v38, %v10938_v53  ;;  %v15768_v38 = vld [vmem:[#allocation42_spill] sm:$0xff] }
 0x266   : > { %15767 = vst [vmem:[#allocation195_spill] sm:$0xff] %v13567_v37  ;;  %v13576_v31 = vrot.slane %v3806_v54, %v10938_v53  ;;  %v13579_v3 = vrot.slane %v9830_v1, %v10938_v53  ;;  %v1304_v40 = vsub.f32 %v13173_v48, %v1104_v36  ;;  %v1315_v61 = vsub.f32 %v13179_v9, %v1137_v26 }
 0x267   : > { %v2499_v25 = vcombine.high %v2497_v29, %v2497_v29  ;;  %v2506_v37 = vrot.slane %v2490_v60, %v10938_v53  ;;  %v2520_v50 = vrot.slane %v2498_v13, %v10938_v53  ;;  %v3364_v51 = vcombine.low %v3356_v10, %v3363_v57 }
 0x268   : > { %v13586_v14 = vrot.slane %v3808_v16, %v10938_v53  ;;  %vm15769_vm12 = vcmp.ne.s32.totalorder %v15768_v38, 4294967196  ;;  %v1353_v1 = vsel %vm1201_vm6, %v1315_v61, 0.0  ;;  %v3446_v48 = vcombine.low %v13402_v21, %v13405_v42 }
 0x269   : > { %v1342_v54 = vsel %vm15769_vm12, %v1304_v40, 0.0  ;;  %v2513_v9 = vrot.slane %v2497_v29, %v10938_v53  ;;  %v2527_v44 = vrot.slane %v2499_v25, %v10938_v53  ;;  %v4345_v60 = vcombine.low %v2506_v37, %v2520_v50  ;;  %5133 = vperm.xlu1 %10067, %v3364_v51  }
 0x26a   : > { %v2042_v36 = vcombine.high %v1342_v54, %v1342_v54  ;;  %v13597_v26 = vrot.slane %v9831_v45, %v10938_v53  ;;  %v2049_v16 = vrot.slane %v1342_v54, %v10938_v53  ;;  %v2581_v10 = vcombine.high %v1353_v1, %v1353_v1 }
 0x26b   : > { %v2588_v13 = vrot.slane %v1353_v1, %v10938_v53  ;;  %v9852_v55 = vcombine.high %v2506_v37, %v2520_v50  ;;  %v4347_v57 = vcombine.low %v2513_v9, %v2527_v44  ;;  %v3447_v21 = vcombine.low %v13411_v28, %v13416_v32  ;;  %v1110_v1 = vpop.xlane.xlu1 %1109 }
 0x26c   : > { %v3454_v42 = vrot.slane %v3446_v48, %v10938_v53  ;;  %v9853_v29 = vcombine.high %v2513_v9, %v2527_v44  ;;  %v2056_v40 = vrot.slane %v2042_v36, %v10938_v53  ;;  %v2057_v61 = vcombine.high %v2049_v16, %v2049_v16 }
 0x26d   : > { %v2595_v25 = vrot.slane %v2581_v10, %v10938_v53  ;;  %v13607_v45 = vrot.slane %v4345_v60, %v10938_v53  ;;  %v2065_v51 = vrot.slane %v2049_v16, %v10938_v53  ;;  %v2596_v38 = vcombine.high %v2588_v13, %v2588_v13 }
 0x26e   : > { %v2604_v37 = vrot.slane %v2588_v13, %v10938_v53  ;;  %v2058_v50 = vcombine.high %v2056_v40, %v2056_v40  ;;  %v13612_v54 = vrot.slane %v2056_v40, %v10938_v53  ;;  %v2079_v28 = vrot.slane %v2057_v61, %v10938_v53 }
 0x26f   : > { %15770 = vst [vmem:[#allocation42_spill] sm:$0xff] %v13607_v45  ;;  %v2597_v32 = vcombine.high %v2595_v25, %v2595_v25  ;;  %v13616_v48 = vrot.slane %v2595_v25, %v10938_v53  ;;  %v2618_v9 = vrot.slane %v2596_v38, %v10938_v53  ;;  %v3461_v44 = vrot.slane %v3447_v21, %v10938_v53 }
 0x270   : > { %v3397_v60 = vcombine.low %v13248_v52, %v13251_v5  ;;  %v13623_v36 = vrot.slane %v2058_v50, %v10938_v53  ;;  %v3904_v16 = vcombine.low %v2065_v51, %v2079_v28  ;;  %v9834_v10 = vcombine.high %v2065_v51, %v2079_v28  ;;  %v1143_v51 = vpop.xlane.xlu0 %1142 }
 0x271   : > { %v13626_v13 = vrot.slane %v2597_v32, %v10938_v53  ;;  %v4443_v40 = vcombine.low %v2604_v37, %v2618_v9  ;;  %v9856_v61 = vcombine.high %v2604_v37, %v2618_v9  ;;  %v3462_v45 = vcombine.low %v3454_v42, %v3461_v44 }
 0x272   : > { %v3398_v25 = vcombine.low %v13261_v11, %v13269_v39  ;;  %v13631_v38 = vrot.slane %v9852_v55, %v10938_v53  ;;  %v13634_v21 = vrot.slane %v4347_v57, %v10938_v53  ;;  %v13637_v5 = vrot.slane %v9853_v29, %v10938_v53 }
 0x273   : > { %v3906_v52 = vcombine.low %v13612_v54, %v13623_v36  ;;  %v9835_v37 = vcombine.high %v13612_v54, %v13623_v36  ;;  %v13644_v42 = vrot.slane %v3904_v16, %v10938_v53  ;;  %v13647_v11 = vrot.slane %v9834_v10, %v10938_v53  ;;  %5139 = vperm.xlu0 %10066, %v3462_v45   ;;  %v1116_v54 = vpop.xlane.xlu1 %1115  ;;  %v15771_v16 = vld [vmem:[#allocation129_spill] sm:$0xff] }
 0x274   : > { %v4445_v39 = vcombine.low %v13616_v48, %v13626_v13  ;;  %v9857_v55 = vcombine.high %v13616_v48, %v13626_v13  ;;  %v13654_v57 = vrot.slane %v4443_v40, %v10938_v53  ;;  %v3405_v29 = vrot.slane %v3397_v60, %v10938_v53 }
 0x275   : > { %v3412_v50 = vrot.slane %v3398_v25, %v10938_v53  ;;  %v13659_v28 = vrot.slane %v3906_v52, %v10938_v53  ;;  %v13662_v32 = vrot.slane %v9856_v61, %v10938_v53  ;;  %v1306_v9 = vsub.f32 %v13181_v46, %v1110_v1  ;;  %v1149_v61 = vpop.xlane.xlu0 %1148 }
 0x276   : > { %v1317_v45 = vsub.f32 %v13184_v41, %v1143_v51  ;;  %v3544_v48 = vcombine.low %v13450_v17, %v13453_v47  ;;  %v3545_v60 = vcombine.low %v13461_v34, %v13465_v12  ;;  %v3495_v36 = vcombine.low %v13276_v18, %v13285_v20 }
 0x277   : > { %v3413_v44 = vcombine.low %v3405_v29, %v3412_v50  ;;  %vm15772_vm14 = vcmp.ne.s32.totalorder %v15771_v16, 4294967196  ;;  %vm15773_vm6 = vcmp.ne.s32.totalorder %v12947_v49, 4294967196  ;;  %v3496_v46 = vcombine.low %v13289_v56, %v13292_v27 }
 0x278   : > { %v1344_v10 = vsel %vm15772_vm14, %v1306_v9, 0.0  ;;  %v1355_v13 = vsel %vm15773_vm6, %v1317_v45, 0.0  ;;  %v1308_v41 = vsub.f32 %v13186_v4, %v1116_v54  ;;  %v3552_v18 = vrot.slane %v3544_v48, %v10938_v53 }
 0x279   : > { %5136 = vperm.xlu1 %10067, %v3413_v44   ;;  %v2140_v1 = vcombine.high %v1344_v10, %v1344_v10  ;;  %v2147_v17 = vrot.slane %v1344_v10, %v10938_v53  ;;  %v2679_v47 = vcombine.high %v1355_v13, %v1355_v13  ;;  %v2686_v34 = vrot.slane %v1355_v13, %v10938_v53 }
 0x27a   : > { %v3559_v20 = vrot.slane %v3545_v60, %v10938_v53  ;;  %v3503_v12 = vrot.slane %v3495_v36, %v10938_v53  ;;  %v3510_v49 = vrot.slane %v3496_v46, %v10938_v53  ;;  %vm15774_vm15 = vcmp.ne.s32.totalorder %v12341_v30, 4294967196 }
 0x27b   : > { %v2154_v40 = vrot.slane %v2140_v1, %v10938_v53  ;;  %v2155_v56 = vcombine.high %v2147_v17, %v2147_v17  ;;  %v2163_v4 = vrot.slane %v2147_v17, %v10938_v53  ;;  %v2693_v27 = vrot.slane %v2679_v47, %v10938_v53 }
 0x27c   : > { %v2694_v25 = vcombine.high %v2686_v34, %v2686_v34  ;;  %v2702_v52 = vrot.slane %v2686_v34, %v10938_v53  ;;  %v3560_v51 = vcombine.low %v3552_v18, %v3559_v20  ;;  %v3511_v29 = vcombine.low %v3503_v12, %v3510_v49 }
 0x27d   : > { %v2156_v50 = vcombine.high %v2154_v40, %v2154_v40  ;;  %v2170_v54 = vrot.slane %v2154_v40, %v10938_v53  ;;  %v2177_v9 = vrot.slane %v2155_v56, %v10938_v53  ;;  %v2695_v45 = vcombine.high %v2693_v27, %v2693_v27 }
 0x27e   : > { %v2709_v44 = vrot.slane %v2693_v27, %v10938_v53  ;;  %v2716_v48 = vrot.slane %v2694_v25, %v10938_v53  ;;  %5145 = vperm.xlu0 %10066, %v3560_v51   ;;  %5142 = vperm.xlu1 %10067, %v3511_v29   ;;  %v1346_v60 = vsel %vm15774_vm15, %v1308_v41, 0.0  ;;  %v1319_v36 = vsub.f32 %v13188_v33, %v1149_v61  ;;  %v13719_v27 = vld [vmem:[%s10830_s7 + $0xf0] sm:$0xff] }
 0x27f   : > { %v2184_v16 = vrot.slane %v2156_v50, %v10938_v53  ;;  %v4002_v10 = vcombine.low %v2163_v4, %v2177_v9  ;;  %v9838_v13 = vcombine.high %v2163_v4, %v2177_v9  ;;  %v2723_v46 = vrot.slane %v2695_v45, %v10938_v53  ;;  %15775 = vst [vmem:[#allocation129_spill] sm:$0xff] %v13719_v27 }
 0x280   : > { %v4541_v1 = vcombine.low %v2702_v52, %v2716_v48  ;;  %v9860_v17 = vcombine.high %v2702_v52, %v2716_v48  ;;  %v2238_v47 = vcombine.high %v1346_v60, %v1346_v60  ;;  %v2245_v34 = vrot.slane %v1346_v60, %v10938_v53 }
 0x281   : > { %v13700_v18 = vrot.slane %v9835_v37, %v10938_v53  ;;  %v13703_v30 = vrot.slane %v4445_v39, %v10938_v53  ;;  %v4004_v41 = vcombine.low %v2170_v54, %v2184_v16  ;;  %v9839_v33 = vcombine.high %v2170_v54, %v2184_v16 }
 0x282   : > { %v13706_v20 = vrot.slane %v9857_v55, %v10938_v53  ;;  %v13709_v12 = vrot.slane %v4002_v10, %v10938_v53  ;;  %v13712_v49 = vrot.slane %v9838_v13, %v10938_v53  ;;  %v4543_v40 = vcombine.low %v2709_v44, %v2723_v46 }
 0x283   : > { %v9861_v56 = vcombine.high %v2709_v44, %v2723_v46  ;;  %v13715_v4 = vrot.slane %v4541_v1, %v10938_v53  ;;  %v2252_v37 = vrot.slane %v2238_v47, %v10938_v53  ;;  %v2253_v39 = vcombine.high %v2245_v34, %v2245_v34  ;;  %v15776_v1 = vld [vmem:[#allocation177_spill] sm:$0xff] }
 0x284   : > { %vm1207_vm10 = vcmp.ne.s32.totalorder %v13719_v27, 4294967196  ;;  %v13723_v55 = vrot.slane %v4004_v41, %v10938_v53  ;;  %v13726_v61 = vrot.slane %v9839_v33, %v10938_v53  ;;  %v13729_v25 = vrot.slane %v9860_v17, %v10938_v53  ;;  %v15777_v17 = vld [vmem:[#allocation176_spill] sm:$0xff] }
 0x285   : > { %v1357_v52 = vsel %vm1205_vm11, %v1319_v36, 0.0  ;;  %v2254_v51 = vcombine.high %v2252_v37, %v2252_v37  ;;  %v2261_v29 = vrot.slane %v2245_v34, %v10938_v53  ;;  %v2275_v50 = vrot.slane %v2253_v39, %v10938_v53 }
 0x286   : > { %v2777_v54 = vcombine.high %v1357_v52, %v1357_v52  ;;  %v2268_v9 = vrot.slane %v2252_v37, %v10938_v53  ;;  %v2784_v45 = vrot.slane %v1357_v52, %v10938_v53  ;;  %v3642_v44 = vcombine.low %v13494_v7, %v13497_v62  ;;  %v1155_v52 = vpop.xlane.xlu0 %1154 }
 0x287   : > { %v3643_v48 = vcombine.low %v13502_v59, %v13508_v6  ;;  %v2282_v60 = vrot.slane %v2254_v51, %v10938_v53  ;;  %v4100_v0 = vcombine.low %v2261_v29, %v2275_v50  ;;  %v9842_v36 = vcombine.high %v2261_v29, %v2275_v50  ;;  %v1122_v59 = vpop.xlane.xlu1 %1121 }
 0x288   : > { %v2791_v16 = vrot.slane %v2777_v54, %v10938_v53  ;;  %v2792_v10 = vcombine.high %v2784_v45, %v2784_v45  ;;  %v3650_v13 = vrot.slane %v3642_v44, %v10938_v53  ;;  %v3593_v47 = vcombine.low %v15777_v17, %v15776_v1  ;;  %v15780_v17 = vld [vmem:[#allocation115_spill] sm:$0xff] }
 0x289   : > { %v3657_v46 = vrot.slane %v3643_v48, %v10938_v53  ;;  %v13748_v34 = vrot.slane %v4543_v40, %v10938_v53  ;;  %v13751_v7 = vrot.slane %v9861_v56, %v10938_v53  ;;  %v4102_v6 = vcombine.low %v2268_v9, %v2282_v60 }
 0x28a   : > { %v13754_v62 = vrot.slane %v2784_v45, %v10938_v53  ;;  %v9843_v41 = vcombine.high %v2268_v9, %v2282_v60  ;;  %v2793_v33 = vcombine.high %v2791_v16, %v2791_v16  ;;  %v13757_v37 = vrot.slane %v2792_v10, %v10938_v53  ;;  %v15778_v45 = vld [vmem:[#allocation36_spill] sm:$0xff]  ;;  %v15779_v60 = vld [vmem:[#allocation167_spill] sm:$0xff] }
 0x28b   : > { %v3658_v39 = vcombine.low %v3650_v13, %v3657_v46  ;;  %v13760_v51 = vrot.slane %v4100_v0, %v10938_v53  ;;  %v13763_v40 = vrot.slane %v9842_v36, %v10938_v53  ;;  %v2807_v56 = vrot.slane %v2791_v16, %v10938_v53 }
 0x28c   : > { %v3594_v29 = vcombine.low %v13312_v35, %v13315_v23  ;;  %v2821_v50 = vrot.slane %v2793_v33, %v10938_v53  ;;  %v4639_v54 = vcombine.low %v13754_v62, %v13757_v37  ;;  %v3601_v9 = vrot.slane %v3593_v47, %v10938_v53 }
 0x28d   : > { %5151 = vperm.xlu0 %10066, %v3658_v39   ;;  %v1310_v44 = vsub.f32 %v15778_v45, %v1122_v59  ;;  %v1321_v0 = vsub.f32 %v15779_v60, %v1155_v52  ;;  %v3740_v36 = vcombine.low %v13538_v63, %v13541_v19  ;;  %v3741_v35 = vcombine.low %v13546_v2, %v13557_v8  ;;  %v13797_v59 = vld [vmem:[%s10830_s7 + $0x100] sm:$0xff] }
 0x28e   : > { %v3608_v48 = vrot.slane %v3594_v29, %v10938_v53  ;;  %v13780_v23 = vrot.slane %v4102_v6, %v10938_v53  ;;  %v13783_v16 = vrot.slane %v9843_v41, %v10938_v53  ;;  %v9864_v10 = vcombine.high %v13754_v62, %v13757_v37  ;;  %15782 = vst [vmem:[#allocation177_spill] sm:$0xff] %v13797_v59  ;;  %v15783_v37 = vld [vmem:[#allocation178_spill] sm:$0xff] }
 0x28f   : > { %v4641_v13 = vcombine.low %v2807_v56, %v2821_v50  ;;  %v9865_v46 = vcombine.high %v2807_v56, %v2821_v50  ;;  %vm15781_vm11 = vcmp.ne.s32.totalorder %v15780_v17, 4294967196  ;;  %v1359_v63 = vsel %vm1207_vm10, %v1321_v0, 0.0  ;;  %v15784_v50 = vld [vmem:[#allocation34_spill] sm:$0xff]  ;;  %v1128_v0 = vpop.xlane.xlu1 %1127 }
 0x290   : > { %v3609_v1 = vcombine.low %v3601_v9, %v3608_v48  ;;  %v1348_v47 = vsel %vm15781_vm11, %v1310_v44, 0.0  ;;  %v13792_v8 = vrot.slane %v4639_v54, %v10938_v53  ;;  %v3748_v6 = vrot.slane %v3740_v36, %v10938_v53  ;;  %v15785_v54 = vld [vmem:[#allocation179_spill] sm:$0xff] }
 0x291   : > { %v2336_v19 = vcombine.high %v1348_v47, %v1348_v47  ;;  %v2343_v2 = vrot.slane %v1348_v47, %v10938_v53  ;;  %vm1209_vm7 = vcmp.ne.s32.totalorder %v13797_v59, 4294967196  ;;  %v2875_v62 = vcombine.high %v1359_v63, %v1359_v63 }
 0x292   : > { %5148 = vperm.xlu1 %10067, %v3609_v1   ;;  %v2882_v41 = vrot.slane %v1359_v63, %v10938_v53  ;;  %v3755_v33 = vrot.slane %v3741_v35, %v10938_v53  ;;  %v3691_v39 = vcombine.low %v15783_v37, %v13326_v43  ;;  %v3692_v9 = vcombine.low %v15785_v54, %v15784_v50  ;;  %v1161_v50 = vpop.xlane.xlu0 %1160 }
 0x293   : > { %v2350_v52 = vrot.slane %v2336_v19, %v10938_v53  ;;  %v2351_v56 = vcombine.high %v2343_v2, %v2343_v2  ;;  %v2359_v29 = vrot.slane %v2343_v2, %v10938_v53  ;;  %v2889_v45 = vrot.slane %v2875_v62, %v10938_v53 }
 0x294   : > { %v2890_v44 = vcombine.high %v2882_v41, %v2882_v41  ;;  %v2898_v48 = vrot.slane %v2882_v41, %v10938_v53  ;;  %v3756_v60 = vcombine.low %v3748_v6, %v3755_v33  ;;  %v3699_v1 = vrot.slane %v3691_v39, %v10938_v53  ;;  %v15786_v41 = vld [vmem:[#allocation166_spill] sm:$0xff] }
 0x295   : > { %v2352_v36 = vcombine.high %v2350_v52, %v2350_v52  ;;  %v2366_v35 = vrot.slane %v2350_v52, %v10938_v53  ;;  %v2373_v43 = vrot.slane %v2351_v56, %v10938_v53  ;;  %v2891_v17 = vcombine.high %v2889_v45, %v2889_v45 }
 0x296   : > { %v13814_v47 = vrot.slane %v2889_v45, %v10938_v53  ;;  %v2912_v63 = vrot.slane %v2890_v44, %v10938_v53  ;;  %5157 = vperm.xlu0 %10066, %v3756_v60   ;;  %v3706_v19 = vrot.slane %v3692_v9, %v10938_v53  ;;  %v1312_v33 = vsub.f32 %v15786_v41, %v1128_v0 }
 0x297   : > { %v2380_v2 = vrot.slane %v2352_v36, %v10938_v53  ;;  %v4198_v6 = vcombine.low %v2359_v29, %v2373_v43  ;;  %v9846_v62 = vcombine.high %v2359_v29, %v2373_v43  ;;  %v2919_v37 = vrot.slane %v2891_v17, %v10938_v53  ;;  %v15789_v36 = vld [vmem:[#allocation50_spill] sm:$0xff]  ;;  %v15791_v43 = vld [vmem:[#allocation35_spill] sm:$0xff] }
 0x298   : > { %v4737_v52 = vcombine.low %v2898_v48, %v2912_v63  ;;  %v9868_v56 = vcombine.high %v2898_v48, %v2912_v63  ;;  %v3707_v39 = vcombine.low %v3699_v1, %v3706_v19  ;;  %v13822_v54 = vrot.slane %v9864_v10, %v10938_v53 }
 0x299   : > { %v13825_v45 = vrot.slane %v4641_v13, %v10938_v53  ;;  %v4200_v9 = vcombine.low %v2366_v35, %v2380_v2  ;;  %v9847_v44 = vcombine.high %v2366_v35, %v2380_v2  ;;  %v13828_v60 = vrot.slane %v9865_v46, %v10938_v53  ;;  %v13852_v2 = vld [vmem:[%s10830_s7 + $0x110] sm:$0xff] }
 0x29a   : > { %v13831_v29 = vrot.slane %v4198_v6, %v10938_v53  ;;  %v13834_v0 = vrot.slane %v9846_v62, %v10938_v53  ;;  %v4739_v48 = vcombine.low %v13814_v47, %v2919_v37  ;;  %5154 = vperm.xlu1 %10067, %v3707_v39   ;;  %v9869_v10 = vcombine.high %v13814_v47, %v2919_v37  ;;  %v15795_v39 = vld [vmem:[#allocation180_spill] sm:$0xff] }
 0x29b   : > { %15787 = vst [vmem:[#allocation176_spill] sm:$0xff] %v13825_v45  ;;  %v13839_v13 = vrot.slane %v4737_v52, %v10938_v53  ;;  %vm15790_vm13 = vcmp.ne.s32.totalorder %v15789_v36, 4294967196  ;;  %v1323_v46 = vsub.f32 %v15791_v43, %v1161_v50  ;;  %v13845_v1 = vrot.slane %v4200_v9, %v10938_v53  ;;  %15793 = vst [vmem:[#allocation115_spill] sm:$0xff] %v13852_v2  ;;  %v15797_v43 = vld [vmem:[#allocation182_spill] sm:$0xff] }
 0x29c   : > { %v1350_v35 = vsel %vm15790_vm13, %v1312_v33, 0.0  ;;  %v13848_v17 = vrot.slane %v9868_v56, %v10938_v53  ;;  %vm1211_vm4 = vcmp.ne.s32.totalorder %v13852_v2, 4294967196  ;;  %v13856_v47 = vrot.slane %v9847_v44, %v10938_v53  ;;  %v15794_v56 = vld [vmem:[#allocation181_spill] sm:$0xff] }
 0x29d   : > { %15788 = vst [vmem:[#allocation36_spill] sm:$0xff] %v13839_v13  ;;  %v2434_v63 = vcombine.high %v1350_v35, %v1350_v35  ;;  %v2441_v19 = vrot.slane %v1350_v35, %v10938_v53  ;;  %v1361_v6 = vsel %vm1209_vm7, %v1323_v46, 0.0  ;;  %v3838_v62 = vcombine.low %v13576_v31, %v13579_v3  ;;  %v15796_v35 = vld [vmem:[#allocation37_spill] sm:$0xff] }
 0x29e   : > { %15792 = vst [vmem:[#allocation167_spill] sm:$0xff] %v13848_v17  ;;  %v3839_v41 = vcombine.low %v13586_v14, %v13597_v26  ;;  %v2973_v52 = vcombine.high %v1361_v6, %v1361_v6  ;;  %v3789_v50 = vcombine.low %v15795_v39, %v15794_v56  ;;  %v2980_v9 = vrot.slane %v1361_v6, %v10938_v53 }
 0x29f   : > { %v2448_v33 = vrot.slane %v2434_v63, %v10938_v53  ;;  %v2449_v37 = vcombine.high %v2441_v19, %v2441_v19  ;;  %v3846_v44 = vrot.slane %v3838_v62, %v10938_v53  ;;  %v3790_v46 = vcombine.low %v15797_v43, %v15796_v35  ;;  %v1134_v63 = vpop.xlane.xlu1 %1133 }
 0x2a0   : > { %v3853_v36 = vrot.slane %v3839_v41, %v10938_v53  ;;  %v2457_v3 = vrot.slane %v2441_v19, %v10938_v53  ;;  %v2987_v26 = vrot.slane %v2973_v52, %v10938_v53  ;;  %v2988_v56 = vcombine.high %v2980_v9, %v2980_v9  ;;  %v15798_v52 = vld [vmem:[#allocation168_spill] sm:$0xff] }
 0x2a1   : > { %v2450_v31 = vcombine.high %v2448_v33, %v2448_v33  ;;  %v2471_v14 = vrot.slane %v2449_v37, %v10938_v53  ;;  %v2464_v59 = vrot.slane %v2448_v33, %v10938_v53  ;;  %v13877_v6 = vrot.slane %v2980_v9, %v10938_v53  ;;  %v1167_v33 = vpop.xlane.xlu0 %1166 }
 0x2a2   : > { %v3854_v62 = vcombine.low %v3846_v44, %v3853_v36  ;;  %v2989_v35 = vcombine.high %v2987_v26, %v2987_v26  ;;  %v3010_v43 = vrot.slane %v2988_v56, %v10938_v53  ;;  %v3797_v19 = vrot.slane %v3789_v50, %v10938_v53  ;;  %v15803_v56 = vld [vmem:[#allocation169_spill] sm:$0xff] }
 0x2a3   : > { %v2478_v41 = vrot.slane %v2450_v31, %v10938_v53  ;;  %v4296_v39 = vcombine.low %v2457_v3, %v2471_v14  ;;  %v9850_v27 = vcombine.high %v2457_v3, %v2471_v14  ;;  %v3804_v37 = vrot.slane %v3790_v46, %v10938_v53 }
 0x2a4   : > { %5163 = vperm.xlu0 %10066, %v3854_v62   ;;  %v1314_v13 = vsub.f32 %v15798_v52, %v1134_v63  ;;  %v13885_v17 = vrot.slane %v4739_v48, %v10938_v53  ;;  %v13888_v9 = vrot.slane %v9869_v10, %v10938_v53  ;;  %v3003_v31 = vrot.slane %v2987_v26, %v10938_v53  ;;  %v15801_v48 = vld [vmem:[#allocation124_spill] sm:$0xff] }
 0x2a5   : > { %v4298_v44 = vcombine.low %v2464_v59, %v2478_v41  ;;  %v9851_v36 = vcombine.high %v2464_v59, %v2478_v41  ;;  %v3017_v3 = vrot.slane %v2989_v35, %v10938_v53  ;;  %v4835_v14 = vcombine.low %v13877_v6, %v3010_v43 }
 0x2a6   : > { %15799 = vst [vmem:[#allocation178_spill] sm:$0xff] %v13885_v17  ;;  %15800 = vst [vmem:[#allocation34_spill] sm:$0xff] %v13888_v9  ;;  %v3805_v50 = vcombine.low %v3797_v19, %v3804_v37  ;;  %v13894_v46 = vrot.slane %v4296_v39, %v10938_v53  ;;  %v13897_v63 = vrot.slane %v9850_v27, %v10938_v53  ;;  %vm15802_vm8 = vcmp.ne.s32.totalorder %v15801_v48, 4294967196  ;;  %v15809_v9 = vld [vmem:[#allocation185_spill] sm:$0xff] }
 0x2a7   : > { %v1352_v10 = vsel %vm15802_vm8, %v1314_v13, 0.0  ;;  %v1325_v62 = vsub.f32 %v15803_v56, %v1167_v33  ;;  %v13903_v59 = vrot.slane %v4298_v44, %v10938_v53  ;;  %v13906_v26 = vrot.slane %v9851_v36, %v10938_v53  ;;  %v13919_v36 = vld [vmem:[%s10830_s7 + $0x120] sm:$0xff] }
 0x2a8   : > { %v9872_v41 = vcombine.high %v13877_v6, %v3010_v43  ;;  %v4837_v35 = vcombine.low %v3003_v31, %v3017_v3  ;;  %5160 = vperm.xlu1 %10067, %v3805_v50   ;;  %v2532_v39 = vcombine.high %v1352_v10, %v1352_v10  ;;  %v2539_v27 = vrot.slane %v1352_v10, %v10938_v53 }
 0x2a9   : > { %v1363_v19 = vsel %vm1211_vm4, %v1325_v62, 0.0  ;;  %v3936_v13 = vcombine.low %v13644_v42, %v13647_v11  ;;  %v9873_v37 = vcombine.high %v3003_v31, %v3017_v3  ;;  %v13915_v52 = vrot.slane %v4835_v14, %v10938_v53  ;;  %15805 = vst [vmem:[#allocation166_spill] sm:$0xff] %v13919_v36 }
 0x2aa   : > { %v3071_v33 = vcombine.high %v1363_v19, %v1363_v19  ;;  %v3078_v44 = vrot.slane %v1363_v19, %v10938_v53  ;;  %vm1213_vm1 = vcmp.ne.s32.totalorder %v13919_v36, 4294967196  ;;  %v2546_v6 = vrot.slane %v2532_v39, %v10938_v53  ;;  %v15807_v19 = vld [vmem:[#allocation183_spill] sm:$0xff]  ;;  %v15820_v36 = vld [vmem:[#allocation174_spill] sm:$0xff] }
 0x2ab   : > { %15804 = vst [vmem:[#allocation179_spill] sm:$0xff] %v13915_v52  ;;  %v2547_v43 = vcombine.high %v2539_v27, %v2539_v27  ;;  %v2555_v50 = vrot.slane %v2539_v27, %v10938_v53  ;;  %v3937_v48 = vcombine.low %v13659_v28, %v13700_v18  ;;  %v3944_v3 = vrot.slane %v3936_v13, %v10938_v53  ;;  %v15806_v18 = vld [vmem:[#allocation184_spill] sm:$0xff] }
 0x2ac   : > { %v3085_v42 = vrot.slane %v3071_v33, %v10938_v53  ;;  %v3086_v11 = vcombine.high %v3078_v44, %v3078_v44  ;;  %v3094_v31 = vrot.slane %v3078_v44, %v10938_v53  ;;  %v2548_v14 = vcombine.high %v2546_v6, %v2546_v6 }
 0x2ad   : > { %v2562_v10 = vrot.slane %v2546_v6, %v10938_v53  ;;  %v2569_v56 = vrot.slane %v2547_v43, %v10938_v53  ;;  %v3951_v62 = vrot.slane %v3937_v48, %v10938_v53  ;;  %v3887_v33 = vcombine.low %v15807_v19, %v15806_v18  ;;  %v15808_v48 = vld [vmem:[#allocation186_spill] sm:$0xff]  ;;  %v15813_v19 = vld [vmem:[#allocation39_spill] sm:$0xff] }
 0x2ae   : > { %v3087_v39 = vcombine.high %v3085_v42, %v3085_v42  ;;  %v13933_v27 = vrot.slane %v3085_v42, %v10938_v53  ;;  %v3108_v28 = vrot.slane %v3086_v11, %v10938_v53  ;;  %v2576_v44 = vrot.slane %v2548_v14, %v10938_v53 }
 0x2af   : > { %v4394_v2 = vcombine.low %v2555_v50, %v2569_v56  ;;  %v9854_v13 = vcombine.high %v2555_v50, %v2569_v56  ;;  %v3952_v52 = vcombine.low %v3944_v3, %v3951_v62  ;;  %v3888_v45 = vcombine.low %v15809_v9, %v15808_v48  ;;  %v1140_v50 = vpop.xlane.xlu1 %1139  ;;  %v1173_v3 = vpop.xlane.xlu0 %1172  ;;  %v15815_v48 = vld [vmem:[#allocation62_spill] sm:$0xff] }
 0x2b0   : > { %v13940_v6 = vrot.slane %v3087_v39, %v10938_v53  ;;  %v4933_v43 = vcombine.low %v3094_v31, %v3108_v28  ;;  %v9876_v17 = vcombine.high %v3094_v31, %v3108_v28  ;;  %v13945_v42 = vrot.slane %v9872_v41, %v10938_v53  ;;  %v15812_v39 = vld [vmem:[#allocation170_spill] sm:$0xff] }
 0x2b1   : > { %v13948_v11 = vrot.slane %v4837_v35, %v10938_v53  ;;  %v13951_v18 = vrot.slane %v9873_v37, %v10938_v53  ;;  %v4396_v14 = vcombine.low %v2562_v10, %v2576_v44  ;;  %5169 = vperm.xlu0 %10066, %v3952_v52   ;;  %v9855_v56 = vcombine.high %v2562_v10, %v2576_v44 }
 0x2b2   : > { %v13954_v62 = vrot.slane %v4394_v2, %v10938_v53  ;;  %v13957_v31 = vrot.slane %v9854_v13, %v10938_v53  ;;  %v4935_v9 = vcombine.low %v13933_v27, %v13940_v6  ;;  %v9877_v41 = vcombine.high %v13933_v27, %v13940_v6 }
 0x2b3   : > { %v13964_v35 = vrot.slane %v4933_v43, %v10938_v53  ;;  %v3895_v37 = vrot.slane %v3887_v33, %v10938_v53  ;;  %v3902_v52 = vrot.slane %v3888_v45, %v10938_v53  ;;  %v13969_v10 = vrot.slane %v4396_v14, %v10938_v53  ;;  %v15814_v33 = vld [vmem:[#allocation41_spill] sm:$0xff] }
 0x2b4   : > { %v13972_v2 = vrot.slane %v9876_v17, %v10938_v53  ;;  %v1316_v28 = vsub.f32 %v15812_v39, %v1140_v50  ;;  %v1327_v44 = vsub.f32 %v15813_v19, %v1173_v3  ;;  %v4034_v27 = vcombine.low %v13709_v12, %v13712_v49  ;;  %v15817_v50 = vld [vmem:[#allocation188_spill] sm:$0xff]  ;;  %v15818_v3 = vld [vmem:[#allocation187_spill] sm:$0xff] }
 0x2b5   : > { %15810 = vst [vmem:[#allocation50_spill] sm:$0xff] %v13964_v35  ;;  %v3903_v13 = vcombine.low %v3895_v37, %v3902_v52  ;;  %v4035_v6 = vcombine.low %v13723_v55, %v13726_v61  ;;  %v3985_v45 = vcombine.low %v15814_v33, %v13436_v58  ;;  %v13983_v43 = vrot.slane %v9855_v56, %v10938_v53  ;;  %v1146_v33 = vpop.xlane.xlu1 %1145  ;;  %v15829_v35 = vld [vmem:[#allocation191_spill] sm:$0xff] }
 0x2b6   : > { %15811 = vst [vmem:[#allocation35_spill] sm:$0xff] %v13972_v2  ;;  %vm15816_vm2 = vcmp.ne.s32.totalorder %v15815_v48, 4294967196  ;;  %v1365_v14 = vsel %vm1213_vm1, %v1327_v44, 0.0  ;;  %v3986_v37 = vcombine.low %v15818_v3, %v15817_v50  ;;  %v4042_v58 = vrot.slane %v4034_v27, %v10938_v53  ;;  %v15819_v50 = vld [vmem:[#allocation171_spill] sm:$0xff] }
 0x2b7   : > { %v1354_v17 = vsel %vm15816_vm2, %v1316_v28, 0.0  ;;  %5166 = vperm.xlu1 %10067, %v3903_v13   ;;  %v3169_v55 = vcombine.high %v1365_v14, %v1365_v14  ;;  %v3176_v61 = vrot.slane %v1365_v14, %v10938_v53  ;;  %v4049_v56 = vrot.slane %v4035_v6, %v10938_v53 }
 0x2b8   : > { %v2630_v12 = vcombine.high %v1354_v17, %v1354_v17  ;;  %v2637_v49 = vrot.slane %v1354_v17, %v10938_v53  ;;  %v3993_v52 = vrot.slane %v3985_v45, %v10938_v53  ;;  %v4000_v39 = vrot.slane %v3986_v37, %v10938_v53 }
 0x2b9   : > { %v13998_v28 = vrot.slane %v4935_v9, %v10938_v53  ;;  %v3183_v13 = vrot.slane %v3169_v55, %v10938_v53  ;;  %v3184_v48 = vcombine.high %v3176_v61, %v3176_v61  ;;  %v4050_v17 = vcombine.low %v4042_v58, %v4049_v56 }
 0x2ba   : > { %v2644_v19 = vrot.slane %v2630_v12, %v10938_v53  ;;  %v2645_v44 = vcombine.high %v2637_v49, %v2637_v49  ;;  %v4001_v14 = vcombine.low %v3993_v52, %v4000_v39  ;;  %v1270_v27 = vmul.f32 0.6931472, %v15819_v50  ;;  %v15825_v50 = vld [vmem:[#allocation43_spill] sm:$0xff] }
 0x2bb   : > { %v2653_v6 = vrot.slane %v2637_v49, %v10938_v53  ;;  %v3185_v37 = vcombine.high %v3183_v13, %v3183_v13  ;;  %10294 = vlog2.f32 %v15820_v36  ;;  %v14008_v12 = vrot.slane %v3184_v48, %v10938_v53  ;;  %5175 = vperm.xlu0 %10066, %v4050_v17  }
 0x2bc   : > { %v2646_v3 = vcombine.high %v2644_v19, %v2644_v19  ;;  %v2667_v45 = vrot.slane %v2645_v44, %v10938_v53  ;;  %v2660_v9 = vrot.slane %v2644_v19, %v10938_v53  ;;  %5172 = vperm.xlu1 %10067, %v4001_v14   ;;  %v1318_v55 = vsub.f32 %v1270_v27, %v1146_v33  ;;  %v15823_v19 = vld [vmem:[#allocation140_spill] sm:$0xff] }
 0x2bd   : > { %15821 = vst [vmem:[#allocation181_spill] sm:$0xff] %v14008_v12  ;;  %v14012_v39 = vrot.slane %v3185_v37, %v10938_v53  ;;  %v14015_v49 = vrot.slane %v9877_v41, %v10938_v53  ;;  %v14018_v36 = vrot.slane %v3176_v61, %v10938_v53  ;;  %vm15824_vm5 = vcmp.ne.s32.totalorder %v15823_v19, 4294967196  ;;  %v1152_v37 = vpop.xlane.xlu1 %1151  ;;  %v15827_v61 = vld [vmem:[#allocation189_spill] sm:$0xff] }
 0x2be   : > { %v2674_v58 = vrot.slane %v2646_v3, %v10938_v53  ;;  %v4492_v56 = vcombine.low %v2653_v6, %v2667_v45  ;;  %v9858_v52 = vcombine.high %v2653_v6, %v2667_v45  ;;  %v1356_v44 = vsel %vm15824_vm5, %v1318_v55, 0.0  ;;  %v15826_v6 = vld [vmem:[#allocation190_spill] sm:$0xff] }
 0x2bf   : > { %15822 = vst [vmem:[#allocation180_spill] sm:$0xff] %v14018_v36  ;;  %v4132_v48 = vcombine.low %v13760_v51, %v13763_v40  ;;  %v14025_v14 = vrot.slane %v3183_v13, %v10938_v53  ;;  %v1274_v27 = vmul.f32 0.6931472, %v15825_v50  ;;  %v2728_v13 = vcombine.high %v1356_v44, %v1356_v44 }
 0x2c0   : > { %v4494_v33 = vcombine.low %v2660_v9, %v2674_v58  ;;  %v9859_v17 = vcombine.high %v2660_v9, %v2674_v58  ;;  %v14029_v3 = vrot.slane %v4492_v56, %v10938_v53  ;;  %v14032_v41 = vrot.slane %v9858_v52, %v10938_v53 }
 0x2c1   : > { %v5033_v51 = vcombine.low %v14025_v14, %v14012_v39  ;;  %v2735_v45 = vrot.slane %v1356_v44, %v10938_v53  ;;  %v4133_v58 = vcombine.low %v13780_v23, %v13783_v16  ;;  %v4140_v56 = vrot.slane %v4132_v48, %v10938_v53 }
 0x2c2   : > { %v14044_v9 = vrot.slane %v4494_v33, %v10938_v53  ;;  %v14047_v55 = vrot.slane %v9859_v17, %v10938_v53  ;;  %v2742_v52 = vrot.slane %v2728_v13, %v10938_v53  ;;  %v4083_v44 = vcombine.low %v15827_v61, %v15826_v6  ;;  %v15828_v33 = vld [vmem:[#allocation38_spill] sm:$0xff] }
 0x2c3   : > { %v2743_v19 = vcombine.high %v2735_v45, %v2735_v45  ;;  %v2751_v50 = vrot.slane %v2735_v45, %v10938_v53  ;;  %v4147_v40 = vrot.slane %v4133_v58, %v10938_v53  ;;  %v4084_v2 = vcombine.low %v15829_v35, %v15828_v33  ;;  %v15830_v6 = vld [vmem:[#allocation114_spill] sm:$0xff] }
 0x2c4   : > { %v1320_v17 = vsub.f32 %v1274_v27, %v1152_v37  ;;  %v4230_v12 = vcombine.low %v13831_v29, %v13834_v0  ;;  %v2744_v23 = vcombine.high %v2742_v52, %v2742_v52  ;;  %v2758_v16 = vrot.slane %v2742_v52, %v10938_v53 }
 0x2c5   : > { %v2765_v48 = vrot.slane %v2743_v19, %v10938_v53  ;;  %v4091_v13 = vrot.slane %v4083_v44, %v10938_v53  ;;  %v14064_v45 = vpop.eup %10294  ;;  %v4148_v36 = vcombine.low %v4140_v56, %v4147_v40  ;;  %v4098_v61 = vrot.slane %v4084_v2, %v10938_v53 }
 0x2c6   : > { %vm15831_vm0 = vcmp.ne.s32.totalorder %v15830_v6, 4294967196  ;;  %v4231_v35 = vcombine.low %v13845_v1, %v13856_v47  ;;  %v2772_v29 = vrot.slane %v2744_v23, %v10938_v53  ;;  %v4238_v44 = vrot.slane %v4230_v12, %v10938_v53  ;;  %v1158_v23 = vpop.xlane.xlu1 %1157  ;;  %v15835_v6 = vld [vmem:[#allocation194_spill] sm:$0xff] }
 0x2c7   : > { %v1358_v58 = vsel %vm15831_vm0, %v1320_v17, 0.0  ;;  %v4590_v0 = vcombine.low %v2751_v50, %v2765_v48  ;;  %v9862_v27 = vcombine.high %v2751_v50, %v2765_v48  ;;  %5181 = vperm.xlu0 %10066, %v4148_v36   ;;  %v4099_v52 = vcombine.low %v4091_v13, %v4098_v61  ;;  %v15832_v48 = vld [vmem:[#allocation193_spill] sm:$0xff]  ;;  %v15833_v13 = vld [vmem:[#allocation192_spill] sm:$0xff] }
 0x2c8   : > { %v2826_v37 = vcombine.high %v1358_v58, %v1358_v58  ;;  %v2833_v19 = vrot.slane %v1358_v58, %v10938_v53  ;;  %v4245_v40 = vrot.slane %v4231_v35, %v10938_v53  ;;  %v14076_v2 = vrot.slane %v5033_v51, %v10938_v53  ;;  %v15834_v61 = vld [vmem:[#allocation40_spill] sm:$0xff] }
 0x2c9   : > { %v4592_v56 = vcombine.low %v2758_v16, %v2772_v29  ;;  %v9863_v33 = vcombine.high %v2758_v16, %v2772_v29  ;;  %v14079_v1 = vrot.slane %v4590_v0, %v10938_v53  ;;  %v14082_v47 = vrot.slane %v9862_v27, %v10938_v53  ;;  %5178 = vperm.xlu1 %10067, %v4099_v52   ;;  %v15836_v27 = vld [vmem:[#allocation172_spill] sm:$0xff] }
 0x2ca   : > { %v2840_v36 = vrot.slane %v2826_v37, %v10938_v53  ;;  %v2841_v50 = vcombine.high %v2833_v19, %v2833_v19  ;;  %v4246_v17 = vcombine.low %v4238_v44, %v4245_v40  ;;  %v2849_v51 = vrot.slane %v2833_v19, %v10938_v53 }
 0x2cb   : > { %v14086_v12 = vrot.slane %v4592_v56, %v10938_v53  ;;  %v4181_v16 = vcombine.low %v15833_v13, %v15832_v48  ;;  %v4182_v58 = vcombine.low %v15835_v6, %v15834_v61  ;;  %v1278_v37 = vmul.f32 0.6931472, %v15836_v27 }
 0x2cc   : > { %v2842_v35 = vcombine.high %v2840_v36, %v2840_v36  ;;  %v2856_v29 = vrot.slane %v2840_v36, %v10938_v53  ;;  %v2863_v0 = vrot.slane %v2841_v50, %v10938_v53  ;;  %5187 = vperm.xlu0 %10066, %v4246_v17   ;;  %v4328_v19 = vcombine.low %v13894_v46, %v13897_v63 }
 0x2cd   : > { %v4189_v52 = vrot.slane %v4181_v16, %v10938_v53  ;;  %v4196_v44 = vrot.slane %v4182_v58, %v10938_v53  ;;  %v4329_v40 = vcombine.low %v13903_v59, %v13906_v26  ;;  %v1322_v36 = vsub.f32 %v1278_v37, %v1158_v23  ;;  %v1164_v26 = vpop.xlane.xlu1 %1163  ;;  %v15837_v23 = vld [vmem:[#allocation11_spill] sm:$0xff] }
 0x2ce   : > { %v2870_v56 = vrot.slane %v2842_v35, %v10938_v53  ;;  %v4688_v48 = vcombine.low %v2849_v51, %v2863_v0  ;;  %v9866_v13 = vcombine.high %v2849_v51, %v2863_v0  ;;  %v4336_v50 = vrot.slane %v4328_v19, %v10938_v53  ;;  %v15839_v0 = vld [vmem:[#allocation195_spill] sm:$0xff] }
 0x2cf   : > { %v4197_v61 = vcombine.low %v4189_v52, %v4196_v44  ;;  %v4343_v17 = vrot.slane %v4329_v40, %v10938_v53  ;;  %v4279_v16 = vcombine.low %v13560_v15, %v13563_v24  ;;  %v14108_v6 = vrot.slane %v9863_v33, %v10938_v53  ;;  %v15840_v52 = vld [vmem:[#allocation173_spill] sm:$0xff] }
 0x2d0   : > { %v4690_v46 = vcombine.low %v2856_v29, %v2870_v56  ;;  %v9867_v63 = vcombine.high %v2856_v29, %v2870_v56  ;;  %v14111_v59 = vrot.slane %v4688_v48, %v10938_v53  ;;  %v14114_v51 = vrot.slane %v9866_v13, %v10938_v53  ;;  %v15841_v13 = vld [vmem:[#allocation42_spill] sm:$0xff] }
 0x2d1   : > { %5184 = vperm.xlu1 %10067, %v4197_v61   ;;  %vm15838_vm9 = vcmp.ne.s32.totalorder %v15837_v23, 4294967196  ;;  %v4344_v35 = vcombine.low %v4336_v50, %v4343_v17  ;;  %v4280_v15 = vcombine.low %v15839_v0, %v13570_v22  ;;  %v4287_v27 = vrot.slane %v4279_v16, %v10938_v53  ;;  %v15842_v23 = vld [vmem:[#allocation19_spill] sm:$0xff] }
 0x2d2   : > { %v1360_v58 = vsel %vm15838_vm9, %v1322_v36, 0.0  ;;  %v14121_v24 = vrot.slane %v4690_v46, %v10938_v53  ;;  %v1282_v44 = vmul.f32 0.6931472, %v15840_v52  ;;  %v4426_v19 = vcombine.low %v13954_v62, %v13957_v31 }
 0x2d3   : > { %v2924_v33 = vcombine.high %v1360_v58, %v1360_v58  ;;  %v2931_v29 = vrot.slane %v1360_v58, %v10938_v53  ;;  %5193 = vperm.xlu0 %10066, %v4344_v35   ;;  %v4294_v37 = vrot.slane %v4280_v15, %v10938_v53  ;;  %v4427_v40 = vcombine.low %v13969_v10, %v13983_v43  ;;  %v1170_v43 = vpop.xlane.xlu1 %1169  ;;  %v15844_v58 = vld [vmem:[#allocation175_spill] sm:$0xff] }
 0x2d4   : > { %v14132_v22 = vrot.slane %v9867_v63, %v10938_v53  ;;  %v4377_v36 = vcombine.low %v15841_v13, %v13631_v38  ;;  %v1324_v50 = vsub.f32 %v1282_v44, %v1164_v26  ;;  %v4434_v17 = vrot.slane %v4426_v19, %v10938_v53 }
 0x2d5   : > { %v2938_v56 = vrot.slane %v2924_v33, %v10938_v53  ;;  %v2939_v48 = vcombine.high %v2931_v29, %v2931_v29  ;;  %v4295_v61 = vcombine.low %v4287_v27, %v4294_v37  ;;  %v4441_v16 = vrot.slane %v4427_v40, %v10938_v53 }
 0x2d6   : > { %v2947_v62 = vrot.slane %v2931_v29, %v10938_v53  ;;  %v4378_v10 = vcombine.low %v13634_v21, %v13637_v5  ;;  %vm15843_vm12 = vcmp.ne.s32.totalorder %v15842_v23, 4294967196  ;;  %v1286_v35 = vmul.f32 0.6931472, %v15844_v58 }
 0x2d7   : > { %v2940_v46 = vcombine.high %v2938_v56, %v2938_v56  ;;  %v2961_v31 = vrot.slane %v2939_v48, %v10938_v53  ;;  %v2954_v63 = vrot.slane %v2938_v56, %v10938_v53  ;;  %5190 = vperm.xlu1 %10067, %v4295_v61   ;;  %v1362_v38 = vsel %vm15843_vm12, %v1324_v50, 0.0 }
 0x2d8   : > { %v4442_v26 = vcombine.low %v4434_v17, %v4441_v16  ;;  %v3022_v29 = vcombine.high %v1362_v38, %v1362_v38  ;;  %v3029_v27 = vrot.slane %v1362_v38, %v10938_v53  ;;  %v4385_v21 = vrot.slane %v4377_v36, %v10938_v53  ;;  %v15845_v17 = vld [vmem:[#allocation103_spill] sm:$0xff] }
 0x2d9   : > { %v2968_v0 = vrot.slane %v2940_v46, %v10938_v53  ;;  %v4786_v15 = vcombine.low %v2947_v62, %v2961_v31  ;;  %v9870_v33 = vcombine.high %v2947_v62, %v2961_v31  ;;  %v4392_v5 = vrot.slane %v4378_v10, %v10938_v53 }
 0x2da   : > { %5199 = vperm.xlu0 %10066, %v4442_v26   ;;  %v1326_v37 = vsub.f32 %v1286_v35, %v1170_v43  ;;  %v4524_v40 = vcombine.low %v14029_v3, %v14032_v41  ;;  %v3036_v48 = vrot.slane %v3022_v29, %v10938_v53  ;;  %v3037_v13 = vcombine.high %v3029_v27, %v3029_v27 }
 0x2db   : > { %v4788_v52 = vcombine.low %v2954_v63, %v2968_v0  ;;  %v9871_v44 = vcombine.high %v2954_v63, %v2968_v0  ;;  %v14152_v19 = vrot.slane %v4786_v15, %v10938_v53  ;;  %v14157_v56 = vrot.slane %v9870_v33, %v10938_v53 }
 0x2dc   : > { %v4393_v61 = vcombine.low %v4385_v21, %v4392_v5  ;;  %v3045_v50 = vrot.slane %v3029_v27, %v10938_v53  ;;  %vm15846_vm14 = vcmp.ne.s32.totalorder %v15845_v17, 4294967196  ;;  %v4525_v46 = vcombine.low %v14044_v9, %v14047_v55 }
 0x2dd   : > { %v14161_v36 = vrot.slane %v4788_v52, %v10938_v53  ;;  %v1364_v16 = vsel %vm15846_vm14, %v1326_v37, 0.0  ;;  %v3038_v62 = vcombine.high %v3036_v48, %v3036_v48  ;;  %v3052_v3 = vrot.slane %v3036_v48, %v10938_v53  ;;  %v1176_v52 = vpop.xlane.xlu1 %1175 }
 0x2de   : > { %v3059_v41 = vrot.slane %v3037_v13, %v10938_v53  ;;  %5196 = vperm.xlu1 %10067, %v4393_v61   ;;  %v3120_v31 = vcombine.high %v1364_v16, %v1364_v16  ;;  %v3127_v10 = vrot.slane %v1364_v16, %v10938_v53  ;;  %v4532_v43 = vrot.slane %v4524_v40, %v10938_v53 }
 0x2df   : > { %v4539_v63 = vrot.slane %v4525_v46, %v10938_v53  ;;  %v4475_v23 = vcombine.low %v13654_v57, %v13662_v32  ;;  %v3066_v38 = vrot.slane %v3038_v62, %v10938_v53  ;;  %v14178_v58 = vrot.slane %v9871_v44, %v10938_v53 }
 0x2e0   : > { %v4884_v26 = vcombine.low %v3045_v50, %v3059_v41  ;;  %v9874_v9 = vcombine.high %v3045_v50, %v3059_v41  ;;  %v3134_v55 = vrot.slane %v3120_v31, %v10938_v53  ;;  %v3135_v35 = vcombine.high %v3127_v10, %v3127_v10 }
 0x2e1   : > { %v4540_v0 = vcombine.low %v4532_v43, %v4539_v63  ;;  %v4476_v15 = vcombine.low %v13703_v30, %v13706_v20  ;;  %v4886_v33 = vcombine.low %v3052_v3, %v3066_v38  ;;  %v9875_v29 = vcombine.high %v3052_v3, %v3066_v38 }
 0x2e2   : > { %v14183_v27 = vrot.slane %v4884_v26, %v10938_v53  ;;  %v3143_v57 = vrot.slane %v3127_v10, %v10938_v53  ;;  %v14187_v32 = vrot.slane %v9874_v9, %v10938_v53  ;;  %v3136_v21 = vcombine.high %v3134_v55, %v3134_v55 }
 0x2e3   : > { %v3150_v5 = vrot.slane %v3134_v55, %v10938_v53  ;;  %v3157_v37 = vrot.slane %v3135_v35, %v10938_v53  ;;  %5205 = vperm.xlu0 %10066, %v4540_v0   ;;  %v14192_v44 = vrot.slane %v4886_v33, %v10938_v53  ;;  %v4483_v30 = vrot.slane %v4475_v23, %v10938_v53 }
 0x2e4   : > { %v4490_v20 = vrot.slane %v4476_v15, %v10938_v53  ;;  %v1290_v40 = vmul.f32 0.6931472, %v14064_v45  ;;  %v3164_v48 = vrot.slane %v3136_v21, %v10938_v53  ;;  %v4622_v50 = vcombine.low %v14079_v1, %v14082_v47 }
 0x2e5   : > { %v4982_v13 = vcombine.low %v3143_v57, %v3157_v37  ;;  %v9878_v61 = vcombine.high %v3143_v57, %v3157_v37  ;;  %v4623_v46 = vcombine.low %v14086_v12, %v14108_v6  ;;  %v4573_v62 = vcombine.low %v13715_v4, %v13729_v25 }
 0x2e6   : > { %v4491_v17 = vcombine.low %v4483_v30, %v4490_v20  ;;  %v1328_v16 = vsub.f32 %v1290_v40, %v1176_v52  ;;  %v14205_v3 = vrot.slane %v9875_v29, %v10938_v53  ;;  %v4984_v41 = vcombine.low %v3150_v5, %v3164_v48  ;;  %v15848_v29 = vld [vmem:[#allocation176_spill] sm:$0xff] }
 0x2e7   : > { %v9879_v45 = vcombine.high %v3150_v5, %v3164_v48  ;;  %v14208_v31 = vrot.slane %v4982_v13, %v10938_v53  ;;  %v4630_v47 = vrot.slane %v4622_v50, %v10938_v53  ;;  %v4637_v43 = vrot.slane %v4623_v46, %v10938_v53  ;;  %v15849_v13 = vld [vmem:[#allocation167_spill] sm:$0xff]  ;;  %v15851_v46 = vld [vmem:[#allocation34_spill] sm:$0xff] }
 0x2e8   : > { %5202 = vperm.xlu1 %10067, %v4491_v17   ;;  %v1366_v1 = vsel %vm1214_vm3, %v1328_v16, 0.0  ;;  %v4574_v12 = vcombine.low %v13748_v34, %v13751_v7  ;;  %v14217_v4 = vrot.slane %v9878_v61, %v10938_v53  ;;  %v14220_v25 = vrot.slane %v4984_v41, %v10938_v53  ;;  %v15850_v61 = vld [vmem:[#allocation36_spill] sm:$0xff] }
 0x2e9   : > { %v3218_v6 = vcombine.high %v1366_v1, %v1366_v1  ;;  %v3225_v63 = vrot.slane %v1366_v1, %v10938_v53  ;;  %v4638_v23 = vcombine.low %v4630_v47, %v4637_v43  ;;  %v4581_v38 = vrot.slane %v4573_v62, %v10938_v53  ;;  %v15852_v62 = vld [vmem:[#allocation178_spill] sm:$0xff]  ;;  %v15853_v43 = vld [vmem:[#allocation179_spill] sm:$0xff] }
 0x2ea   : > { %v4588_v26 = vrot.slane %v4574_v12, %v10938_v53  ;;  %v4720_v9 = vcombine.low %v14111_v59, %v14114_v51  ;;  %v4721_v35 = vcombine.low %v14121_v24, %v14132_v22  ;;  %v4671_v33 = vcombine.low %v13792_v8, %v13822_v54 }
 0x2eb   : > { %v3232_v55 = vrot.slane %v3218_v6, %v10938_v53  ;;  %v3233_v34 = vcombine.high %v3225_v63, %v3225_v63  ;;  %v3241_v7 = vrot.slane %v3225_v63, %v10938_v53  ;;  %5211 = vperm.xlu0 %10066, %v4638_v23   ;;  %v4672_v57 = vcombine.low %v15848_v29, %v13828_v60  ;;  %v15861_v29 = vld [vmem:[#allocation163_spill] sm:$0xff] }
 0x2ec   : > { %v4589_v0 = vcombine.low %v4581_v38, %v4588_v26  ;;  %v4728_v15 = vrot.slane %v4720_v9, %v10938_v53  ;;  %v4735_v5 = vrot.slane %v4721_v35, %v10938_v53  ;;  %v4679_v24 = vrot.slane %v4671_v33, %v10938_v53  ;;  %v15860_v33 = vld [vmem:[#allocation50_spill] sm:$0xff] }
 0x2ed   : > { %v3234_v21 = vcombine.high %v3232_v55, %v3232_v55  ;;  %v3248_v59 = vrot.slane %v3232_v55, %v10938_v53  ;;  %v3255_v51 = vrot.slane %v3233_v34, %v10938_v53  ;;  %v4686_v22 = vrot.slane %v4672_v57, %v10938_v53  ;;  %v15855_v55 = vld [vmem:[#allocation180_spill] sm:$0xff]  ;;  %v15856_v34 = vld [vmem:[#allocation181_spill] sm:$0xff] }
 0x2ee   : > { %5208 = vperm.xlu1 %10067, %v4589_v0   ;;  %v4818_v37 = vcombine.low %v14152_v19, %v14157_v56  ;;  %v4819_v8 = vcombine.low %v14161_v36, %v14178_v58  ;;  %v4736_v30 = vcombine.low %v4728_v15, %v4735_v5  ;;  %v4769_v50 = vcombine.low %v15850_v61, %v15849_v13  ;;  %v15859_v15 = vld [vmem:[#allocation35_spill] sm:$0xff]  ;;  %v15869_v61 = vld [vmem:[#allocation70_spill] sm:$0xff] }
 0x2ef   : > { %v3262_v54 = vrot.slane %v3234_v21, %v10938_v53  ;;  %v5080_v60 = vcombine.low %v3241_v7, %v3255_v51  ;;  %v9882_v52 = vcombine.high %v3241_v7, %v3255_v51  ;;  %v4687_v20 = vcombine.low %v4679_v24, %v4686_v22  ;;  %v15862_v51 = vld [vmem:[#allocation60_spill] sm:$0xff]  ;;  %v15863_v5 = vld [vmem:[#allocation59_spill] sm:$0xff] }
 0x2f0   : > { %v4826_v40 = vrot.slane %v4818_v37, %v10938_v53  ;;  %v4833_v48 = vrot.slane %v4819_v8, %v10938_v53  ;;  %v5013_v17 = vrot.slane %v9879_v45, %v10938_v53  ;;  %5217 = vperm.xlu0 %10066, %v4736_v30   ;;  %v4770_v41 = vcombine.low %v15852_v62, %v15851_v46  ;;  %v15866_v30 = vld [vmem:[#allocation161_spill] sm:$0xff]  ;;  %v15868_v13 = vld [vmem:[#allocation71_spill] sm:$0xff]  ;;  %v15872_v46 = vld [vmem:[#allocation164_spill] sm:$0xff] }
 0x2f1   : > { %v5082_v16 = vcombine.low %v3248_v59, %v3262_v54  ;;  %v9883_v19 = vcombine.high %v3248_v59, %v3262_v54  ;;  %v5090_v56 = vrot.slane %v5080_v60, %v10938_v53  ;;  %v5097_v36 = vrot.slane %v9882_v52, %v10938_v53  ;;  %v15864_v54 = vld [vmem:[#allocation65_spill] sm:$0xff]  ;;  %v15865_v60 = vld [vmem:[#allocation64_spill] sm:$0xff] }
 0x2f2   : > { %5214 = vperm.xlu1 %10067, %v4687_v20   ;;  %v4834_v58 = vcombine.low %v4826_v40, %v4833_v48  ;;  %v4916_v10 = vcombine.low %v14183_v27, %v14187_v32  ;;  %v4777_v47 = vrot.slane %v4769_v50, %v10938_v53  ;;  %v4917_v45 = vcombine.low %v14192_v44, %v14205_v3 }
 0x2f3   : > { %v5104_v1 = vrot.slane %v5082_v16, %v10938_v53  ;;  %v4867_v12 = vcombine.low %v15853_v43, %v13945_v42  ;;  %v5111_v6 = vrot.slane %v9883_v19, %v10938_v53  ;;  %v4784_v63 = vrot.slane %v4770_v41, %v10938_v53  ;;  %v15871_v16 = vld [vmem:[#allocation72_spill] sm:$0xff] }
 0x2f4   : > { %v4868_v23 = vcombine.low %v13948_v11, %v13951_v18  ;;  %v5014_v27 = vcombine.low %v14208_v31, %v14217_v4  ;;  %v15854_v32 = vcombine.high %v14025_v14, %v14012_v39  ;;  %5223 = vperm.xlu0 %10066, %v4834_v58   ;;  %v4924_v44 = vrot.slane %v4916_v10, %v10938_v53  ;;  %v15873_v10 = vld [vmem:[#allocation75_spill] sm:$0xff]  ;;  %v15876_v43 = vld [vmem:[#allocation76_spill] sm:$0xff] }
 0x2f5   : > { %v4931_v42 = vrot.slane %v4917_v45, %v10938_v53  ;;  %v5015_v3 = vcombine.low %v14220_v25, %v5013_v17  ;;  %v4785_v26 = vcombine.low %v4777_v47, %v4784_v63  ;;  %v4875_v9 = vrot.slane %v4867_v12, %v10938_v53  ;;  %v15870_v17 = vld [vmem:[#allocation73_spill] sm:$0xff] }
 0x2f6   : > { %v5062_v38 = vrot.slane %v15854_v32, %v10938_v53  ;;  %v4882_v11 = vrot.slane %v4868_v23, %v10938_v53  ;;  %v4966_v18 = vcombine.low %v13998_v28, %v14015_v49  ;;  %v5022_v4 = vrot.slane %v5014_v27, %v10938_v53  ;;  %v15875_v45 = vld [vmem:[#allocation77_spill] sm:$0xff] }
 0x2f7   : > { %v4932_v31 = vcombine.low %v4924_v44, %v4931_v42  ;;  %v5029_v39 = vrot.slane %v5015_v3, %v10938_v53  ;;  %v5112_v14 = vcombine.low %v5090_v56, %v5097_v36  ;;  %v15857_v7 = vcombine.low %v15855_v55, %v15856_v34  ;;  %5220 = vperm.xlu1 %10067, %v4785_v26   ;;  %v15878_v42 = vld [vmem:[#allocation63_spill] sm:$0xff]  ;;  %v15879_v3 = vld [vmem:[#allocation61_spill] sm:$0xff] }
 0x2f8   : > { %v15858_v25 = vcombine.high %v15855_v55, %v15856_v34  ;;  %v4965_v28 = vcombine.low %v15860_v33, %v15859_v15  ;;  %v5113_v49 = vcombine.low %v5104_v1, %v5111_v6  ;;  %v14294_v57 = vrot.slane %v15861_v29, %v10938_v53  ;;  %v15874_v1 = vld [vmem:[#allocation74_spill] sm:$0xff]  ;;  %v15877_v6 = vld [vmem:[#allocation165_spill] sm:$0xff]  ;;  %v15886_v33 = vld [vmem:[#allocation119_spill] sm:$0xff] }
 0x2f9   : > { %v5041_v35 = vrot.slane %v15857_v7, %v10938_v53  ;;  %5229 = vperm.xlu0 %10066, %v4932_v31   ;;  %v4883_v21 = vcombine.low %v4875_v9, %v4882_v11  ;;  %v5030_v59 = vcombine.low %v5022_v4, %v5029_v39  ;;  %v7546_v24 = vcombine.low %v15863_v5, %v15862_v51  ;;  %v15880_v9 = vld [vmem:[#allocation69_spill] sm:$0xff]  ;;  %v15881_v11 = vld [vmem:[#allocation66_spill] sm:$0xff] }
 0x2fa   : > { %v5048_v0 = vrot.slane %v15858_v25, %v10938_v53  ;;  %v4980_v22 = vrot.slane %v4966_v18, %v10938_v53  ;;  %v5127_v37 = vrot.slane %v5113_v49, %v10938_v53  ;;  %v5064_v8 = vcombine.low %v14076_v2, %v5062_v38  ;;  %v15884_v25 = vld [vmem:[#allocation107_spill] sm:$0xff]  ;;  %v15885_v15 = vld [vmem:[#allocation122_spill] sm:$0xff] }
 0x2fb   : > { %v7547_v52 = vcombine.low %v15865_v60, %v15864_v54  ;;  %v15867_v20 = vcombine.high %v15866_v30, %v15866_v30  ;;  %v5120_v48 = vrot.slane %v5112_v14, %v10938_v53  ;;  %v7497_v50 = vcombine.low %v15869_v61, %v15868_v13  ;;  %5226 = vperm.xlu1 %10067, %v4883_v21   ;;  %v15889_v54 = vld [vmem:[#allocation85_spill] sm:$0xff]  ;;  %v15890_v60 = vld [vmem:[#allocation83_spill] sm:$0xff]  ;;  %v15891_v30 = vld [vmem:[#allocation90_spill] sm:$0xff] }
 0x2fc   : > { %v7498_v19 = vcombine.low %v15871_v16, %v15870_v17  ;;  %v4973_v56 = vrot.slane %v4965_v28, %v10938_v53  ;;  %v5063_v2 = vcombine.low %v5041_v35, %v5048_v0  ;;  %v7554_v36 = vrot.slane %v7546_v24, %v10938_v53  ;;  %v15883_v35 = vld [vmem:[#allocation33_spill] sm:$0xff]  ;;  %v15894_v13 = vld [vmem:[#allocation31_spill] sm:$0xff]  ;;  %v15896_v17 = vld [vmem:[#allocation108_spill] sm:$0xff] }
 0x2fd   : > { %v6989_v40 = vrot.slane %v15867_v20, %v10938_v53  ;;  %v7561_v58 = vrot.slane %v7547_v52, %v10938_v53  ;;  %v6990_v62 = vcombine.high %v15872_v46, %v15872_v46  ;;  %5235 = vperm.xlu0 %10066, %v5030_v59   ;;  %v5128_v41 = vcombine.low %v5120_v48, %v5127_v37  ;;  %v15892_v20 = vld [vmem:[#allocation88_spill] sm:$0xff]  ;;  %v15893_v48 = vld [vmem:[#allocation57_spill] sm:$0xff]  ;;  %v15907_v5 = vld [vmem:[#allocation106_spill] sm:$0xff] }
 0x2fe   : > { %v7644_v47 = vcombine.low %v15874_v1, %v15873_v10  ;;  %v7645_v12 = vcombine.low %v15876_v43, %v15875_v45  ;;  %v7432_v63 = vcombine.high %v15877_v6, %v15877_v6  ;;  %v14325_v23 = vrot.slane %v15872_v46, %v10938_v53  ;;  %v15898_v45 = vld [vmem:[#allocation96_spill] sm:$0xff] }
 0x2ff   : > { %v4981_v27 = vcombine.low %v4973_v56, %v4980_v22  ;;  %v5078_v32 = vrot.slane %v5064_v8, %v10938_v53  ;;  %v7505_v38 = vrot.slane %v7497_v50, %v10938_v53  ;;  %v7512_v44 = vrot.slane %v7498_v19, %v10938_v53  ;;  %v15895_v50 = vld [vmem:[#allocation23_spill] sm:$0xff] }
 0x300   : > { %v7595_v26 = vcombine.low %v15879_v3, %v15878_v42  ;;  %v7596_v18 = vcombine.low %v15881_v11, %v15880_v9  ;;  %v14336_v31 = vrot.slane %v15877_v6, %v10938_v53  ;;  %v15882_v4 = vcombine.high %v15861_v29, %v15861_v29  ;;  %v15900_v6 = vld [vmem:[#allocation51_spill] sm:$0xff]  ;;  %v15902_v9 = vld [vmem:[#allocation78_spill] sm:$0xff] }
 0x301   : > { %5232 = vperm.xlu1 %10067, %v4981_v27   ;;  %v5071_v14 = vrot.slane %v5063_v2, %v10938_v53  ;;  %v7562_v55 = vcombine.low %v7554_v36, %v7561_v58  ;;  %5241 = vperm.xlu0 %10066, %v5128_v41   ;;  %v7652_v34 = vrot.slane %v7644_v47, %v10938_v53  ;;  %v15887_v51 = vmov 0.0   ;;  %v15897_v47 = vld [vmem:[#allocation97_spill] sm:$0xff] }
 0x302   : > { %v14342_v39 = vrot.slane %v15882_v4, %v10938_v53  ;;  %v7659_v7 = vrot.slane %v7645_v12, %v10938_v53  ;;  %v7742_v0 = vcombine.low %v15884_v25, %v15883_v35  ;;  %v7743_v28 = vcombine.low %v15886_v33, %v15885_v15  ;;  %v15899_v12 = vld [vmem:[#allocation24_spill] sm:$0xff] }
 0x303   : > { %v6991_v49 = vcombine.high %v6989_v40, %v6989_v40  ;;  %v14352_v29 = vrot.slane %v6989_v40, %v10938_v53  ;;  %v14355_v21 = vrot.slane %v6990_v62, %v10938_v53  ;;  %v5079_v59 = vcombine.low %v5071_v14, %v5078_v32  ;;  %v15904_v4 = vld [vmem:[#allocation80_spill] sm:$0xff] }
 0x304   : > { %v9914_v24 = vsel %vm1207_vm10, 1.0, %v15887_v51  ;;  %v7513_v22 = vcombine.low %v7505_v38, %v7512_v44  ;;  %v7603_v37 = vrot.slane %v7595_v26, %v10938_v53  ;;  %v7610_v8 = vrot.slane %v7596_v18, %v10938_v53  ;;  %v15901_v26 = vld [vmem:[#allocation79_spill] sm:$0xff]  ;;  %v15903_v18 = vld [vmem:[#allocation81_spill] sm:$0xff] }
 0x305   : > { %5238 = vperm.xlu1 %10067, %v5079_v59   ;;  %v7693_v52 = vcombine.low %v15890_v60, %v15889_v54  ;;  %v7694_v40 = vcombine.low %v15892_v20, %v15891_v30  ;;  %v7840_v61 = vcombine.low %v15894_v13, %v15893_v48  ;;  %v7841_v16 = vcombine.low %v15896_v17, %v15895_v50  ;;  %v15909_v54 = vld [vmem:[#allocation21_spill] sm:$0xff]  ;;  %v15911_v30 = vld [vmem:[#allocation28_spill] sm:$0xff] }
 0x306   : > { %v14371_v19 = vrot.slane %v7432_v63, %v10938_v53  ;;  %9331 = vperm.xlu0 %10066, %v7562_v55   ;;  %v7660_v56 = vcombine.low %v7652_v34, %v7659_v7  ;;  %v7750_v2 = vrot.slane %v7742_v0, %v10938_v53  ;;  %v7757_v36 = vrot.slane %v7743_v28, %v10938_v53  ;;  %v15910_v60 = vld [vmem:[#allocation49_spill] sm:$0xff]  ;;  %v15912_v20 = vld [vmem:[#allocation104_spill] sm:$0xff] }
 0x307   : > { %v9278_v58 = vcombine.low %v14294_v57, %v14342_v39  ;;  %v9996_v46 = vcombine.high %v14294_v57, %v14342_v39  ;;  %v14380_v62 = vrot.slane %v6991_v49, %v10938_v53  ;;  %v7073_v41 = vcombine.high %v9914_v24, %v9914_v24  ;;  %v15905_v49 = vld [vmem:[#allocation128_spill] sm:$0xff] }
 0x308   : > { %v8837_v10 = vcombine.low %v14325_v23, %v14355_v21  ;;  %v7611_v1 = vcombine.low %v7603_v37, %v7610_v8  ;;  %v7791_v43 = vcombine.low %v15898_v45, %v15897_v47  ;;  %v7792_v63 = vcombine.low %v15900_v6, %v15899_v12  ;;  %v15920_v12 = vld [vmem:[#allocation112_spill] sm:$0xff]  ;;  %v15921_v6 = vld [vmem:[#allocation146_spill] sm:$0xff] }
 0x309   : > { %9328 = vperm.xlu1 %10067, %v7513_v22   ;;  %v7701_v27 = vrot.slane %v7693_v52, %v10938_v53  ;;  %v7708_v32 = vrot.slane %v7694_v40, %v10938_v53  ;;  %v7848_v38 = vrot.slane %v7840_v61, %v10938_v53  ;;  %v7855_v44 = vrot.slane %v7841_v16, %v10938_v53 }
 0x30a   : > { %v9978_v42 = vcombine.high %v14325_v23, %v14355_v21  ;;  %9337 = vperm.xlu0 %10066, %v7660_v56   ;;  %v7758_v3 = vcombine.low %v7750_v2, %v7757_v36  ;;  %v7938_v11 = vcombine.low %v15902_v9, %v15901_v26  ;;  %v7939_v14 = vcombine.low %v15904_v4, %v15903_v18  ;;  %v15906_v21 = vld [vmem:[#allocation67_spill] sm:$0xff]  ;;  %v15914_v2 = vld [vmem:[#allocation132_spill] sm:$0xff]  ;;  %v15915_v36 = vld [vmem:[#allocation118_spill] sm:$0xff] }
 0x30b   : > { %v9280_v55 = vcombine.low %v14336_v31, %v14371_v19  ;;  %v9997_v34 = vcombine.high %v14336_v31, %v14371_v19  ;;  %v7080_v7 = vrot.slane %v9914_v24, %v10938_v53  ;;  %v7087_v35 = vrot.slane %v7073_v41, %v10938_v53  ;;  %v15908_v24 = vld [vmem:[#allocation54_spill] sm:$0xff]  ;;  %v15916_v41 = vld [vmem:[#allocation68_spill] sm:$0xff] }
 0x30c   : > { %v14405_v23 = vrot.slane %v9278_v58, %v10938_v53  ;;  %v8839_v25 = vcombine.low %v14352_v29, %v14380_v62  ;;  %v7799_v0 = vrot.slane %v7791_v43, %v10938_v53  ;;  %v7806_v15 = vrot.slane %v7792_v63, %v10938_v53 }
 0x30d   : > { %9334 = vperm.xlu1 %10067, %v7611_v1   ;;  %v7709_v33 = vcombine.low %v7701_v27, %v7708_v32  ;;  %v7856_v28 = vcombine.low %v7848_v38, %v7855_v44  ;;  %v7889_v59 = vcombine.low %v15906_v21, %v15905_v49  ;;  %v7890_v22 = vcombine.low %v15908_v24, %v15907_v5  ;;  %v15917_v1 = vld [vmem:[#allocation123_spill] sm:$0xff]  ;;  %v15925_v49 = vld [vmem:[#allocation134_spill] sm:$0xff]  ;;  %v15926_v24 = vld [vmem:[#allocation53_spill] sm:$0xff] }
 0x30e   : > { %9343 = vperm.xlu0 %10066, %v7758_v3   ;;  %v7946_v37 = vrot.slane %v7938_v11, %v10938_v53  ;;  %v7953_v8 = vrot.slane %v7939_v14, %v10938_v53  ;;  %v8036_v52 = vcombine.low %v15910_v60, %v15909_v54  ;;  %v8037_v40 = vcombine.low %v15912_v20, %v15911_v30  ;;  %v15922_v14 = vld [vmem:[#allocation133_spill] sm:$0xff] }
 0x30f   : > { %v9979_v48 = vcombine.high %v14352_v29, %v14380_v62  ;;  %v14424_v13 = vrot.slane %v8837_v10, %v10938_v53  ;;  %v7088_v61 = vcombine.high %v7080_v7, %v7080_v7  ;;  %v7089_v50 = vcombine.high %v7087_v35, %v7087_v35  ;;  %v15918_v62 = vld [vmem:[#allocation145_spill] sm:$0xff]  ;;  %v15919_v10 = vld [vmem:[#allocation144_spill] sm:$0xff] }
 0x310   : > { %v9916_v16 = vsel %vm1209_vm7, 1.0, %v15887_v51  ;;  %v7807_v56 = vcombine.low %v7799_v0, %v7806_v15  ;;  %v7987_v58 = vcombine.low %v15915_v36, %v15914_v2  ;;  %v7988_v47 = vcombine.low %v15917_v1, %v15916_v41  ;;  %v15923_v0 = vld [vmem:[#allocation131_spill] sm:$0xff]  ;;  %v15929_v54 = vld [vmem:[#allocation29_spill] sm:$0xff]  ;;  %v15932_v41 = vld [vmem:[#allocation110_spill] sm:$0xff] }
 0x311   : > { %9340 = vperm.xlu1 %10067, %v7709_v33   ;;  %v7897_v45 = vrot.slane %v7889_v59, %v10938_v53  ;;  %v7904_v29 = vrot.slane %v7890_v22, %v10938_v53  ;;  %v8134_v43 = vcombine.low %v15919_v10, %v15918_v62  ;;  %v8135_v63 = vcombine.low %v15921_v6, %v15920_v12  ;;  %v15927_v22 = vld [vmem:[#allocation121_spill] sm:$0xff]  ;;  %v15933_v1 = vld [vmem:[#allocation102_spill] sm:$0xff]  ;;  %v15937_v12 = vld [vmem:[#allocation52_spill] sm:$0xff] }
 0x312   : > { %v14440_v27 = vrot.slane %v9978_v42, %v10938_v53  ;;  %9349 = vperm.xlu0 %10066, %v7856_v28   ;;  %v7954_v32 = vcombine.low %v7946_v37, %v7953_v8  ;;  %v8044_v38 = vrot.slane %v8036_v52, %v10938_v53  ;;  %v8051_v44 = vrot.slane %v8037_v40, %v10938_v53  ;;  %v15924_v28 = vld [vmem:[#allocation135_spill] sm:$0xff]  ;;  %v15930_v36 = vld [vmem:[#allocation101_spill] sm:$0xff] }
 0x313   : > { %v7096_v3 = vrot.slane %v7080_v7, %v10938_v53  ;;  %v14446_v26 = vrot.slane %v7087_v35, %v10938_v53  ;;  %v7110_v9 = vrot.slane %v7088_v61, %v10938_v53  ;;  %v14450_v11 = vrot.slane %v7089_v50, %v10938_v53  ;;  %v15928_v8 = vld [vmem:[#allocation55_spill] sm:$0xff]  ;;  %v15935_v62 = vld [vmem:[#allocation113_spill] sm:$0xff] }
 0x314   : > { %v7171_v18 = vcombine.high %v9916_v16, %v9916_v16  ;;  %v7995_v42 = vrot.slane %v7987_v58, %v10938_v53  ;;  %v8002_v4 = vrot.slane %v7988_v47, %v10938_v53  ;;  %v8085_v15 = vcombine.low %v15923_v0, %v15922_v14  ;;  %v15931_v58 = vld [vmem:[#allocation139_spill] sm:$0xff]  ;;  %v15941_v0 = vld [vmem:[#allocation92_spill] sm:$0xff] }
 0x315   : > { %9346 = vperm.xlu1 %10067, %v7807_v56   ;;  %v7905_v33 = vcombine.low %v7897_v45, %v7904_v29  ;;  %v8142_v7 = vrot.slane %v8134_v43, %v10938_v53  ;;  %v8149_v35 = vrot.slane %v8135_v63, %v10938_v53  ;;  %v8086_v21 = vcombine.low %v15925_v49, %v15924_v28  ;;  %v15934_v29 = vld [vmem:[#allocation125_spill] sm:$0xff]  ;;  %v15936_v43 = vld [vmem:[#allocation27_spill] sm:$0xff] }
 0x316   : > { %v14461_v59 = vrot.slane %v8839_v25, %v10938_v53  ;;  %9355 = vperm.xlu0 %10066, %v7954_v32   ;;  %v8052_v5 = vcombine.low %v8044_v38, %v8051_v44  ;;  %v8232_v37 = vcombine.low %v15927_v22, %v15926_v24  ;;  %v8233_v60 = vcombine.low %v15929_v54, %v15928_v8  ;;  %v15943_v49 = vld [vmem:[#allocation111_spill] sm:$0xff]  ;;  %v15945_v8 = vld [vmem:[#allocation58_spill] sm:$0xff] }
 0x317   : > { %v14468_v52 = vrot.slane %v9979_v48, %v10938_v53  ;;  %v8935_v30 = vcombine.low %v7096_v3, %v7110_v9  ;;  %v9982_v20 = vcombine.high %v7096_v3, %v7110_v9  ;;  %v7178_v40 = vrot.slane %v9916_v16, %v10938_v53  ;;  %v15946_v54 = vld [vmem:[#allocation127_spill] sm:$0xff]  ;;  %v15954_v9 = vld [vmem:[#allocation130_spill] sm:$0xff] }
 0x318   : > { %v8937_v61 = vcombine.low %v14446_v26, %v14450_v11  ;;  %v7185_v25 = vrot.slane %v7171_v18, %v10938_v53  ;;  %v8003_v50 = vcombine.low %v7995_v42, %v8002_v4  ;;  %v8093_v17 = vrot.slane %v8085_v15, %v10938_v53  ;;  %v15939_v42 = vld [vmem:[#allocation116_spill] sm:$0xff]  ;;  %v15942_v15 = vld [vmem:[#allocation30_spill] sm:$0xff] }
 0x319   : > { %9352 = vperm.xlu1 %10067, %v7905_v33   ;;  %v8150_v56 = vcombine.low %v8142_v7, %v8149_v35  ;;  %v8100_v2 = vrot.slane %v8086_v21, %v10938_v53  ;;  %v8183_v48 = vcombine.low %v15931_v58, %v15930_v36  ;;  %v8184_v47 = vcombine.low %v15933_v1, %v15932_v41  ;;  %v15940_v4 = vld [vmem:[#allocation44_spill] sm:$0xff]  ;;  %v14518_v36 = vpop.permute.xlu0 %5130  ;;  %v14522_v41 = vpop.permute.xlu1 %5133  ;;  %v15947_v1 = vld [vmem:[#allocation82_spill] sm:$0xff] }
 0x31a   : > { %9361 = vperm.xlu0 %10066, %v8052_v5   ;;  %v8240_v16 = vrot.slane %v8232_v37, %v10938_v53  ;;  %v8247_v45 = vrot.slane %v8233_v60, %v10938_v53  ;;  %v8330_v10 = vcombine.low %v15935_v62, %v15934_v29  ;;  %v8331_v6 = vcombine.low %v15937_v12, %v15936_v43  ;;  %v15944_v21 = vld [vmem:[#allocation56_spill] sm:$0xff]  ;;  %v15951_v12 = vld [vmem:[#allocation105_spill] sm:$0xff] }
 0x31b   : > { %v9983_v63 = vcombine.high %v14446_v26, %v14450_v11  ;;  %v14489_v32 = vrot.slane %v8935_v30, %v10938_v53  ;;  %v14492_v38 = vrot.slane %v9982_v20, %v10938_v53  ;;  %v7186_v44 = vcombine.high %v7178_v40, %v7178_v40  ;;  %v15950_v29 = vld [vmem:[#allocation84_spill] sm:$0xff] }
 0x31c   : > { %v7187_v3 = vcombine.high %v7185_v25, %v7185_v25  ;;  %v9918_v18 = vsel %vm1211_vm4, 1.0, %v15887_v51  ;;  %v8281_v14 = vcombine.low %v15940_v4, %v15939_v42  ;;  %v8282_v33 = vcombine.low %v15942_v15, %v15941_v0 }
 0x31d   : > { %9358 = vperm.xlu1 %10067, %v8003_v50   ;;  %v8101_v7 = vcombine.low %v8093_v17, %v8100_v2  ;;  %v8191_v35 = vrot.slane %v8183_v48, %v10938_v53  ;;  %v8198_v28 = vrot.slane %v8184_v47, %v10938_v53  ;;  %v8428_v5 = vcombine.low %v15944_v21, %v15943_v49  ;;  %v15948_v47 = vld [vmem:[#allocation120_spill] sm:$0xff]  ;;  %v15957_v49 = vld [vmem:[#allocation98_spill] sm:$0xff]  ;;  %v15958_v21 = vld [vmem:[#allocation45_spill] sm:$0xff] }
 0x31e   : > { %9367 = vperm.xlu0 %10066, %v8150_v56   ;;  %v8248_v24 = vcombine.low %v8240_v16, %v8247_v45  ;;  %v8338_v22 = vrot.slane %v8330_v10, %v10938_v53  ;;  %v8345_v37 = vrot.slane %v8331_v6, %v10938_v53  ;;  %v8429_v60 = vcombine.low %v15946_v54, %v15945_v8  ;;  %v15949_v45 = vld [vmem:[#allocation25_spill] sm:$0xff]  ;;  %v15952_v6 = vld [vmem:[#allocation126_spill] sm:$0xff]  ;;  %v15960_v54 = vld [vmem:[#allocation143_spill] sm:$0xff] }
 0x31f   : > { %v7194_v30 = vrot.slane %v7178_v40, %v10938_v53  ;;  %v14511_v20 = vrot.slane %v7185_v25, %v10938_v53  ;;  %v7208_v50 = vrot.slane %v7186_v44, %v10938_v53  ;;  %v7269_v17 = vcombine.high %v9918_v18, %v9918_v18  ;;  %v15959_v8 = vld [vmem:[#allocation138_spill] sm:$0xff] }
 0x320   : > { %v14515_v2 = vrot.slane %v7187_v3, %v10938_v53  ;;  %v7276_v56 = vrot.slane %v9918_v18, %v10938_v53  ;;  %v8289_v58 = vrot.slane %v8281_v14, %v10938_v53  ;;  %v8296_v48 = vrot.slane %v8282_v33, %v10938_v53  ;;  %v15953_v3 = vld [vmem:[#allocation137_spill] sm:$0xff] }
 0x321   : > { %9364 = vperm.xlu1 %10067, %v8101_v7   ;;  %v8199_v40 = vcombine.low %v8191_v35, %v8198_v28  ;;  %v8436_v25 = vrot.slane %v8428_v5, %v10938_v53  ;;  %v8379_v16 = vcombine.low %v15948_v47, %v15947_v1  ;;  %v8380_v62 = vcombine.low %v15950_v29, %v15949_v45  ;;  %v15955_v7 = vld [vmem:[#allocation95_spill] sm:$0xff]  ;;  %v15956_v35 = vld [vmem:[#allocation94_spill] sm:$0xff]  ;;  %v15961_v1 = vld [vmem:[#allocation136_spill] sm:$0xff]  ;;  %v14554_v29 = vpop.permute.xlu1 %5136 }
 0x322   : > { %9373 = vperm.xlu0 %10066, %v8248_v24   ;;  %v8346_v10 = vcombine.low %v8338_v22, %v8345_v37  ;;  %v8443_v43 = vrot.slane %v8429_v60, %v10938_v53  ;;  %v8526_v44 = vcombine.low %v15952_v6, %v15951_v12  ;;  %v8527_v18 = vcombine.low %v15954_v9, %v15953_v3  ;;  %v14544_v24 = vpop.permute.xlu0 %5139  ;;  %v15962_v47 = vld [vmem:[#allocation142_spill] sm:$0xff]  ;;  %v15967_v3 = vld [vmem:[#allocation12_spill] sm:$0xff] }
 0x323   : > { %v14535_v42 = vrot.slane %v8937_v61, %v10938_v53  ;;  %v9033_v4 = vcombine.low %v7194_v30, %v7208_v50  ;;  %v9986_v14 = vcombine.high %v7194_v30, %v7208_v50  ;;  %v7283_v0 = vrot.slane %v7269_v17, %v10938_v53  ;;  %v15965_v12 = vld [vmem:[#allocation22_spill] sm:$0xff] }
 0x324   : > { %v9035_v15 = vcombine.low %v14511_v20, %v14515_v2  ;;  %v7284_v33 = vcombine.high %v7276_v56, %v7276_v56  ;;  %v8477_v28 = vcombine.low %v15956_v35, %v15955_v7  ;;  %v8478_v5 = vcombine.low %v15958_v21, %v15957_v49  ;;  %v15968_v35 = vld [vmem:[#allocation117_spill] sm:$0xff]  ;;  %v15970_v21 = vld [vmem:[#allocation100_spill] sm:$0xff] }
 0x325   : > { %9370 = vperm.xlu1 %10067, %v8199_v40   ;;  %v8297_v22 = vcombine.low %v8289_v58, %v8296_v48  ;;  %v8387_v61 = vrot.slane %v8379_v16, %v10938_v53  ;;  %v8394_v37 = vrot.slane %v8380_v62, %v10938_v53  ;;  %v8624_v60 = vcombine.low %v15960_v54, %v15959_v8  ;;  %v15975_v16 = vld [vmem:[#allocation151_spill] sm:$0xff] }
 0x326   : > { %9379 = vperm.xlu0 %10066, %v8346_v10   ;;  %v8444_v30 = vcombine.low %v8436_v25, %v8443_v43  ;;  %v8534_v50 = vrot.slane %v8526_v44, %v10938_v53  ;;  %v8541_v17 = vrot.slane %v8527_v18, %v10938_v53  ;;  %v8625_v45 = vcombine.low %v15962_v47, %v15961_v1  ;;  %v15964_v43 = vld [vmem:[#allocation87_spill] sm:$0xff]  ;;  %v15966_v44 = vld [vmem:[#allocation46_spill] sm:$0xff]  ;;  %v14578_v54 = vpop.permute.xlu0 %5145  ;;  %v15973_v47 = vld [vmem:[#allocation149_spill] sm:$0xff] }
 0x327   : > { %v9987_v58 = vcombine.high %v14511_v20, %v14515_v2  ;;  %v14559_v48 = vrot.slane %v9033_v4, %v10938_v53  ;;  %v7285_v40 = vcombine.high %v7283_v0, %v7283_v0  ;;  %v9920_v25 = vsel %vm1213_vm1, 1.0, %v15887_v51  ;;  %v15972_v1 = vld [vmem:[#allocation150_spill] sm:$0xff] }
 0x328   : > { %v8485_v62 = vrot.slane %v8477_v28, %v10938_v53  ;;  %v8492_v10 = vrot.slane %v8478_v5, %v10938_v53  ;;  %v8575_v6 = vcombine.low %v15965_v12, %v15964_v43  ;;  %v8576_v9 = vcombine.low %v15967_v3, %v15966_v44  ;;  %v15969_v28 = vld [vmem:[#allocation109_spill] sm:$0xff]  ;;  %v15971_v5 = vld [vmem:[#allocation147_spill] sm:$0xff]  ;;  %v15976_v43 = vld [vmem:[#allocation16_spill] sm:$0xff] }
 0x329   : > { %v7292_v20 = vrot.slane %v7276_v56, %v10938_v53  ;;  %v7306_v2 = vrot.slane %v7284_v33, %v10938_v53  ;;  %9376 = vperm.xlu1 %10067, %v8297_v22   ;;  %v8395_v18 = vcombine.low %v8387_v61, %v8394_v37  ;;  %v8632_v4 = vrot.slane %v8624_v60, %v10938_v53  ;;  %v15978_v44 = vld [vmem:[#allocation14_spill] sm:$0xff] }
 0x32a   : > { %9385 = vperm.xlu0 %10066, %v8444_v30   ;;  %v8542_v51 = vcombine.low %v8534_v50, %v8541_v17  ;;  %v8639_v7 = vrot.slane %v8625_v45, %v10938_v53  ;;  %v8722_v49 = vcombine.low %v15969_v28, %v15968_v35  ;;  %v8723_v8 = vcombine.low %v15971_v5, %v15970_v21  ;;  %v14590_v17 = vpop.permute.xlu1 %5142  ;;  %v15974_v45 = vld [vmem:[#allocation152_spill] sm:$0xff] }
 0x32b   : > { %v14581_v56 = vrot.slane %v9986_v14, %v10938_v53  ;;  %v7299_v33 = vrot.slane %v7283_v0, %v10938_v53  ;;  %v7313_v22 = vrot.slane %v7285_v40, %v10938_v53  ;;  %v7367_v61 = vcombine.high %v9920_v25, %v9920_v25  ;;  %v15977_v40 = vld [vmem:[#allocation93_spill] sm:$0xff] }
 0x32c   : > { %v14586_v37 = vrot.slane %v9035_v15, %v10938_v53  ;;  %v8493_v60 = vcombine.low %v8485_v62, %v8492_v10  ;;  %v8583_v30 = vrot.slane %v8575_v6, %v10938_v53  ;;  %v8590_v50 = vrot.slane %v8576_v9, %v10938_v53  ;;  %v15979_v15 = vld [vmem:[#allocation17_spill] sm:$0xff] }
 0x32d   : > { %9382 = vperm.xlu1 %10067, %v8395_v18   ;;  %v8673_v14 = vcombine.low %v15973_v47, %v15972_v1  ;;  %v8674_v0 = vcombine.low %v15975_v16, %v15974_v45  ;;  %v8820_v12 = vcombine.low %v15977_v40, %v15976_v43  ;;  %v8821_v3 = vcombine.low %v15979_v15, %v15978_v44  ;;  %v15980_v47 = vld [vmem:[#allocation159_spill] sm:$0xff]  ;;  %v15981_v45 = vld [vmem:[#allocation158_spill] sm:$0xff]  ;;  %v15983_v40 = vld [vmem:[#allocation160_spill] sm:$0xff] }
 0x32e   : > { %v9131_v62 = vcombine.low %v7292_v20, %v7306_v2  ;;  %9391 = vperm.xlu0 %10066, %v8542_v51   ;;  %v8640_v10 = vcombine.low %v8632_v4, %v8639_v7  ;;  %v8730_v6 = vrot.slane %v8722_v49, %v10938_v53  ;;  %v8737_v9 = vrot.slane %v8723_v8, %v10938_v53  ;;  %v15982_v43 = vld [vmem:[#allocation162_spill] sm:$0xff]  ;;  %v14608_v51 = vpop.permute.xlu0 %5151  ;;  %v15984_v8 = vld [vmem:[#allocation89_spill] sm:$0xff]  ;;  %v14619_v15 = vpop.permute.xlu1 %5148 }
 0x32f   : > { %v9990_v18 = vcombine.high %v7292_v20, %v7306_v2  ;;  %v9133_v35 = vcombine.low %v7299_v33, %v7313_v22  ;;  %v7374_v28 = vrot.slane %v9920_v25, %v10938_v53  ;;  %v7381_v21 = vrot.slane %v7367_v61, %v10938_v53  ;;  %v15986_v61 = vld [vmem:[#allocation32_spill] sm:$0xff] }
 0x330   : > { %v9991_v5 = vcombine.high %v7299_v33, %v7313_v22  ;;  %v8591_v1 = vcombine.low %v8583_v30, %v8590_v50  ;;  %v8771_v16 = vcombine.low %v15981_v45, %v15980_v47  ;;  %v8772_v44 = vcombine.low %v15983_v40, %v15982_v43  ;;  %v15985_v33 = vld [vmem:[#allocation48_spill] sm:$0xff]  ;;  %v15987_v30 = vld [vmem:[#allocation91_spill] sm:$0xff]  ;;  %v15989_v40 = vld [vmem:[#allocation26_spill] sm:$0xff] }
 0x331   : > { %9388 = vperm.xlu1 %10067, %v8493_v60   ;;  %v8681_v4 = vrot.slane %v8673_v14, %v10938_v53  ;;  %v8688_v20 = vrot.slane %v8674_v0, %v10938_v53  ;;  %v8828_v2 = vrot.slane %v8820_v12, %v10938_v53  ;;  %v8835_v25 = vrot.slane %v8821_v3, %v10938_v53  ;;  %v15988_v43 = vld [vmem:[#allocation15_spill] sm:$0xff] }
 0x332   : > { %v9064_v7 = vrot.slane %v9987_v58, %v10938_v53  ;;  %9397 = vperm.xlu0 %10066, %v8640_v10   ;;  %v8738_v49 = vcombine.low %v8730_v6, %v8737_v9  ;;  %v8918_v22 = vcombine.low %v15985_v33, %v15984_v8  ;;  %v8919_v50 = vcombine.low %v15987_v30, %v15986_v61  ;;  %v15990_v8 = vld [vmem:[#allocation148_spill] sm:$0xff]  ;;  %v14637_v33 = vpop.permute.xlu0 %5157 }
 0x333   : > { %v9141_v60 = vrot.slane %v9131_v62, %v10938_v53  ;;  %v9148_v14 = vrot.slane %v9990_v18, %v10938_v53  ;;  %v7382_v0 = vcombine.high %v7374_v28, %v7374_v28  ;;  %v7383_v12 = vcombine.high %v7381_v21, %v7381_v21 }
 0x334   : > { %v8779_v3 = vrot.slane %v8771_v16, %v10938_v53  ;;  %v8786_v58 = vrot.slane %v8772_v44, %v10938_v53  ;;  %v8869_v10 = vcombine.low %v14424_v13, %v14440_v27  ;;  %v8870_v6 = vcombine.low %v14461_v59, %v14468_v52  ;;  %v15991_v13 = vld [vmem:[#allocation20_spill] sm:$0xff] }
 0x335   : > { %v9155_v9 = vrot.slane %v9133_v35, %v10938_v53  ;;  %v9162_v47 = vrot.slane %v9991_v5, %v10938_v53  ;;  %9394 = vperm.xlu1 %10067, %v8591_v1   ;;  %v8689_v62 = vcombine.low %v8681_v4, %v8688_v20  ;;  %v8836_v45 = vcombine.low %v8828_v2, %v8835_v25  ;;  %v14649_v25 = vpop.permute.xlu1 %5154 }
 0x336   : > { %9403 = vperm.xlu0 %10066, %v8738_v49   ;;  %v8926_v18 = vrot.slane %v8918_v22, %v10938_v53  ;;  %v8933_v16 = vrot.slane %v8919_v50, %v10938_v53  ;;  %v9114_v44 = vcombine.low %v15989_v40, %v15988_v43  ;;  %v9115_v27 = vcombine.low %v15991_v13, %v15990_v8  ;;  %v15996_v43 = vld [vmem:[#allocation18_spill] sm:$0xff]  ;;  %v15997_v40 = vld [vmem:[#allocation99_spill] sm:$0xff]  ;;  %v15998_v8 = vld [vmem:[#allocation13_spill] sm:$0xff] }
 0x337   : > { %v7390_v59 = vrot.slane %v7374_v28, %v10938_v53  ;;  %v7397_v52 = vrot.slane %v7381_v21, %v10938_v53  ;;  %v7404_v35 = vrot.slane %v7382_v0, %v10938_v53  ;;  %v7411_v5 = vrot.slane %v7383_v12, %v10938_v53  ;;  %v15999_v13 = vld [vmem:[#allocation86_spill] sm:$0xff] }
 0x338   : > { %v8966_v1 = vrot.slane %v9983_v63, %v10938_v53  ;;  %v8787_v4 = vcombine.low %v8779_v3, %v8786_v58  ;;  %v8877_v20 = vrot.slane %v8869_v10, %v10938_v53  ;;  %v8884_v2 = vrot.slane %v8870_v6, %v10938_v53  ;;  %v15994_v58 = vld [vmem:[#allocation157_spill] sm:$0xff]  ;;  %v15995_v10 = vld [vmem:[#allocation156_spill] sm:$0xff] }
 0x339   : > { %9400 = vperm.xlu1 %10067, %v8689_v62   ;;  %v9065_v28 = vcombine.low %v14559_v48, %v14581_v56  ;;  %v9066_v21 = vcombine.low %v14586_v37, %v9064_v7  ;;  %v9163_v49 = vcombine.low %v9141_v60, %v9148_v14  ;;  %v9164_v22 = vcombine.low %v9155_v9, %v9162_v47  ;;  %v14681_v9 = vpop.permute.xlu1 %5160 }
 0x33a   : > { %v9295_v26 = vrot.slane %v9996_v46, %v10938_v53  ;;  %9409 = vperm.xlu0 %10066, %v8836_v45   ;;  %v8934_v11 = vcombine.low %v8926_v18, %v8933_v16  ;;  %v9122_v63 = vrot.slane %v9114_v44, %v10938_v53  ;;  %v9129_v61 = vrot.slane %v9115_v27, %v10938_v53  ;;  %v14667_v46 = vpop.permute.xlu0 %5163 }
 0x33b   : > { %v9302_v48 = vrot.slane %v9280_v55, %v10938_v53  ;;  %v9229_v56 = vcombine.low %v7390_v59, %v7404_v35  ;;  %v9994_v37 = vcombine.high %v7390_v59, %v7404_v35  ;;  %v9231_v7 = vcombine.low %v7397_v52, %v7411_v5 }
 0x33c   : > { %v9995_v30 = vcombine.high %v7397_v52, %v7411_v5  ;;  %v8885_v50 = vcombine.low %v8877_v20, %v8884_v2  ;;  %v8967_v57 = vcombine.low %v14489_v32, %v14492_v38  ;;  %v8968_v39 = vcombine.low %v14535_v42, %v8966_v1  ;;  %v15992_v38 = vld [vmem:[#allocation155_spill] sm:$0xff]  ;;  %v15993_v42 = vld [vmem:[#allocation153_spill] sm:$0xff] }
 0x33d   : > { %9406 = vperm.xlu1 %10067, %v8787_v4   ;;  %v9073_v60 = vrot.slane %v9065_v28, %v10938_v53  ;;  %v9080_v14 = vrot.slane %v9066_v21, %v10938_v53  ;;  %v9171_v0 = vrot.slane %v9163_v49, %v10938_v53  ;;  %v9178_v55 = vrot.slane %v9164_v22, %v10938_v53  ;;  %v14698_v20 = vpop.permute.xlu1 %5166 }
 0x33e   : > { %v9309_v12 = vrot.slane %v9997_v34, %v10938_v53  ;;  %9415 = vperm.xlu0 %10066, %v8934_v11   ;;  %v9130_v32 = vcombine.low %v9122_v63, %v9129_v61  ;;  %v9212_v3 = vcombine.low %v15993_v42, %v15992_v38  ;;  %v9213_v6 = vcombine.low %v15995_v10, %v15994_v58  ;;  %v14696_v1 = vpop.permute.xlu0 %5169 }
 0x33f   : > { %v9239_v47 = vrot.slane %v9229_v56, %v10938_v53  ;;  %v9246_v62 = vrot.slane %v9994_v37, %v10938_v53  ;;  %v9253_v45 = vrot.slane %v9231_v7, %v10938_v53  ;;  %v9260_v18 = vrot.slane %v9995_v30, %v10938_v53 }
 0x340   : > { %v8975_v31 = vrot.slane %v8967_v57, %v10938_v53  ;;  %v8982_v19 = vrot.slane %v8968_v39, %v10938_v53  ;;  %v9081_v34 = vcombine.low %v9073_v60, %v9080_v14  ;;  %v9179_v16 = vcombine.low %v9171_v0, %v9178_v55  ;;  %v16000_v60 = vld [vmem:[#allocation141_spill] sm:$0xff] }
 0x341   : > { %9412 = vperm.xlu1 %10067, %v8885_v50   ;;  %v9016_v44 = vcombine.low %v15997_v40, %v15996_v43  ;;  %v9017_v27 = vcombine.low %v15999_v13, %v15998_v8  ;;  %v9220_v59 = vrot.slane %v9212_v3, %v10938_v53  ;;  %v9227_v52 = vrot.slane %v9213_v6, %v10938_v53  ;;  %v14708_v37 = vpop.permute.xlu1 %5172 }
 0x342   : > { %9427 = vperm.xlu0 %10066, %v9130_v32   ;;  %v9310_v35 = vcombine.low %v14405_v23, %v9295_v26  ;;  %v9311_v5 = vcombine.low %v9302_v48, %v9309_v12  ;;  %v8983_v4 = vcombine.low %v8975_v31, %v8982_v19  ;;  %v9261_v21 = vcombine.low %v9239_v47, %v9246_v62  ;;  %v14704_v23 = vpop.permute.xlu0 %5175  ;;  %v16001_v32 = vld [vmem:[#allocation47_spill] sm:$0xff] }
 0x343   : > { %v9024_v2 = vrot.slane %v9016_v44, %v10938_v53  ;;  %v9031_v28 = vrot.slane %v9017_v27, %v10938_v53  ;;  %v9262_v49 = vcombine.low %v9253_v45, %v9260_v18  ;;  %v9228_v22 = vcombine.low %v9220_v59, %v9227_v52 }
 0x344   : > { %v9318_v11 = vrot.slane %v9310_v35, %v10938_v53  ;;  %v9325_v63 = vrot.slane %v9311_v5, %v10938_v53  ;;  %v9269_v61 = vrot.slane %v9261_v21, %v10938_v53  ;;  %v5247_v14 = vadd.s32 4294967288, %v16000_v60 }
 0x345   : > { %9424 = vperm.xlu1 %10067, %v9081_v34   ;;  %v9032_v26 = vcombine.low %v9024_v2, %v9031_v28  ;;  %v9276_v48 = vrot.slane %v9262_v49, %v10938_v53  ;;  %v5254_v0 = vadd.s32 4294967280, %v16000_v60  ;;  %v5261_v3 = vadd.s32 4294967272, %v16000_v60 }
 0x346   : > { %9430 = vperm.xlu0 %10066, %v9179_v16   ;;  %v9326_v56 = vcombine.low %v9318_v11, %v9325_v63  ;;  %v5182_v30 = vpop.permute.xlu0 %5181  ;;  %v14713_v38 = vsub.s32 %v5247_v14, %v16001_v32  ;;  %v14721_v58 = vsub.s32 %v16000_v60, %v16001_v32  ;;  %v5268_v10 = vadd.s32 4294967264, %v16000_v60 }
 0x347   : > { %v9277_v7 = vcombine.low %v9269_v61, %v9276_v48  ;;  %v14716_v42 = vsub.s32 %v5254_v0, %v16001_v32  ;;  %vm5252_vm3 = vcmask 130112   ;;  %v14731_v45 = vsub.s32 %v5261_v3, %v16001_v32 }
 0x348   : > { %v5179_v50 = vpop.permute.xlu1 %5178  ;;  %v5251_v47 = vrot.slane %v14522_v41, %v14713_v38  ;;  %v5359_v31 = vrot.slane %v5182_v30, %v14713_v38  ;;  %v5246_v34 = vrot.slane %v14518_v36, %v14721_v58  ;;  %vm5259_vm6 = vcmask 195712  }
 0x349   : > { %9418 = vperm.xlu1 %10067, %v8983_v4   ;;  %v5258_v62 = vrot.slane %v14554_v29, %v14716_v42  ;;  %v5355_v18 = vrot.slane %v5179_v50, %v14721_v58  ;;  %v5275_v16 = vadd.s32 4294967256, %v16000_v60  ;;  %v14740_v41 = vsub.s32 %v5268_v10, %v16001_v32 }
 0x34a   : > { %9433 = vperm.xlu0 %10066, %v9228_v22   ;;  %v5282_v29 = vadd.s32 4294967248, %v16000_v60  ;;  %v5253_v40 = vsel %vm5252_vm3, %v5251_v47, %v5246_v34  ;;  %vm5266_vm15 = vcmask 261312   ;;  %v5265_v8 = vrot.slane %v14544_v24, %v14731_v45 }
 0x34b   : > { %v5188_v57 = vpop.permute.xlu0 %5187  ;;  %v5260_v44 = vsel %vm5259_vm6, %v5258_v62, %v5253_v40  ;;  %v5360_v36 = vsel %vm5252_vm3, %v5359_v31, %v5355_v18  ;;  %v14750_v59 = vsub.s32 %v5275_v16, %v16001_v32  ;;  %v5289_v52 = vadd.s32 4294967240, %v16000_v60 }
 0x34c   : > { %v5369_v13 = vrot.slane %v5188_v57, %v14731_v45  ;;  %v5272_v4 = vrot.slane %v14590_v17, %v14740_v41  ;;  %v14758_v2 = vsub.s32 %v5282_v29, %v16001_v32  ;;  %vm5273_vm10 = vcmask 326912  }
 0x34d   : > { %9421 = vperm.xlu1 %10067, %v9032_v26   ;;  %v5296_v28 = vadd.s32 4294967232, %v16000_v60  ;;  %v5267_v21 = vsel %vm5266_vm15, %v5265_v8, %v5260_v44  ;;  %v5279_v11 = vrot.slane %v14578_v54, %v14750_v59  ;;  %v14767_v63 = vsub.s32 %v5289_v52, %v16001_v32 }
 0x34e   : > { %9439 = vperm.xlu0 %10066, %v9326_v56   ;;  %v5274_v61 = vsel %vm5273_vm10, %v5272_v4, %v5267_v21  ;;  %vm5280_vm11 = vcmask 392512   ;;  %v5286_v48 = vrot.slane %v14619_v15, %v14758_v2  ;;  %v5303_v56 = vadd.s32 4294967224, %v16000_v60 }
 0x34f   : > { %vm5287_vm7 = vcmask 458112   ;;  %v14776_v30 = vsub.s32 %v5296_v28, %v16001_v32  ;;  %v5310_v54 = vadd.s32 4294967216, %v16000_v60  ;;  %v5281_v14 = vsel %vm5280_vm11, %v5279_v11, %v5274_v61 }
 0x350   : > { %v5185_v39 = vpop.permute.xlu1 %5184  ;;  %v5293_v15 = vrot.slane %v14608_v51, %v14767_v63  ;;  %vm5294_vm13 = vcmask 523712   ;;  %v14789_v3 = vsub.s32 %v5303_v56, %v16001_v32  ;;  %v5317_v10 = vadd.s32 4294967208, %v16000_v60 }
 0x351   : > { %9436 = vperm.xlu1 %10067, %v9277_v7   ;;  %v5364_v43 = vrot.slane %v5185_v39, %v14716_v42  ;;  %v14795_v47 = vsub.s32 %v5310_v54, %v16001_v32  ;;  %v5324_v51 = vadd.s32 4294967200, %v16000_v60  ;;  %vm5301_vm4 = vcmask 589312  }
 0x352   : > { %v5194_v55 = vpop.permute.xlu0 %5193  ;;  %vm5308_vm8 = vcmask 654912   ;;  %v14806_v29 = vsub.s32 %v5317_v10, %v16001_v32  ;;  %v5331_v40 = vadd.s32 4294967192, %v16000_v60  ;;  %vm5315_vm1 = vcmask 720512  }
 0x353   : > { %v5365_v35 = vsel %vm5259_vm6, %v5364_v43, %v5360_v36  ;;  %v5379_v22 = vrot.slane %v5194_v55, %v14750_v59  ;;  %v5314_v8 = vrot.slane %v14681_v9, %v14795_v47  ;;  %v14813_v36 = vsub.s32 %v5324_v51, %v16001_v32 }
 0x354   : > { %v5370_v49 = vsel %vm5266_vm15, %v5369_v13, %v5365_v35  ;;  %v5338_v13 = vadd.s32 4294967184, %v16000_v60  ;;  %v5321_v9 = vrot.slane %v14667_v46, %v14806_v29  ;;  %v5345_v28 = vadd.s32 4294967176, %v16000_v60 }
 0x355   : > { %vm5322_vm2 = vcmask 786112   ;;  %vm5329_vm5 = vcmask 851712   ;;  %vm5336_vm0 = vcmask 917312   ;;  %vm5343_vm9 = vcmask 982912  }
 0x356   : > { %v5191_v12 = vpop.permute.xlu1 %5190  ;;  %v14831_v11 = vsub.s32 %v5338_v13, %v16001_v32  ;;  %vm5350_vm12 = vcmask 1048512  }
 0x357   : > { %v5374_v5 = vrot.slane %v5191_v12, %v14740_v41  ;;  %v5288_v12 = vsel %vm5287_vm7, %v5286_v48, %v5281_v14 }
 0x358   : > { %v5295_v34 = vsel %vm5294_vm13, %v5293_v15, %v5288_v12 }
 0x359   : > { %v14724_v6 = vpop.permute.xlu0 %5199  ;;  %v5375_v17 = vsel %vm5273_vm10, %v5374_v5, %v5370_v49 }
 0x35a   : > { %v5380_v50 = vsel %vm5280_vm11, %v5379_v22, %v5375_v17  ;;  %v5389_v57 = vrot.slane %v14724_v6, %v14767_v63  ;;  %v5300_v6 = vrot.slane %v14649_v25, %v14776_v30  ;;  %v5307_v25 = vrot.slane %v14637_v33, %v14789_v3 }
 0x35b   : > { %v5328_v22 = vrot.slane %v14698_v20, %v14813_v36  ;;  %v14841_v20 = vsub.s32 %v5345_v28, %v16001_v32 }
 0x35c   : > { %v5302_v44 = vsel %vm5301_vm4, %v5300_v6, %v5295_v34 }
 0x35d   : > { %v5197_v19 = vpop.permute.xlu1 %5196  ;;  %v5309_v4 = vsel %vm5308_vm8, %v5307_v25, %v5302_v44 }
 0x35e   : > { %v5384_v26 = vrot.slane %v5197_v19, %v14758_v2  ;;  %v5316_v49 = vsel %vm5315_vm1, %v5314_v8, %v5309_v4  ;;  %v16002_v4 = vlaneseq }
 0x35f   : > { %v5323_v48 = vsel %vm5322_vm2, %v5321_v9, %v5316_v49 }
 0x360   : > { %v5385_v0 = vsel %vm5287_vm7, %v5384_v26, %v5380_v50  ;;  %v5330_v54 = vsel %vm5329_vm5, %v5328_v22, %v5323_v48  ;;  %v5342_v50 = vrot.slane %v14708_v37, %v14831_v11  ;;  %vm14881_vm14 = vcmp.lt.s32.totalorder %v16002_v4, 304 }
 0x361   : > { %v5390_v18 = vsel %vm5294_vm13, %v5389_v57, %v5385_v0 }
 0x362   : > { %v5206_v27 = vpop.permute.xlu0 %5205 }
 0x363   : > { %v5399_v31 = vrot.slane %v5206_v27, %v14789_v3 }
 0x367   : > { %v5203_v24 = vpop.permute.xlu1 %5202 }
 0x368   : > { %v5394_v55 = vrot.slane %v5203_v24, %v14776_v30  ;;  %v14824_v24 = vsub.s32 %v5331_v40, %v16001_v32 }
 0x36a   : > { %v5212_v7 = vpop.permute.xlu0 %5211  ;;  %v5395_v16 = vsel %vm5301_vm4, %v5394_v55, %v5390_v18  ;;  %v5335_v56 = vrot.slane %v14696_v1, %v14824_v24  ;;  %v5349_v55 = vrot.slane %v14704_v23, %v14841_v20 }
 0x36b   : > { %v5400_v52 = vsel %vm5308_vm8, %v5399_v31, %v5395_v16  ;;  %v5409_v33 = vrot.slane %v5212_v7, %v14806_v29 }
 0x36c   : > { %v5337_v0 = vsel %vm5336_vm0, %v5335_v56, %v5330_v54 }
 0x36d   : > { %v5209_v39 = vpop.permute.xlu1 %5208  ;;  %v5344_v37 = vsel %vm5343_vm9, %v5342_v50, %v5337_v0 }
 0x36e   : > { %v5404_v43 = vrot.slane %v5209_v39, %v14795_v47  ;;  %v5351_v23 = vsel %vm5350_vm12, %v5349_v55, %v5344_v37 }
 0x36f   : > { %v5218_v62 = vpop.permute.xlu0 %5217 }
 0x370   : > { %v5405_v35 = vsel %vm5315_vm1, %v5404_v43, %v5400_v52  ;;  %v5419_v46 = vrot.slane %v5218_v62, %v14824_v24 }
 0x371   : > { %v5215_v19 = vpop.permute.xlu1 %5214  ;;  %v5410_v26 = vsel %vm5322_vm2, %v5409_v33, %v5405_v35 }
 0x372   : > { %v5414_v5 = vrot.slane %v5215_v19, %v14813_v36 }
 0x373   : > { %v5224_v27 = vpop.permute.xlu0 %5223 }
 0x374   : > { %v5415_v61 = vsel %vm5329_vm5, %v5414_v5, %v5410_v26  ;;  %v5429_v14 = vrot.slane %v5224_v27, %v14841_v20 }
 0x375   : > { %v5420_v39 = vsel %vm5336_vm0, %v5419_v46, %v5415_v61 }
 0x376   : > { %v5221_v21 = vpop.permute.xlu1 %5220 }
 0x377   : > { %v5424_v60 = vrot.slane %v5221_v21, %v14831_v11 }
 0x378   : > { %v5230_v17 = vpop.permute.xlu0 %5229 }
 0x379   : > { %v5438_v1 = vrot.slane %v5230_v17, %v14713_v38  ;;  %v5425_v32 = vsel %vm5343_vm9, %v5424_v60, %v5420_v39 }
 0x37a   : > { %v5227_v7 = vpop.permute.xlu1 %5226  ;;  %v5430_v51 = vsel %vm5350_vm12, %v5429_v14, %v5425_v32 }
 0x37b   : > { %v5434_v15 = vrot.slane %v5227_v7, %v14721_v58  ;;  %v5460_v16 = vcombine.low %v5351_v23, %v5430_v51 }
 0x37c   : > { %v5236_v57 = vpop.permute.xlu0 %5235 }
 0x37d   : > { %v5439_v62 = vsel %vm5252_vm3, %v5438_v1, %v5434_v15  ;;  %v5448_v18 = vrot.slane %v5236_v57, %v14731_v45  ;;  %v5467_v27 = vrot.slane %v5460_v16, %v10938_v53 }
 0x380   : > { %v5233_v12 = vpop.permute.xlu1 %5232  ;;  %v5242_v6 = vpop.permute.xlu0 %5241 }
 0x381   : > { %v5443_v10 = vrot.slane %v5233_v12, %v14716_v42  ;;  %v5458_v34 = vrot.slane %v5242_v6, %v14750_v59 }
 0x383   : > { %v5444_v31 = vsel %vm5259_vm6, %v5443_v10, %v5439_v62 }
 0x384   : > { %v5239_v19 = vpop.permute.xlu1 %5238  ;;  %v5449_v40 = vsel %vm5266_vm15, %v5448_v18, %v5444_v31 }
 0x385   : > { %v5453_v43 = vrot.slane %v5239_v19, %v14740_v41  ;;  %v14863_v25 = vpop.permute.xlu0 %9331 }
 0x387   : > { %v5454_v44 = vsel %vm5273_vm10, %v5453_v43, %v5449_v40 }
 0x388   : > { %v5459_v8 = vsel %vm5280_vm11, %v5458_v34, %v5454_v44  ;;  %v14869_v13 = vpop.permute.xlu1 %9328 }
 0x389   : > { %v5474_v52 = vrot.slane %v5459_v8, %v10938_v53  ;;  %v14873_v33 = vpop.permute.xlu0 %9337 }
 0x38b   : > { %v5475_v35 = vcombine.low %v5467_v27, %v5474_v52 }
 0x38c   : > { %v14878_v5 = vpop.permute.xlu1 %9334 }
 0x38d   : > { %v5482_v28 = vrot.slane %v5475_v35, %v10938_v53  ;;  %v14886_v21 = vpop.permute.xlu0 %9343 }
 0x38f   : > { %5488 = vst.msk [vmem:[%s209_s19] sm:$0x7] %vm14881_vm14, %v5482_v28 }
 0x390   : > { %v14899_v49 = vpop.permute.xlu1 %9340 }
 0x391   : > { %10401 = shalt.err (!%p10398_p4)
}
 0x392   : > { %s10402_s22 = scalar_lea.hbm %s14893_s27, 48  ;;  %s10406_s6 = scalar_lea.hbm %s15081_s2, 96 }
 0x393   : > { %p10403_p5 = scmp.ne.s32.totalorder %s14893_s27, %s10402_s22  ;;  %p10407_p1 = scmp.lt.u32.totalorder %s14893_s27, %s15081_s2 }
 0x394   : > { %p10408_p3 = scmp.lt.u32.totalorder %s10406_s6, %s10402_s22  ;;  %p10410_p11 = scmp.lt.u32.totalorder %s10402_s22, %s14893_s27 }
 0x395   : > { %p10404_p7 = pnand %p10403_p5, %p16005_p12 }
 0x396   : > { %p10409_p6 = por %p10408_p3, %p10407_p1 }
 0x397   : > { %p10405_p9 = pneg %p10404_p7 }
 0x398   : > { %p10411_p13 = por %p10410_p11, %p10409_p6 }
 0x39a   : > { %p10412_p8 = pnand %p10411_p13, %p10405_p9 }
 0x39c   : > { %10415 = shalt.err (!%p10412_p8)
}
 0x39d   : > { %10012 = dma.vmem_to_hbm [thread:$0]  (%p16005_p12), %s14895_s20, 48, %s14893_s27, %s9654_s28   ;;  %v9350_v22 = vpop.permute.xlu0 %9349  ;;  %v9347_v17 = vpop.permute.xlu1 %9346  ;;  %v9444_v1 = vrot.slane %v14869_v13, %v14721_v58  ;;  %v9448_v32 = vrot.slane %v14863_v25, %v14713_v38  ;;  %v9453_v55 = vrot.slane %v14878_v5, %v14716_v42  ;;  %v9458_v62 = vrot.slane %v14873_v33, %v14731_v45 }
 0x39e   : > { %v9463_v23 = vrot.slane %v14899_v49, %v14740_v41  ;;  %v9468_v44 = vrot.slane %v14886_v21, %v14750_v59  ;;  %v9473_v27 = vrot.slane %v9347_v17, %v14758_v2  ;;  %v9478_v49 = vrot.slane %v9350_v22, %v14767_v63  ;;  %s216_s20 = scalar_lea.vmem [#allocation6], %s10007_s11  ;;  %s15033_s28 = scalar_lea.hbm %s15082_s3, %s10008_s17 }
 0x39f   : > { %v9449_v51 = vsel %vm5252_vm3, %v9448_v32, %v9444_v1  ;;  %s9687_s25 = sshll.u32 %s216_s20, 4  ;;  %s9659_s29 = scalar_lea.sflag [#allocation7], %s10614_s5  ;;  %s15035_s25 = int_to_ptr.vmem [resolvable:$true] %s9687_s25 }
 0x3a0   : > { %v9454_v31 = vsel %vm5259_vm6, %v9453_v55, %v9449_v51  ;;  %s10416_s11 = scalar_lea.vmem %s15035_s25, 48  ;;  %s10495_s16 = smov [#allocation6]  }
 0x3a1   : > { %v14923_v26 = vpop.permute.xlu0 %9355  ;;  %v9353_v46 = vpop.permute.xlu1 %9352  ;;  %v9459_v40 = vsel %vm5266_vm15, %v9458_v62, %v9454_v31  ;;  %p10417_p10 = scmp.ne.s32.totalorder %s15035_s25, %s10416_s11  ;;  %s10420_s8 = sshll.u32 %s10495_s16, 4  ;;  %s10421_s8 = int_to_ptr.vmem [resolvable:$false] %s10420_s8 }
 0x3a2   : > { %v9464_v13 = vsel %vm5273_vm10, %v9463_v23, %v9459_v40  ;;  %v9488_v32 = vrot.slane %v14923_v26, %v14789_v3  ;;  %s10422_s9 = scalar_lea.vmem %s10421_s8, 96  ;;  %p10423_p4 = scmp.lt.s32.totalorder %s15035_s25, %s10421_s8 }
 0x3a3   : > { %v9469_v28 = vsel %vm5280_vm11, %v9468_v44, %v9464_v13  ;;  %p10418_p0 = pnand %p10417_p10, %p16005_p12  ;;  %p10424_p5 = scmp.lt.s32.totalorder %s10422_s9, %s10416_s11 }
 0x3a4   : > { %v9474_v21 = vsel %vm5287_vm7, %v9473_v27, %v9469_v28 }
 0x3a5   : > { %v14925_v61 = vpop.permute.xlu0 %9361  ;;  %v14927_v60 = vpop.permute.xlu1 %9358  ;;  %p10419_p2 = pneg %p10418_p0  ;;  %p10425_p7 = por %p10424_p5, %p10423_p4 }
 0x3a6   : > { %v9498_v26 = vrot.slane %v14925_v61, %v14806_v29 }
 0x3a7   : > { %p10426_p9 = pnand %p10425_p7, %p10419_p2 }
 0x3a9   : > { %v14929_v48 = vpop.permute.xlu0 %9367  ;;  %v14931_v56 = vpop.permute.xlu1 %9364 }
 0x3aa   : > { %v9508_v61 = vrot.slane %v14929_v48, %v14824_v24 }
 0x3ad   : > { %v14933_v7 = vpop.permute.xlu0 %9373  ;;  %v14935_v54 = vpop.permute.xlu1 %9370 }
 0x3ae   : > { %v9518_v48 = vrot.slane %v14933_v7, %v14841_v20 }
 0x3b1   : > { %v9380_v50 = vpop.permute.xlu0 %9379  ;;  %v9377_v57 = vpop.permute.xlu1 %9376 }
 0x3b2   : > { %v9523_v12 = vrot.slane %v9377_v57, %v14721_v58  ;;  %v9527_v37 = vrot.slane %v9380_v50, %v14713_v38  ;;  %v9483_v57 = vrot.slane %v9353_v46, %v14776_v30  ;;  %v9493_v46 = vrot.slane %v14927_v60, %v14795_v47 }
 0x3b3   : > { %v9503_v60 = vrot.slane %v14931_v56, %v14813_v36  ;;  %v9513_v56 = vrot.slane %v14935_v54, %v14831_v11 }
 0x3b4   : > { %v9528_v19 = vsel %vm5252_vm3, %v9527_v37, %v9523_v12 }
 0x3b5   : > { %v9386_v39 = vpop.permute.xlu0 %9385  ;;  %v9383_v14 = vpop.permute.xlu1 %9382 }
 0x3b6   : > { %v9532_v6 = vrot.slane %v9383_v14, %v14716_v42  ;;  %v9537_v34 = vrot.slane %v9386_v39, %v14731_v45 }
 0x3b8   : > { %v9533_v43 = vsel %vm5259_vm6, %v9532_v6, %v9528_v19 }
 0x3b9   : > { %v9392_v15 = vpop.permute.xlu0 %9391  ;;  %v9389_v0 = vpop.permute.xlu1 %9388  ;;  %v9538_v52 = vsel %vm5266_vm15, %v9537_v34, %v9533_v43 }
 0x3ba   : > { %v9542_v25 = vrot.slane %v9389_v0, %v14740_v41  ;;  %v9547_v33 = vrot.slane %v9392_v15, %v14750_v59 }
 0x3bc   : > { %v9543_v5 = vsel %vm5273_vm10, %v9542_v25, %v9538_v52 }
 0x3bd   : > { %v9398_v10 = vpop.permute.xlu0 %9397  ;;  %v9395_v18 = vpop.permute.xlu1 %9394  ;;  %v9548_v17 = vsel %vm5280_vm11, %v9547_v33, %v9543_v5 }
 0x3be   : > { %v9552_v4 = vrot.slane %v9395_v18, %v14758_v2  ;;  %v9557_v39 = vrot.slane %v9398_v10, %v14767_v63  ;;  %v9479_v2 = vsel %vm5294_vm13, %v9478_v49, %v9474_v21 }
 0x3bf   : > { %v9484_v0 = vsel %vm5301_vm4, %v9483_v57, %v9479_v2 }
 0x3c0   : > { %v9553_v15 = vsel %vm5287_vm7, %v9552_v4, %v9548_v17  ;;  %v9489_v10 = vsel %vm5308_vm8, %v9488_v32, %v9484_v0 }
 0x3c1   : > { %v9404_v16 = vpop.permute.xlu0 %9403  ;;  %v9401_v8 = vpop.permute.xlu1 %9400  ;;  %v9558_v55 = vsel %vm5294_vm13, %v9557_v39, %v9553_v15  ;;  %v9494_v51 = vsel %vm5315_vm1, %v9493_v46, %v9489_v10 }
 0x3c2   : > { %v9562_v1 = vrot.slane %v9401_v8, %v14776_v30  ;;  %v9567_v63 = vrot.slane %v9404_v16, %v14789_v3  ;;  %v9499_v23 = vsel %vm5322_vm2, %v9498_v26, %v9494_v51 }
 0x3c3   : > { %v9504_v34 = vsel %vm5329_vm5, %v9503_v60, %v9499_v23 }
 0x3c4   : > { %v9563_v37 = vsel %vm5301_vm4, %v9562_v1, %v9558_v55  ;;  %v9509_v40 = vsel %vm5336_vm0, %v9508_v61, %v9504_v34 }
 0x3c5   : > { %v9410_v35 = vpop.permute.xlu0 %9409  ;;  %v9407_v50 = vpop.permute.xlu1 %9406  ;;  %v9568_v62 = vsel %vm5308_vm8, %v9567_v63, %v9563_v37  ;;  %v9514_v54 = vsel %vm5343_vm9, %v9513_v56, %v9509_v40 }
 0x3c6   : > { %v9572_v30 = vrot.slane %v9407_v50, %v14795_v47  ;;  %v9577_v3 = vrot.slane %v9410_v35, %v14806_v29 }
 0x3c8   : > { %v9573_v31 = vsel %vm5315_vm1, %v9572_v30, %v9568_v62 }
 0x3c9   : > { %v9416_v14 = vpop.permute.xlu0 %9415  ;;  %v9413_v22 = vpop.permute.xlu1 %9412  ;;  %v9578_v16 = vsel %vm5322_vm2, %v9577_v3, %v9573_v31 }
 0x3ca   : > { %v9582_v47 = vrot.slane %v9413_v22, %v14813_v36  ;;  %v9587_v29 = vrot.slane %v9416_v14, %v14824_v24 }
 0x3cc   : > { %v9583_v25 = vsel %vm5329_vm5, %v9582_v47, %v9578_v16 }
 0x3cd   : > { %v9428_v12 = vpop.permute.xlu0 %9427  ;;  %v9425_v6 = vpop.permute.xlu1 %9424  ;;  %v9588_v27 = vsel %vm5336_vm0, %v9587_v29, %v9583_v25 }
 0x3ce   : > { %v9602_v44 = vrot.slane %v9425_v6, %v14721_v58  ;;  %v9606_v8 = vrot.slane %v9428_v12, %v14713_v38  ;;  %v9519_v58 = vsel %vm5350_vm12, %v9518_v48, %v9514_v54 }
 0x3d0   : > { %v9607_v38 = vsel %vm5252_vm3, %v9606_v8, %v9602_v44 }
 0x3d1   : > { %v9431_v18 = vpop.permute.xlu0 %9430  ;;  %v9419_v19 = vpop.permute.xlu1 %9418 }
 0x3d2   : > { %v9592_v36 = vrot.slane %v9419_v19, %v14831_v11  ;;  %v9611_v24 = vrot.slane %v9431_v18, %v14716_v42 }
 0x3d4   : > { %v9593_v11 = vsel %vm5343_vm9, %v9592_v36, %v9588_v27  ;;  %v9612_v42 = vsel %vm5259_vm6, %v9611_v24, %v9607_v38 }
 0x3d5   : > { %v9434_v43 = vpop.permute.xlu0 %9433  ;;  %v9422_v13 = vpop.permute.xlu1 %9421 }
 0x3d6   : > { %v9597_v52 = vrot.slane %v9422_v13, %v14841_v20  ;;  %v9616_v35 = vrot.slane %v9434_v43, %v14731_v45 }
 0x3d8   : > { %v9598_v7 = vsel %vm5350_vm12, %v9597_v52, %v9593_v11  ;;  %v9617_v49 = vsel %vm5266_vm15, %v9616_v35, %v9612_v42 }
 0x3d9   : > { %v9440_v33 = vpop.permute.xlu0 %9439  ;;  %v9437_v5 = vpop.permute.xlu1 %9436  ;;  %v9628_v20 = vcombine.low %v9519_v58, %v9598_v7 }
 0x3da   : > { %v9626_v4 = vrot.slane %v9440_v33, %v14750_v59  ;;  %v9621_v28 = vrot.slane %v9437_v5, %v14740_v41 }
 0x3db   : > { %v9635_v21 = vrot.slane %v9628_v20, %v10938_v53 }
 0x3dc   : > { %v9622_v45 = vsel %vm5273_vm10, %v9621_v28, %v9617_v49 }
 0x3dd   : > { %v9627_v50 = vsel %vm5280_vm11, %v9626_v4, %v9622_v45 }
 0x3de   : > { %v9642_v57 = vrot.slane %v9627_v50, %v10938_v53 }
 0x3e0   : > { %v9643_v59 = vcombine.low %v9635_v21, %v9642_v57 }
 0x3e2   : > { %v9650_v17 = vrot.slane %v9643_v59, %v10938_v53 }
 0x3e4   : > { %9652 = vst.msk [vmem:[%s216_s20] sm:$0x7] %vm14881_vm14, %v9650_v17 }
 0x3e5   : > { %10429 = shalt.err (!%p10426_p9)
}
 0x3e6   : > { %s10430_s5 = scalar_lea.hbm %s15033_s28, 48  ;;  %s10434_s22 = scalar_lea.hbm %s15082_s3, 96 }
 0x3e7   : > { %p10431_p1 = scmp.ne.s32.totalorder %s15033_s28, %s10430_s5  ;;  %p10435_p11 = scmp.lt.u32.totalorder %s15033_s28, %s15082_s3 }
 0x3e8   : > { %p10436_p13 = scmp.lt.u32.totalorder %s10434_s22, %s10430_s5  ;;  %p10438_p10 = scmp.lt.u32.totalorder %s10430_s5, %s15033_s28 }
 0x3e9   : > { %p10432_p3 = pnand %p10431_p1, %p16005_p12 }
 0x3ea   : > { %p10437_p8 = por %p10436_p13, %p10435_p11 }
 0x3eb   : > { %p10433_p6 = pneg %p10432_p3 }
 0x3ec   : > { %p10439_p0 = por %p10438_p10, %p10437_p8 }
 0x3ee   : > { %p10440_p2 = pnand %p10439_p0, %p10433_p6 }
 0x3f0   : > { %10443 = shalt.err (!%p10440_p2)
}
 0x3f1   : > { %10013 = dma.vmem_to_hbm [thread:$0]  (%p16005_p12), %s15035_s25, 48, %s15033_s28, %s9659_s29  }
 0x3f2 PF: > { %s9699_s6 = sand.u32 1, %s10474_s12   ;;  %p16006_p4 = scmp.ne.s32.totalorder %s15278_s24, 0 }
 0x3f3   : > { %p16007_p5 = scmp.ge.s32.totalorder %s10486_s15, 2  ;;  %s9700_s7 = scalar_lea.sflag [#allocation4], %s9699_s6 }
 0x3f5   : > { %p10021_p7 = pnand %p16007_p5, %p16006_p4 }
 0x3f7   : > { %10465 = dma.done.wait (!%p10021_p7), %s9700_s7, 48  }
 0x3f8   : > { %10467 = vsyncadd (!%p10021_p7), %s9700_s7, 4294967248  ;;  %s9709_s19 = scalar_lea.sflag [#allocation7], %s9699_s6 }
 0x3f9   : > { %10469 = dma.done.wait (!%p10021_p7), %s9709_s19, 48  }
 0x3fa   : > { %10471 = vsyncadd (!%p10021_p7), %s9709_s19, 4294967248  ;;  %p20_p12 = scmp.ge.s32.totalorder %s10541_s18, 4   ;;  %s16008_s12 = smov %s10478_s13 }
 0x3fb   : > { %s16009_s13 = smov %s10482_s14  ;;  %s16010_s14 = smov %s10553_s21 }
 0x3fc   : > { %s16011_s15 = smov %s10541_s18  ;;  %22 = sbr.rel (!%p20_p12) target bundleno = 7 (0x7), region = 93 }
 0x403   :  { %9714 = vsyncpa [#allocation3], 1 }
 0x404   :  { %9716 = vsyncpa [#allocation3 + $0x1], 1 }
 0x405   :  { %9717 = vsyncpa [#allocation4], 1 }
 0x406   :  { %9719 = vsyncpa [#allocation4 + $0x1], 1 }
 0x407   :  { %9720 = vsyncpa [#allocation7], 1 }
 0x408   :  { %9722 = vsyncpa [#allocation7 + $0x1], 1 }

</bundles_post_ra>
